<compile_context>
chip_gen: v7x
topology: tpu7x:2x2x1
jax: 0.10.0
libtpu: 0.0.40
codegen_flags: <defaults>
</compile_context>

<pallas_src>
import functools

import numpy as np
import jax
import jax.numpy as jnp
from jax.experimental import pallas as pl
from jax.experimental.pallas import tpu as pltpu

jax.config.update("jax_default_matmul_precision", "float32")

BN_EPS = 1e-5


# ---------------------------------------------------------------------------
# Fused kernel: BN -> num_layers x LSTM -> Linear(last step), all in VMEM.
# ref order: x, bn(gamma/beta), pack_0..pack_{L-1}, fc_w, fc_b, out
# ---------------------------------------------------------------------------
def fused_lstm_ts_kernel(x_ref, bn_ref, *refs,
                         num_layers, hidden_size, input_size, matmul_dtype):
    fc_w_ref = refs[num_layers]          # (O, H)  (PyTorch fc.weight layout)
    fc_b_ref = refs[num_layers + 1]      # (1, O)
    out_ref = refs[num_layers + 2]       # (B, O)
    H = hidden_size

    x = x_ref[...]                                           # (B, T, I) float32
    B, T, _ = x.shape

    # ---- BatchNorm1d over seq channels, affine folded into scale/shift ----
    bn = bn_ref[...]                                         # (2, T, 1): gamma, beta
    mean = jnp.mean(x, axis=(0, 2), keepdims=True)           # (1, T, 1)
    var = jnp.mean((x - mean) ** 2, axis=(0, 2), keepdims=True)  # biased var
    scale = bn[0:1] * jax.lax.rsqrt(var + BN_EPS)            # (1, T, 1)
    shift = bn[1:2] - mean * scale                           # (1, T, 1)
    x = x * scale + shift                                    # 2 VPU passes total

    # t-major (T*B, I) layer input: contiguous per-timestep sublane slices later.
    x_flat = jnp.concatenate([x[:, t, :] for t in range(T)], axis=0)   # (T*B, I)

    # ---- LSTM stack (layer & time loops fully unrolled at trace time) ----
    for l in range(num_layers):
        in_sz = input_size if l == 0 else H
        pack = refs[l][...]                                  # (in_sz+H+1, 4H)
        w_ih = pack[:in_sz].astype(matmul_dtype)             # (in_sz, 4H)
        w_hh = pack[in_sz:in_sz + H].astype(matmul_dtype)    # (H, 4H)
        bias = pack[in_sz + H:in_sz + H + 1]                 # (1, 4H) = b_ih+b_hh

        # Hoisted input projection: ONE (T*B, in)@(in, 4H) matmul off the
        # serial critical path (only h @ W_hh stays inside the recurrence).
        xp_all = (jnp.dot(x_flat.astype(matmul_dtype), w_ih,
                          preferred_element_type=jnp.float32)
                  + bias)                                    # (T*B, 4H) f32

        h = jnp.zeros((B, H), jnp.float32)
        c = jnp.zeros((B, H), jnp.float32)
        hs = []
        for t in range(T):
            gates = xp_all[t * B:(t + 1) * B, :] + jnp.dot(
                h.astype(matmul_dtype), w_hh,
                preferred_element_type=jnp.float32)          # (B, 4H)
            # Columns pre-permuted to (i, f, o, g): sigmoid on 3H, tanh on H.
            sg = jax.nn.sigmoid(gates[:, :3 * H])
            g_g = jnp.tanh(gates[:, 3 * H:])
            i_g = sg[:, 0 * H:1 * H]
            f_g = sg[:, 1 * H:2 * H]
            o_g = sg[:, 2 * H:3 * H]
            c = f_g * c + i_g * g_g
            h = o_g * jnp.tanh(c)
            hs.append(h)
        x_flat = jnp.concatenate(hs, axis=0)                 # (T*B, H) -> next layer

    # ---- Final Linear on the last time step's hidden state ----
    last_h = hs[-1]                                          # (B, H) f32
    fc_w = fc_w_ref[...]                                     # (O, H)
    fc_b = fc_b_ref[...]                                     # (1, O)
    O = fc_w.shape[0]
    if O == 1:
        # VPU multiply + XLU lane reduction: no MXU fill/drain for an N=1 matmul.
        out = jnp.sum(last_h * fc_w, axis=-1, keepdims=True) + fc_b
    else:
        out = jax.lax.dot_general(
            last_h.astype(matmul_dtype), fc_w.astype(matmul_dtype),
            (((1,), (1,)), ((), ())),
            preferred_element_type=jnp.float32) + fc_b
    out_ref[...] = out.astype(out_ref.dtype)


# ---------------------------------------------------------------------------
# Parameter prep (one-time): gate-column reorder (i,f,g,o)->(i,f,o,g) and packing.
# ---------------------------------------------------------------------------
def prep_params(params):
    H = params["lstm"][0]["w_hh_t"].shape[0]
    perm = np.concatenate([np.arange(0, 2 * H),          # i, f
                           np.arange(3 * H, 4 * H),      # o
                           np.arange(2 * H, 3 * H)])     # g
    packs = []
    for layer in params["lstm"]:
        packs.append(jnp.concatenate([layer["w_ih_t"][:, perm],
                                      layer["w_hh_t"][:, perm],
                                      layer["bias"][:, perm]], axis=0))
    bn = jnp.stack([params["bn_gamma"], params["bn_beta"]], axis=0)[:, :, None]
    return {"bn": bn,                                    # (2, T, 1)
            "packs": packs,                              # L x (in+H+1, 4H)
            "fc_w_oh": params["fc_w_t"].T,               # (O, H)
            "fc_b": params["fc_b"],                      # (1, O)
            "hidden_size": H}


# ---------------------------------------------------------------------------
# Wrapper: one pallas_call for the whole forward (x_cat=None => Dropout no-op).
# ---------------------------------------------------------------------------
def lstm_ts_forward(prepped, x_cont, matmul_dtype=jnp.float32):
    B, T, I = x_cont.shape
    packs = prepped["packs"]
    num_layers = len(packs)
    H = prepped["hidden_size"]
    O = prepped["fc_w_oh"].shape[0]

    inputs = [x_cont, prepped["bn"]]
    in_specs = [pl.BlockSpec((B, T, I), lambda i: (0, 0, 0)),
                pl.BlockSpec((2, T, 1), lambda i: (0, 0, 0))]
    for l in range(num_layers):
        in_sz = I if l == 0 else H
        inputs.append(packs[l])
        in_specs.append(pl.BlockSpec((in_sz + H + 1, 4 * H), lambda i: (0, 0)))
    inputs += [prepped["fc_w_oh"], prepped["fc_b"]]
    in_specs += [pl.BlockSpec((O, H), lambda i: (0, 0)),
                 pl.BlockSpec((1, O), lambda i: (0, 0))]

    kernel = functools.partial(fused_lstm_ts_kernel,
                               num_layers=num_layers,
                               hidden_size=H,
                               input_size=I,
                               matmul_dtype=matmul_dtype)

    return pl.pallas_call(
        kernel,
        out_shape=jax.ShapeDtypeStruct((B, O), jnp.float32),
        grid_spec=pltpu.PrefetchScalarGridSpec(
            num_scalar_prefetch=0,
            grid=(1,),
            in_specs=in_specs,
            out_specs=pl.BlockSpec((B, O), lambda i: (0, 0))),
        compiler_params=pltpu.CompilerParams(
            dimension_semantics=("arbitrary",)),
    )(*inputs)


# ---------------------------------------------------------------------------
# Deterministic parameter init (matches module shapes; PyTorch-style uniform,
# PyTorch gate order i,f,g,o).
# ---------------------------------------------------------------------------
def init_params(key, input_size, hidden_size, num_layers, seq_length, output_size):
    bound = 1.0 / np.sqrt(hidden_size)
    layers = []
    for l in range(num_layers):
        in_sz = input_size if l == 0 else hidden_size
        key, k1, k2, k3, k4 = jax.random.split(key, 5)
        w_ih = jax.random.uniform(k1, (4 * hidden_size, in_sz),
                                  minval=-bound, maxval=bound, dtype=jnp.float32)
        w_hh = jax.random.uniform(k2, (4 * hidden_size, hidden_size),
                                  minval=-bound, maxval=bound, dtype=jnp.float32)
        b_ih = jax.random.uniform(k3, (4 * hidden_size,),
                                  minval=-bound, maxval=bound, dtype=jnp.float32)
        b_hh = jax.random.uniform(k4, (4 * hidden_size,),
                                  minval=-bound, maxval=bound, dtype=jnp.float32)
        layers.append({"w_ih_t": w_ih.T,
                       "w_hh_t": w_hh.T,
                       "bias": (b_ih + b_hh).reshape(1, -1)})
    key, kf1, kf2 = jax.random.split(key, 3)
    fc_w = jax.random.uniform(kf1, (output_size, hidden_size),
                              minval=-bound, maxval=bound, dtype=jnp.float32)
    fc_b = jax.random.uniform(kf2, (output_size,),
                              minval=-bound, maxval=bound, dtype=jnp.float32)
    return {"bn_gamma": jnp.ones((seq_length,), jnp.float32),
            "bn_beta": jnp.zeros((seq_length,), jnp.float32),
            "lstm": layers,
            "fc_w_t": fc_w.T,
            "fc_b": fc_b.reshape(1, -1)}


# ---------------------------------------------------------------------------
# Pure-JAX reference (same math, PyTorch gate order) for correctness checks.
# ---------------------------------------------------------------------------
def ref_forward(params, x_cont):
    x = x_cont
    mean = jnp.mean(x, axis=(0, 2), keepdims=True)
    var = jnp.mean((x - mean) ** 2, axis=(0, 2), keepdims=True)
    x = ((x - mean) / jnp.sqrt(var + BN_EPS)
         * params["bn_gamma"].reshape(1, -1, 1)
         + params["bn_beta"].reshape(1, -1, 1))
    B = x.shape[0]
    for layer in params["lstm"]:
        H = layer["w_hh_t"].shape[0]

        def step(carry, x_t, layer=layer):
            h, c = carry
            g = x_t @ layer["w_ih_t"] + h @ layer["w_hh_t"] + layer["bias"]
            i, f, gg, o = jnp.split(g, 4, axis=-1)
            c = jax.nn.sigmoid(f) * c + jax.nn.sigmoid(i) * jnp.tanh(gg)
            h = jax.nn.sigmoid(o) * jnp.tanh(c)
            return (h, c), h

        init = (jnp.zeros((B, H), jnp.float32), jnp.zeros((B, H), jnp.float32))
        _, hs = jax.lax.scan(step, init, jnp.transpose(x, (1, 0, 2)))
        x = jnp.transpose(hs, (1, 0, 2))
    return x[:, -1, :] @ params["fc_w_t"] + params["fc_b"]


if __name__ == "__main__":
    # Shapes consistent with the module defaults: seq_length=7, output_size=1
    BATCH, SEQ, INPUT, HIDDEN, LAYERS, OUT = 8, 7, 16, 32, 2, 1

    root = jax.random.PRNGKey(0)
    kx, kp = jax.random.split(root)
    x_cont = jax.random.normal(kx, (BATCH, SEQ, INPUT), dtype=jnp.float32)
    params = init_params(kp, INPUT, HIDDEN, LAYERS, SEQ, OUT)
    prepped = prep_params(params)

    # TODO(synk): BatchNorm running-stat updates are stateful (training-time buffer
    # mutation) and are not modeled; normalization itself uses batch statistics.

    ref = jax.block_until_ready(ref_forward(params, x_cont))

    # f32-operand path: tight check against the pure-f32 reference.
    out_f32 = jax.block_until_ready(lstm_ts_forward(prepped, x_cont, jnp.float32))
    assert out_f32.shape == (BATCH, OUT)
    np.testing.assert_allclose(np.asarray(out_f32), np.asarray(ref),
                               rtol=1e-3, atol=1e-3)

    # bf16-operand path (recommended on v6e/v7x: ~3x less serial MXU work on the
    # h@W_hh recurrence); gate/cell math stays f32, so error stays small but the
    # tolerance is necessarily looser.
    out_bf16 = jax.block_until_ready(lstm_ts_forward(prepped, x_cont, jnp.bfloat16))
    np.testing.assert_allclose(np.asarray(out_bf16), np.asarray(ref),
                               rtol=5e-2, atol=5e-2)

    print("KERNEL_OK")
</pallas_src>

<mosaic_0001>
module attributes {stable_mosaic.version = 11 : i64} {
  func.func @fused_lstm_ts_kernel(%arg0: i32, %arg1: memref<8x7x16xf32, #tpu.memory_space<vmem>>, %arg2: memref<2x7x1xf32, #tpu.memory_space<vmem>>, %arg3: memref<49x128xf32, #tpu.memory_space<vmem>>, %arg4: memref<65x128xf32, #tpu.memory_space<vmem>>, %arg5: memref<1x32xf32, #tpu.memory_space<vmem>>, %arg6: memref<1x1xf32, #tpu.memory_space<vmem>>, %arg7: memref<8x1xf32, #tpu.memory_space<vmem>>) attributes {dimension_semantics = [#tpu.dimension_semantics<arbitrary>], iteration_bounds = array<i64: 1>, scalar_prefetch = 0 : i64, scratch_operands = 0 : i64, tpu.core_type = #tpu.core_type<tc>, window_params = [{pipeline_mode = #tpu.pipeline_mode<synchronous>, transform_indices = @transform_0, window_bounds = array<i64: 8, 7, 16>}, {pipeline_mode = #tpu.pipeline_mode<synchronous>, transform_indices = @transform_1, window_bounds = array<i64: 2, 7, 1>}, {pipeline_mode = #tpu.pipeline_mode<synchronous>, transform_indices = @transform_2, window_bounds = array<i64: 49, 128>}, {pipeline_mode = #tpu.pipeline_mode<synchronous>, transform_indices = @transform_3, window_bounds = array<i64: 65, 128>}, {pipeline_mode = #tpu.pipeline_mode<synchronous>, transform_indices = @transform_4, window_bounds = array<i64: 1, 32>}, {pipeline_mode = #tpu.pipeline_mode<synchronous>, transform_indices = @transform_5, window_bounds = array<i64: 1, 1>}, {pipeline_mode = #tpu.pipeline_mode<synchronous>, transform_indices = @transform_6, window_bounds = array<i64: 8, 1>}]} {
    %c0 = arith.constant 0 : index
    %c0_0 = arith.constant 0 : index
    %c0_1 = arith.constant 0 : index
    %0 = vector.load %arg1[%c0, %c0_0, %c0_1] : memref<8x7x16xf32, #tpu.memory_space<vmem>>, vector<8x7x16xf32>
    %c0_2 = arith.constant 0 : index
    %c0_3 = arith.constant 0 : index
    %c0_4 = arith.constant 0 : index
    %1 = vector.load %arg2[%c0_2, %c0_3, %c0_4] : memref<2x7x1xf32, #tpu.memory_space<vmem>>, vector<2x7x1xf32>
    %cst = arith.constant dense<0.000000e+00> : vector<7xf32>
    %2 = vector.multi_reduction <add>, %0, %cst [0, 2] : vector<8x7x16xf32> to vector<7xf32>
    %3 = vector.shape_cast %2 : vector<7xf32> to vector<1x7x1xf32>
    %cst_5 = arith.constant 1.280000e+02 : f32
    %4 = vector.broadcast %cst_5 : f32 to vector<1x7x1xf32>
    %5 = arith.divf %3, %4 : vector<1x7x1xf32>
    %6 = vector.broadcast %5 : vector<1x7x1xf32> to vector<8x7x16xf32>
    %7 = arith.subf %0, %6 : vector<8x7x16xf32>
    %8 = arith.mulf %7, %7 : vector<8x7x16xf32>
    %cst_6 = arith.constant dense<0.000000e+00> : vector<7xf32>
    %9 = vector.multi_reduction <add>, %8, %cst_6 [0, 2] : vector<8x7x16xf32> to vector<7xf32>
    %10 = vector.shape_cast %9 : vector<7xf32> to vector<1x7x1xf32>
    %cst_7 = arith.constant 1.280000e+02 : f32
    %11 = vector.broadcast %cst_7 : f32 to vector<1x7x1xf32>
    %12 = arith.divf %10, %11 : vector<1x7x1xf32>
    %13 = vector.extract_strided_slice %1 {offsets = [0, 0, 0], sizes = [1, 7, 1], strides = [1, 1, 1]} : vector<2x7x1xf32> to vector<1x7x1xf32>
    %cst_8 = arith.constant 9.99999974E-6 : f32
    %14 = vector.broadcast %cst_8 : f32 to vector<1x7x1xf32>
    %15 = arith.addf %12, %14 : vector<1x7x1xf32>
    %16 = math.rsqrt %15 : vector<1x7x1xf32>
    %17 = arith.mulf %13, %16 : vector<1x7x1xf32>
    %18 = vector.extract_strided_slice %1 {offsets = [1, 0, 0], sizes = [1, 7, 1], strides = [1, 1, 1]} : vector<2x7x1xf32> to vector<1x7x1xf32>
    %19 = arith.mulf %5, %17 : vector<1x7x1xf32>
    %20 = arith.subf %18, %19 : vector<1x7x1xf32>
    %21 = vector.broadcast %17 : vector<1x7x1xf32> to vector<8x7x16xf32>
    %22 = arith.mulf %0, %21 : vector<8x7x16xf32>
    %23 = vector.broadcast %20 : vector<1x7x1xf32> to vector<8x7x16xf32>
    %24 = arith.addf %22, %23 : vector<8x7x16xf32>
    %25 = vector.extract_strided_slice %24 {offsets = [0, 0, 0], sizes = [8, 1, 16], strides = [1, 1, 1]} : vector<8x7x16xf32> to vector<8x1x16xf32>
    %26 = vector.shape_cast %25 : vector<8x1x16xf32> to vector<8x16xf32>
    %27 = vector.extract_strided_slice %24 {offsets = [0, 1, 0], sizes = [8, 1, 16], strides = [1, 1, 1]} : vector<8x7x16xf32> to vector<8x1x16xf32>
    %28 = vector.shape_cast %27 : vector<8x1x16xf32> to vector<8x16xf32>
    %29 = vector.extract_strided_slice %24 {offsets = [0, 2, 0], sizes = [8, 1, 16], strides = [1, 1, 1]} : vector<8x7x16xf32> to vector<8x1x16xf32>
    %30 = vector.shape_cast %29 : vector<8x1x16xf32> to vector<8x16xf32>
    %31 = vector.extract_strided_slice %24 {offsets = [0, 3, 0], sizes = [8, 1, 16], strides = [1, 1, 1]} : vector<8x7x16xf32> to vector<8x1x16xf32>
    %32 = vector.shape_cast %31 : vector<8x1x16xf32> to vector<8x16xf32>
    %33 = vector.extract_strided_slice %24 {offsets = [0, 4, 0], sizes = [8, 1, 16], strides = [1, 1, 1]} : vector<8x7x16xf32> to vector<8x1x16xf32>
    %34 = vector.shape_cast %33 : vector<8x1x16xf32> to vector<8x16xf32>
    %35 = vector.extract_strided_slice %24 {offsets = [0, 5, 0], sizes = [8, 1, 16], strides = [1, 1, 1]} : vector<8x7x16xf32> to vector<8x1x16xf32>
    %36 = vector.shape_cast %35 : vector<8x1x16xf32> to vector<8x16xf32>
    %37 = vector.extract_strided_slice %24 {offsets = [0, 6, 0], sizes = [8, 1, 16], strides = [1, 1, 1]} : vector<8x7x16xf32> to vector<8x1x16xf32>
    %38 = vector.shape_cast %37 : vector<8x1x16xf32> to vector<8x16xf32>
    %39 = tpu.concatenate %26, %28, %30, %32, %34, %36, %38 in 0 : vector<8x16xf32>, vector<8x16xf32>, vector<8x16xf32>, vector<8x16xf32>, vector<8x16xf32>, vector<8x16xf32>, vector<8x16xf32> -> vector<56x16xf32>
    %c0_9 = arith.constant 0 : index
    %c0_10 = arith.constant 0 : index
    %40 = vector.load %arg3[%c0_9, %c0_10] : memref<49x128xf32, #tpu.memory_space<vmem>>, vector<49x128xf32>
    %41 = vector.extract_strided_slice %40 {offsets = [0, 0], sizes = [16, 128], strides = [1, 1]} : vector<49x128xf32> to vector<16x128xf32>
    %42 = vector.extract_strided_slice %40 {offsets = [16, 0], sizes = [32, 128], strides = [1, 1]} : vector<49x128xf32> to vector<32x128xf32>
    %43 = vector.extract_strided_slice %40 {offsets = [48, 0], sizes = [1, 128], strides = [1, 1]} : vector<49x128xf32> to vector<1x128xf32>
    %cst_11 = arith.constant dense<0.000000e+00> : vector<56x128xf32>
    %44 = tpu.matmul %39, %41, %cst_11 {dimension_numbers = #tpu.dot_dimension_numbers<[1], [0], [0], [1], [0, 0, 1, 1], [], []>, precision = #tpu.contract_precision<fp32>} : vector<56x16xf32>, vector<16x128xf32>, vector<56x128xf32> -> vector<56x128xf32>
    %45 = vector.broadcast %43 : vector<1x128xf32> to vector<56x128xf32>
    %46 = arith.addf %44, %45 : vector<56x128xf32>
    %cst_12 = arith.constant 0.000000e+00 : f32
    %47 = vector.broadcast %cst_12 : f32 to vector<8x32xf32>
    %cst_13 = arith.constant 0.000000e+00 : f32
    %48 = vector.broadcast %cst_13 : f32 to vector<8x32xf32>
    %49 = vector.extract_strided_slice %46 {offsets = [0, 0], sizes = [8, 128], strides = [1, 1]} : vector<56x128xf32> to vector<8x128xf32>
    %cst_14 = arith.constant dense<0.000000e+00> : vector<8x128xf32>
    %50 = tpu.matmul %47, %42, %cst_14 {dimension_numbers = #tpu.dot_dimension_numbers<[1], [0], [0], [1], [0, 0, 1, 1], [], []>, precision = #tpu.contract_precision<fp32>} : vector<8x32xf32>, vector<32x128xf32>, vector<8x128xf32> -> vector<8x128xf32>
    %51 = arith.addf %49, %50 : vector<8x128xf32>
    %52 = vector.extract_strided_slice %51 {offsets = [0, 0], sizes = [8, 96], strides = [1, 1]} : vector<8x128xf32> to vector<8x96xf32>
    %53 = arith.negf %52 : vector<8x96xf32>
    %54 = math.exp %53 : vector<8x96xf32>
    %cst_15 = arith.constant 1.000000e+00 : f32
    %55 = vector.broadcast %cst_15 : f32 to vector<8x96xf32>
    %56 = arith.addf %55, %54 : vector<8x96xf32>
    %57 = arith.divf %55, %56 : vector<8x96xf32>
    %58 = vector.extract_strided_slice %51 {offsets = [0, 96], sizes = [8, 32], strides = [1, 1]} : vector<8x128xf32> to vector<8x32xf32>
    %59 = math.tanh %58 : vector<8x32xf32>
    %60 = vector.extract_strided_slice %57 {offsets = [0, 0], sizes = [8, 32], strides = [1, 1]} : vector<8x96xf32> to vector<8x32xf32>
    %61 = vector.extract_strided_slice %57 {offsets = [0, 32], sizes = [8, 32], strides = [1, 1]} : vector<8x96xf32> to vector<8x32xf32>
    %62 = vector.extract_strided_slice %57 {offsets = [0, 64], sizes = [8, 32], strides = [1, 1]} : vector<8x96xf32> to vector<8x32xf32>
    %63 = arith.mulf %61, %48 : vector<8x32xf32>
    %64 = arith.mulf %60, %59 : vector<8x32xf32>
    %65 = arith.addf %63, %64 : vector<8x32xf32>
    %66 = math.tanh %65 : vector<8x32xf32>
    %67 = arith.mulf %62, %66 : vector<8x32xf32>
    %68 = vector.extract_strided_slice %46 {offsets = [8, 0], sizes = [8, 128], strides = [1, 1]} : vector<56x128xf32> to vector<8x128xf32>
    %cst_16 = arith.constant dense<0.000000e+00> : vector<8x128xf32>
    %69 = tpu.matmul %67, %42, %cst_16 {dimension_numbers = #tpu.dot_dimension_numbers<[1], [0], [0], [1], [0, 0, 1, 1], [], []>, precision = #tpu.contract_precision<fp32>} : vector<8x32xf32>, vector<32x128xf32>, vector<8x128xf32> -> vector<8x128xf32>
    %70 = arith.addf %68, %69 : vector<8x128xf32>
    %71 = vector.extract_strided_slice %70 {offsets = [0, 0], sizes = [8, 96], strides = [1, 1]} : vector<8x128xf32> to vector<8x96xf32>
    %72 = arith.negf %71 : vector<8x96xf32>
    %73 = math.exp %72 : vector<8x96xf32>
    %cst_17 = arith.constant 1.000000e+00 : f32
    %74 = vector.broadcast %cst_17 : f32 to vector<8x96xf32>
    %75 = arith.addf %74, %73 : vector<8x96xf32>
    %76 = arith.divf %74, %75 : vector<8x96xf32>
    %77 = vector.extract_strided_slice %70 {offsets = [0, 96], sizes = [8, 32], strides = [1, 1]} : vector<8x128xf32> to vector<8x32xf32>
    %78 = math.tanh %77 : vector<8x32xf32>
    %79 = vector.extract_strided_slice %76 {offsets = [0, 0], sizes = [8, 32], strides = [1, 1]} : vector<8x96xf32> to vector<8x32xf32>
    %80 = vector.extract_strided_slice %76 {offsets = [0, 32], sizes = [8, 32], strides = [1, 1]} : vector<8x96xf32> to vector<8x32xf32>
    %81 = vector.extract_strided_slice %76 {offsets = [0, 64], sizes = [8, 32], strides = [1, 1]} : vector<8x96xf32> to vector<8x32xf32>
    %82 = arith.mulf %80, %65 : vector<8x32xf32>
    %83 = arith.mulf %79, %78 : vector<8x32xf32>
    %84 = arith.addf %82, %83 : vector<8x32xf32>
    %85 = math.tanh %84 : vector<8x32xf32>
    %86 = arith.mulf %81, %85 : vector<8x32xf32>
    %87 = vector.extract_strided_slice %46 {offsets = [16, 0], sizes = [8, 128], strides = [1, 1]} : vector<56x128xf32> to vector<8x128xf32>
    %cst_18 = arith.constant dense<0.000000e+00> : vector<8x128xf32>
    %88 = tpu.matmul %86, %42, %cst_18 {dimension_numbers = #tpu.dot_dimension_numbers<[1], [0], [0], [1], [0, 0, 1, 1], [], []>, precision = #tpu.contract_precision<fp32>} : vector<8x32xf32>, vector<32x128xf32>, vector<8x128xf32> -> vector<8x128xf32>
    %89 = arith.addf %87, %88 : vector<8x128xf32>
    %90 = vector.extract_strided_slice %89 {offsets = [0, 0], sizes = [8, 96], strides = [1, 1]} : vector<8x128xf32> to vector<8x96xf32>
    %91 = arith.negf %90 : vector<8x96xf32>
    %92 = math.exp %91 : vector<8x96xf32>
    %cst_19 = arith.constant 1.000000e+00 : f32
    %93 = vector.broadcast %cst_19 : f32 to vector<8x96xf32>
    %94 = arith.addf %93, %92 : vector<8x96xf32>
    %95 = arith.divf %93, %94 : vector<8x96xf32>
    %96 = vector.extract_strided_slice %89 {offsets = [0, 96], sizes = [8, 32], strides = [1, 1]} : vector<8x128xf32> to vector<8x32xf32>
    %97 = math.tanh %96 : vector<8x32xf32>
    %98 = vector.extract_strided_slice %95 {offsets = [0, 0], sizes = [8, 32], strides = [1, 1]} : vector<8x96xf32> to vector<8x32xf32>
    %99 = vector.extract_strided_slice %95 {offsets = [0, 32], sizes = [8, 32], strides = [1, 1]} : vector<8x96xf32> to vector<8x32xf32>
    %100 = vector.extract_strided_slice %95 {offsets = [0, 64], sizes = [8, 32], strides = [1, 1]} : vector<8x96xf32> to vector<8x32xf32>
    %101 = arith.mulf %99, %84 : vector<8x32xf32>
    %102 = arith.mulf %98, %97 : vector<8x32xf32>
    %103 = arith.addf %101, %102 : vector<8x32xf32>
    %104 = math.tanh %103 : vector<8x32xf32>
    %105 = arith.mulf %100, %104 : vector<8x32xf32>
    %106 = vector.extract_strided_slice %46 {offsets = [24, 0], sizes = [8, 128], strides = [1, 1]} : vector<56x128xf32> to vector<8x128xf32>
    %cst_20 = arith.constant dense<0.000000e+00> : vector<8x128xf32>
    %107 = tpu.matmul %105, %42, %cst_20 {dimension_numbers = #tpu.dot_dimension_numbers<[1], [0], [0], [1], [0, 0, 1, 1], [], []>, precision = #tpu.contract_precision<fp32>} : vector<8x32xf32>, vector<32x128xf32>, vector<8x128xf32> -> vector<8x128xf32>
    %108 = arith.addf %106, %107 : vector<8x128xf32>
    %109 = vector.extract_strided_slice %108 {offsets = [0, 0], sizes = [8, 96], strides = [1, 1]} : vector<8x128xf32> to vector<8x96xf32>
    %110 = arith.negf %109 : vector<8x96xf32>
    %111 = math.exp %110 : vector<8x96xf32>
    %cst_21 = arith.constant 1.000000e+00 : f32
    %112 = vector.broadcast %cst_21 : f32 to vector<8x96xf32>
    %113 = arith.addf %112, %111 : vector<8x96xf32>
    %114 = arith.divf %112, %113 : vector<8x96xf32>
    %115 = vector.extract_strided_slice %108 {offsets = [0, 96], sizes = [8, 32], strides = [1, 1]} : vector<8x128xf32> to vector<8x32xf32>
    %116 = math.tanh %115 : vector<8x32xf32>
    %117 = vector.extract_strided_slice %114 {offsets = [0, 0], sizes = [8, 32], strides = [1, 1]} : vector<8x96xf32> to vector<8x32xf32>
    %118 = vector.extract_strided_slice %114 {offsets = [0, 32], sizes = [8, 32], strides = [1, 1]} : vector<8x96xf32> to vector<8x32xf32>
    %119 = vector.extract_strided_slice %114 {offsets = [0, 64], sizes = [8, 32], strides = [1, 1]} : vector<8x96xf32> to vector<8x32xf32>
    %120 = arith.mulf %118, %103 : vector<8x32xf32>
    %121 = arith.mulf %117, %116 : vector<8x32xf32>
    %122 = arith.addf %120, %121 : vector<8x32xf32>
    %123 = math.tanh %122 : vector<8x32xf32>
    %124 = arith.mulf %119, %123 : vector<8x32xf32>
    %125 = vector.extract_strided_slice %46 {offsets = [32, 0], sizes = [8, 128], strides = [1, 1]} : vector<56x128xf32> to vector<8x128xf32>
    %cst_22 = arith.constant dense<0.000000e+00> : vector<8x128xf32>
    %126 = tpu.matmul %124, %42, %cst_22 {dimension_numbers = #tpu.dot_dimension_numbers<[1], [0], [0], [1], [0, 0, 1, 1], [], []>, precision = #tpu.contract_precision<fp32>} : vector<8x32xf32>, vector<32x128xf32>, vector<8x128xf32> -> vector<8x128xf32>
    %127 = arith.addf %125, %126 : vector<8x128xf32>
    %128 = vector.extract_strided_slice %127 {offsets = [0, 0], sizes = [8, 96], strides = [1, 1]} : vector<8x128xf32> to vector<8x96xf32>
    %129 = arith.negf %128 : vector<8x96xf32>
    %130 = math.exp %129 : vector<8x96xf32>
    %cst_23 = arith.constant 1.000000e+00 : f32
    %131 = vector.broadcast %cst_23 : f32 to vector<8x96xf32>
    %132 = arith.addf %131, %130 : vector<8x96xf32>
    %133 = arith.divf %131, %132 : vector<8x96xf32>
    %134 = vector.extract_strided_slice %127 {offsets = [0, 96], sizes = [8, 32], strides = [1, 1]} : vector<8x128xf32> to vector<8x32xf32>
    %135 = math.tanh %134 : vector<8x32xf32>
    %136 = vector.extract_strided_slice %133 {offsets = [0, 0], sizes = [8, 32], strides = [1, 1]} : vector<8x96xf32> to vector<8x32xf32>
    %137 = vector.extract_strided_slice %133 {offsets = [0, 32], sizes = [8, 32], strides = [1, 1]} : vector<8x96xf32> to vector<8x32xf32>
    %138 = vector.extract_strided_slice %133 {offsets = [0, 64], sizes = [8, 32], strides = [1, 1]} : vector<8x96xf32> to vector<8x32xf32>
    %139 = arith.mulf %137, %122 : vector<8x32xf32>
    %140 = arith.mulf %136, %135 : vector<8x32xf32>
    %141 = arith.addf %139, %140 : vector<8x32xf32>
    %142 = math.tanh %141 : vector<8x32xf32>
    %143 = arith.mulf %138, %142 : vector<8x32xf32>
    %144 = vector.extract_strided_slice %46 {offsets = [40, 0], sizes = [8, 128], strides = [1, 1]} : vector<56x128xf32> to vector<8x128xf32>
    %cst_24 = arith.constant dense<0.000000e+00> : vector<8x128xf32>
    %145 = tpu.matmul %143, %42, %cst_24 {dimension_numbers = #tpu.dot_dimension_numbers<[1], [0], [0], [1], [0, 0, 1, 1], [], []>, precision = #tpu.contract_precision<fp32>} : vector<8x32xf32>, vector<32x128xf32>, vector<8x128xf32> -> vector<8x128xf32>
    %146 = arith.addf %144, %145 : vector<8x128xf32>
    %147 = vector.extract_strided_slice %146 {offsets = [0, 0], sizes = [8, 96], strides = [1, 1]} : vector<8x128xf32> to vector<8x96xf32>
    %148 = arith.negf %147 : vector<8x96xf32>
    %149 = math.exp %148 : vector<8x96xf32>
    %cst_25 = arith.constant 1.000000e+00 : f32
    %150 = vector.broadcast %cst_25 : f32 to vector<8x96xf32>
    %151 = arith.addf %150, %149 : vector<8x96xf32>
    %152 = arith.divf %150, %151 : vector<8x96xf32>
    %153 = vector.extract_strided_slice %146 {offsets = [0, 96], sizes = [8, 32], strides = [1, 1]} : vector<8x128xf32> to vector<8x32xf32>
    %154 = math.tanh %153 : vector<8x32xf32>
    %155 = vector.extract_strided_slice %152 {offsets = [0, 0], sizes = [8, 32], strides = [1, 1]} : vector<8x96xf32> to vector<8x32xf32>
    %156 = vector.extract_strided_slice %152 {offsets = [0, 32], sizes = [8, 32], strides = [1, 1]} : vector<8x96xf32> to vector<8x32xf32>
    %157 = vector.extract_strided_slice %152 {offsets = [0, 64], sizes = [8, 32], strides = [1, 1]} : vector<8x96xf32> to vector<8x32xf32>
    %158 = arith.mulf %156, %141 : vector<8x32xf32>
    %159 = arith.mulf %155, %154 : vector<8x32xf32>
    %160 = arith.addf %158, %159 : vector<8x32xf32>
    %161 = math.tanh %160 : vector<8x32xf32>
    %162 = arith.mulf %157, %161 : vector<8x32xf32>
    %163 = vector.extract_strided_slice %46 {offsets = [48, 0], sizes = [8, 128], strides = [1, 1]} : vector<56x128xf32> to vector<8x128xf32>
    %cst_26 = arith.constant dense<0.000000e+00> : vector<8x128xf32>
    %164 = tpu.matmul %162, %42, %cst_26 {dimension_numbers = #tpu.dot_dimension_numbers<[1], [0], [0], [1], [0, 0, 1, 1], [], []>, precision = #tpu.contract_precision<fp32>} : vector<8x32xf32>, vector<32x128xf32>, vector<8x128xf32> -> vector<8x128xf32>
    %165 = arith.addf %163, %164 : vector<8x128xf32>
    %166 = vector.extract_strided_slice %165 {offsets = [0, 0], sizes = [8, 96], strides = [1, 1]} : vector<8x128xf32> to vector<8x96xf32>
    %167 = arith.negf %166 : vector<8x96xf32>
    %168 = math.exp %167 : vector<8x96xf32>
    %cst_27 = arith.constant 1.000000e+00 : f32
    %169 = vector.broadcast %cst_27 : f32 to vector<8x96xf32>
    %170 = arith.addf %169, %168 : vector<8x96xf32>
    %171 = arith.divf %169, %170 : vector<8x96xf32>
    %172 = vector.extract_strided_slice %165 {offsets = [0, 96], sizes = [8, 32], strides = [1, 1]} : vector<8x128xf32> to vector<8x32xf32>
    %173 = math.tanh %172 : vector<8x32xf32>
    %174 = vector.extract_strided_slice %171 {offsets = [0, 0], sizes = [8, 32], strides = [1, 1]} : vector<8x96xf32> to vector<8x32xf32>
    %175 = vector.extract_strided_slice %171 {offsets = [0, 32], sizes = [8, 32], strides = [1, 1]} : vector<8x96xf32> to vector<8x32xf32>
    %176 = vector.extract_strided_slice %171 {offsets = [0, 64], sizes = [8, 32], strides = [1, 1]} : vector<8x96xf32> to vector<8x32xf32>
    %177 = arith.mulf %175, %160 : vector<8x32xf32>
    %178 = arith.mulf %174, %173 : vector<8x32xf32>
    %179 = arith.addf %177, %178 : vector<8x32xf32>
    %180 = math.tanh %179 : vector<8x32xf32>
    %181 = arith.mulf %176, %180 : vector<8x32xf32>
    %182 = tpu.concatenate %67, %86, %105, %124, %143, %162, %181 in 0 : vector<8x32xf32>, vector<8x32xf32>, vector<8x32xf32>, vector<8x32xf32>, vector<8x32xf32>, vector<8x32xf32>, vector<8x32xf32> -> vector<56x32xf32>
    %c0_28 = arith.constant 0 : index
    %c0_29 = arith.constant 0 : index
    %183 = vector.load %arg4[%c0_28, %c0_29] : memref<65x128xf32, #tpu.memory_space<vmem>>, vector<65x128xf32>
    %184 = vector.extract_strided_slice %183 {offsets = [0, 0], sizes = [32, 128], strides = [1, 1]} : vector<65x128xf32> to vector<32x128xf32>
    %185 = vector.extract_strided_slice %183 {offsets = [32, 0], sizes = [32, 128], strides = [1, 1]} : vector<65x128xf32> to vector<32x128xf32>
    %186 = vector.extract_strided_slice %183 {offsets = [64, 0], sizes = [1, 128], strides = [1, 1]} : vector<65x128xf32> to vector<1x128xf32>
    %cst_30 = arith.constant dense<0.000000e+00> : vector<56x128xf32>
    %187 = tpu.matmul %182, %184, %cst_30 {dimension_numbers = #tpu.dot_dimension_numbers<[1], [0], [0], [1], [0, 0, 1, 1], [], []>, precision = #tpu.contract_precision<fp32>} : vector<56x32xf32>, vector<32x128xf32>, vector<56x128xf32> -> vector<56x128xf32>
    %188 = vector.broadcast %186 : vector<1x128xf32> to vector<56x128xf32>
    %189 = arith.addf %187, %188 : vector<56x128xf32>
    %cst_31 = arith.constant 0.000000e+00 : f32
    %190 = vector.broadcast %cst_31 : f32 to vector<8x32xf32>
    %cst_32 = arith.constant 0.000000e+00 : f32
    %191 = vector.broadcast %cst_32 : f32 to vector<8x32xf32>
    %192 = vector.extract_strided_slice %189 {offsets = [0, 0], sizes = [8, 128], strides = [1, 1]} : vector<56x128xf32> to vector<8x128xf32>
    %cst_33 = arith.constant dense<0.000000e+00> : vector<8x128xf32>
    %193 = tpu.matmul %190, %185, %cst_33 {dimension_numbers = #tpu.dot_dimension_numbers<[1], [0], [0], [1], [0, 0, 1, 1], [], []>, precision = #tpu.contract_precision<fp32>} : vector<8x32xf32>, vector<32x128xf32>, vector<8x128xf32> -> vector<8x128xf32>
    %194 = arith.addf %192, %193 : vector<8x128xf32>
    %195 = vector.extract_strided_slice %194 {offsets = [0, 0], sizes = [8, 96], strides = [1, 1]} : vector<8x128xf32> to vector<8x96xf32>
    %196 = arith.negf %195 : vector<8x96xf32>
    %197 = math.exp %196 : vector<8x96xf32>
    %cst_34 = arith.constant 1.000000e+00 : f32
    %198 = vector.broadcast %cst_34 : f32 to vector<8x96xf32>
    %199 = arith.addf %198, %197 : vector<8x96xf32>
    %200 = arith.divf %198, %199 : vector<8x96xf32>
    %201 = vector.extract_strided_slice %194 {offsets = [0, 96], sizes = [8, 32], strides = [1, 1]} : vector<8x128xf32> to vector<8x32xf32>
    %202 = math.tanh %201 : vector<8x32xf32>
    %203 = vector.extract_strided_slice %200 {offsets = [0, 0], sizes = [8, 32], strides = [1, 1]} : vector<8x96xf32> to vector<8x32xf32>
    %204 = vector.extract_strided_slice %200 {offsets = [0, 32], sizes = [8, 32], strides = [1, 1]} : vector<8x96xf32> to vector<8x32xf32>
    %205 = vector.extract_strided_slice %200 {offsets = [0, 64], sizes = [8, 32], strides = [1, 1]} : vector<8x96xf32> to vector<8x32xf32>
    %206 = arith.mulf %204, %191 : vector<8x32xf32>
    %207 = arith.mulf %203, %202 : vector<8x32xf32>
    %208 = arith.addf %206, %207 : vector<8x32xf32>
    %209 = math.tanh %208 : vector<8x32xf32>
    %210 = arith.mulf %205, %209 : vector<8x32xf32>
    %211 = vector.extract_strided_slice %189 {offsets = [8, 0], sizes = [8, 128], strides = [1, 1]} : vector<56x128xf32> to vector<8x128xf32>
    %cst_35 = arith.constant dense<0.000000e+00> : vector<8x128xf32>
    %212 = tpu.matmul %210, %185, %cst_35 {dimension_numbers = #tpu.dot_dimension_numbers<[1], [0], [0], [1], [0, 0, 1, 1], [], []>, precision = #tpu.contract_precision<fp32>} : vector<8x32xf32>, vector<32x128xf32>, vector<8x128xf32> -> vector<8x128xf32>
    %213 = arith.addf %211, %212 : vector<8x128xf32>
    %214 = vector.extract_strided_slice %213 {offsets = [0, 0], sizes = [8, 96], strides = [1, 1]} : vector<8x128xf32> to vector<8x96xf32>
    %215 = arith.negf %214 : vector<8x96xf32>
    %216 = math.exp %215 : vector<8x96xf32>
    %cst_36 = arith.constant 1.000000e+00 : f32
    %217 = vector.broadcast %cst_36 : f32 to vector<8x96xf32>
    %218 = arith.addf %217, %216 : vector<8x96xf32>
    %219 = arith.divf %217, %218 : vector<8x96xf32>
    %220 = vector.extract_strided_slice %213 {offsets = [0, 96], sizes = [8, 32], strides = [1, 1]} : vector<8x128xf32> to vector<8x32xf32>
    %221 = math.tanh %220 : vector<8x32xf32>
    %222 = vector.extract_strided_slice %219 {offsets = [0, 0], sizes = [8, 32], strides = [1, 1]} : vector<8x96xf32> to vector<8x32xf32>
    %223 = vector.extract_strided_slice %219 {offsets = [0, 32], sizes = [8, 32], strides = [1, 1]} : vector<8x96xf32> to vector<8x32xf32>
    %224 = vector.extract_strided_slice %219 {offsets = [0, 64], sizes = [8, 32], strides = [1, 1]} : vector<8x96xf32> to vector<8x32xf32>
    %225 = arith.mulf %223, %208 : vector<8x32xf32>
    %226 = arith.mulf %222, %221 : vector<8x32xf32>
    %227 = arith.addf %225, %226 : vector<8x32xf32>
    %228 = math.tanh %227 : vector<8x32xf32>
    %229 = arith.mulf %224, %228 : vector<8x32xf32>
    %230 = vector.extract_strided_slice %189 {offsets = [16, 0], sizes = [8, 128], strides = [1, 1]} : vector<56x128xf32> to vector<8x128xf32>
    %cst_37 = arith.constant dense<0.000000e+00> : vector<8x128xf32>
    %231 = tpu.matmul %229, %185, %cst_37 {dimension_numbers = #tpu.dot_dimension_numbers<[1], [0], [0], [1], [0, 0, 1, 1], [], []>, precision = #tpu.contract_precision<fp32>} : vector<8x32xf32>, vector<32x128xf32>, vector<8x128xf32> -> vector<8x128xf32>
    %232 = arith.addf %230, %231 : vector<8x128xf32>
    %233 = vector.extract_strided_slice %232 {offsets = [0, 0], sizes = [8, 96], strides = [1, 1]} : vector<8x128xf32> to vector<8x96xf32>
    %234 = arith.negf %233 : vector<8x96xf32>
    %235 = math.exp %234 : vector<8x96xf32>
    %cst_38 = arith.constant 1.000000e+00 : f32
    %236 = vector.broadcast %cst_38 : f32 to vector<8x96xf32>
    %237 = arith.addf %236, %235 : vector<8x96xf32>
    %238 = arith.divf %236, %237 : vector<8x96xf32>
    %239 = vector.extract_strided_slice %232 {offsets = [0, 96], sizes = [8, 32], strides = [1, 1]} : vector<8x128xf32> to vector<8x32xf32>
    %240 = math.tanh %239 : vector<8x32xf32>
    %241 = vector.extract_strided_slice %238 {offsets = [0, 0], sizes = [8, 32], strides = [1, 1]} : vector<8x96xf32> to vector<8x32xf32>
    %242 = vector.extract_strided_slice %238 {offsets = [0, 32], sizes = [8, 32], strides = [1, 1]} : vector<8x96xf32> to vector<8x32xf32>
    %243 = vector.extract_strided_slice %238 {offsets = [0, 64], sizes = [8, 32], strides = [1, 1]} : vector<8x96xf32> to vector<8x32xf32>
    %244 = arith.mulf %242, %227 : vector<8x32xf32>
    %245 = arith.mulf %241, %240 : vector<8x32xf32>
    %246 = arith.addf %244, %245 : vector<8x32xf32>
    %247 = math.tanh %246 : vector<8x32xf32>
    %248 = arith.mulf %243, %247 : vector<8x32xf32>
    %249 = vector.extract_strided_slice %189 {offsets = [24, 0], sizes = [8, 128], strides = [1, 1]} : vector<56x128xf32> to vector<8x128xf32>
    %cst_39 = arith.constant dense<0.000000e+00> : vector<8x128xf32>
    %250 = tpu.matmul %248, %185, %cst_39 {dimension_numbers = #tpu.dot_dimension_numbers<[1], [0], [0], [1], [0, 0, 1, 1], [], []>, precision = #tpu.contract_precision<fp32>} : vector<8x32xf32>, vector<32x128xf32>, vector<8x128xf32> -> vector<8x128xf32>
    %251 = arith.addf %249, %250 : vector<8x128xf32>
    %252 = vector.extract_strided_slice %251 {offsets = [0, 0], sizes = [8, 96], strides = [1, 1]} : vector<8x128xf32> to vector<8x96xf32>
    %253 = arith.negf %252 : vector<8x96xf32>
    %254 = math.exp %253 : vector<8x96xf32>
    %cst_40 = arith.constant 1.000000e+00 : f32
    %255 = vector.broadcast %cst_40 : f32 to vector<8x96xf32>
    %256 = arith.addf %255, %254 : vector<8x96xf32>
    %257 = arith.divf %255, %256 : vector<8x96xf32>
    %258 = vector.extract_strided_slice %251 {offsets = [0, 96], sizes = [8, 32], strides = [1, 1]} : vector<8x128xf32> to vector<8x32xf32>
    %259 = math.tanh %258 : vector<8x32xf32>
    %260 = vector.extract_strided_slice %257 {offsets = [0, 0], sizes = [8, 32], strides = [1, 1]} : vector<8x96xf32> to vector<8x32xf32>
    %261 = vector.extract_strided_slice %257 {offsets = [0, 32], sizes = [8, 32], strides = [1, 1]} : vector<8x96xf32> to vector<8x32xf32>
    %262 = vector.extract_strided_slice %257 {offsets = [0, 64], sizes = [8, 32], strides = [1, 1]} : vector<8x96xf32> to vector<8x32xf32>
    %263 = arith.mulf %261, %246 : vector<8x32xf32>
    %264 = arith.mulf %260, %259 : vector<8x32xf32>
    %265 = arith.addf %263, %264 : vector<8x32xf32>
    %266 = math.tanh %265 : vector<8x32xf32>
    %267 = arith.mulf %262, %266 : vector<8x32xf32>
    %268 = vector.extract_strided_slice %189 {offsets = [32, 0], sizes = [8, 128], strides = [1, 1]} : vector<56x128xf32> to vector<8x128xf32>
    %cst_41 = arith.constant dense<0.000000e+00> : vector<8x128xf32>
    %269 = tpu.matmul %267, %185, %cst_41 {dimension_numbers = #tpu.dot_dimension_numbers<[1], [0], [0], [1], [0, 0, 1, 1], [], []>, precision = #tpu.contract_precision<fp32>} : vector<8x32xf32>, vector<32x128xf32>, vector<8x128xf32> -> vector<8x128xf32>
    %270 = arith.addf %268, %269 : vector<8x128xf32>
    %271 = vector.extract_strided_slice %270 {offsets = [0, 0], sizes = [8, 96], strides = [1, 1]} : vector<8x128xf32> to vector<8x96xf32>
    %272 = arith.negf %271 : vector<8x96xf32>
    %273 = math.exp %272 : vector<8x96xf32>
    %cst_42 = arith.constant 1.000000e+00 : f32
    %274 = vector.broadcast %cst_42 : f32 to vector<8x96xf32>
    %275 = arith.addf %274, %273 : vector<8x96xf32>
    %276 = arith.divf %274, %275 : vector<8x96xf32>
    %277 = vector.extract_strided_slice %270 {offsets = [0, 96], sizes = [8, 32], strides = [1, 1]} : vector<8x128xf32> to vector<8x32xf32>
    %278 = math.tanh %277 : vector<8x32xf32>
    %279 = vector.extract_strided_slice %276 {offsets = [0, 0], sizes = [8, 32], strides = [1, 1]} : vector<8x96xf32> to vector<8x32xf32>
    %280 = vector.extract_strided_slice %276 {offsets = [0, 32], sizes = [8, 32], strides = [1, 1]} : vector<8x96xf32> to vector<8x32xf32>
    %281 = vector.extract_strided_slice %276 {offsets = [0, 64], sizes = [8, 32], strides = [1, 1]} : vector<8x96xf32> to vector<8x32xf32>
    %282 = arith.mulf %280, %265 : vector<8x32xf32>
    %283 = arith.mulf %279, %278 : vector<8x32xf32>
    %284 = arith.addf %282, %283 : vector<8x32xf32>
    %285 = math.tanh %284 : vector<8x32xf32>
    %286 = arith.mulf %281, %285 : vector<8x32xf32>
    %287 = vector.extract_strided_slice %189 {offsets = [40, 0], sizes = [8, 128], strides = [1, 1]} : vector<56x128xf32> to vector<8x128xf32>
    %cst_43 = arith.constant dense<0.000000e+00> : vector<8x128xf32>
    %288 = tpu.matmul %286, %185, %cst_43 {dimension_numbers = #tpu.dot_dimension_numbers<[1], [0], [0], [1], [0, 0, 1, 1], [], []>, precision = #tpu.contract_precision<fp32>} : vector<8x32xf32>, vector<32x128xf32>, vector<8x128xf32> -> vector<8x128xf32>
    %289 = arith.addf %287, %288 : vector<8x128xf32>
    %290 = vector.extract_strided_slice %289 {offsets = [0, 0], sizes = [8, 96], strides = [1, 1]} : vector<8x128xf32> to vector<8x96xf32>
    %291 = arith.negf %290 : vector<8x96xf32>
    %292 = math.exp %291 : vector<8x96xf32>
    %cst_44 = arith.constant 1.000000e+00 : f32
    %293 = vector.broadcast %cst_44 : f32 to vector<8x96xf32>
    %294 = arith.addf %293, %292 : vector<8x96xf32>
    %295 = arith.divf %293, %294 : vector<8x96xf32>
    %296 = vector.extract_strided_slice %289 {offsets = [0, 96], sizes = [8, 32], strides = [1, 1]} : vector<8x128xf32> to vector<8x32xf32>
    %297 = math.tanh %296 : vector<8x32xf32>
    %298 = vector.extract_strided_slice %295 {offsets = [0, 0], sizes = [8, 32], strides = [1, 1]} : vector<8x96xf32> to vector<8x32xf32>
    %299 = vector.extract_strided_slice %295 {offsets = [0, 32], sizes = [8, 32], strides = [1, 1]} : vector<8x96xf32> to vector<8x32xf32>
    %300 = vector.extract_strided_slice %295 {offsets = [0, 64], sizes = [8, 32], strides = [1, 1]} : vector<8x96xf32> to vector<8x32xf32>
    %301 = arith.mulf %299, %284 : vector<8x32xf32>
    %302 = arith.mulf %298, %297 : vector<8x32xf32>
    %303 = arith.addf %301, %302 : vector<8x32xf32>
    %304 = math.tanh %303 : vector<8x32xf32>
    %305 = arith.mulf %300, %304 : vector<8x32xf32>
    %306 = vector.extract_strided_slice %189 {offsets = [48, 0], sizes = [8, 128], strides = [1, 1]} : vector<56x128xf32> to vector<8x128xf32>
    %cst_45 = arith.constant dense<0.000000e+00> : vector<8x128xf32>
    %307 = tpu.matmul %305, %185, %cst_45 {dimension_numbers = #tpu.dot_dimension_numbers<[1], [0], [0], [1], [0, 0, 1, 1], [], []>, precision = #tpu.contract_precision<fp32>} : vector<8x32xf32>, vector<32x128xf32>, vector<8x128xf32> -> vector<8x128xf32>
    %308 = arith.addf %306, %307 : vector<8x128xf32>
    %309 = vector.extract_strided_slice %308 {offsets = [0, 0], sizes = [8, 96], strides = [1, 1]} : vector<8x128xf32> to vector<8x96xf32>
    %310 = arith.negf %309 : vector<8x96xf32>
    %311 = math.exp %310 : vector<8x96xf32>
    %cst_46 = arith.constant 1.000000e+00 : f32
    %312 = vector.broadcast %cst_46 : f32 to vector<8x96xf32>
    %313 = arith.addf %312, %311 : vector<8x96xf32>
    %314 = arith.divf %312, %313 : vector<8x96xf32>
    %315 = vector.extract_strided_slice %308 {offsets = [0, 96], sizes = [8, 32], strides = [1, 1]} : vector<8x128xf32> to vector<8x32xf32>
    %316 = math.tanh %315 : vector<8x32xf32>
    %317 = vector.extract_strided_slice %314 {offsets = [0, 0], sizes = [8, 32], strides = [1, 1]} : vector<8x96xf32> to vector<8x32xf32>
    %318 = vector.extract_strided_slice %314 {offsets = [0, 32], sizes = [8, 32], strides = [1, 1]} : vector<8x96xf32> to vector<8x32xf32>
    %319 = vector.extract_strided_slice %314 {offsets = [0, 64], sizes = [8, 32], strides = [1, 1]} : vector<8x96xf32> to vector<8x32xf32>
    %320 = arith.mulf %318, %303 : vector<8x32xf32>
    %321 = arith.mulf %317, %316 : vector<8x32xf32>
    %322 = arith.addf %320, %321 : vector<8x32xf32>
    %323 = math.tanh %322 : vector<8x32xf32>
    %324 = arith.mulf %319, %323 : vector<8x32xf32>
    %c0_47 = arith.constant 0 : index
    %c0_48 = arith.constant 0 : index
    %325 = vector.load %arg5[%c0_47, %c0_48] : memref<1x32xf32, #tpu.memory_space<vmem>>, vector<1x32xf32>
    %c0_49 = arith.constant 0 : index
    %c0_50 = arith.constant 0 : index
    %326 = vector.load %arg6[%c0_49, %c0_50] : memref<1x1xf32, #tpu.memory_space<vmem>>, vector<1x1xf32>
    %327 = vector.broadcast %325 : vector<1x32xf32> to vector<8x32xf32>
    %328 = arith.mulf %324, %327 : vector<8x32xf32>
    %cst_51 = arith.constant dense<0.000000e+00> : vector<8xf32>
    %329 = vector.multi_reduction <add>, %328, %cst_51 [1] : vector<8x32xf32> to vector<8xf32>
    %330 = vector.shape_cast %329 : vector<8xf32> to vector<8x1xf32>
    %331 = vector.broadcast %326 : vector<1x1xf32> to vector<8x1xf32>
    %332 = arith.addf %330, %331 : vector<8x1xf32>
    %c0_52 = arith.constant 0 : index
    %c0_53 = arith.constant 0 : index
    %333 = vector.load %arg7[%c0_52, %c0_53] : memref<8x1xf32, #tpu.memory_space<vmem>>, vector<8x1xf32>
    tpu.vector_store %arg7[%c0_52, %c0_53], %332 {strides = array<i32>} : memref<8x1xf32, #tpu.memory_space<vmem>>, vector<8x1xf32>,
    return
  }
  func.func @transform_0(%arg0: i32) -> (i32, i32, i32) {
    %c0_i32 = arith.constant 0 : i32
    %c0_i32_0 = arith.constant 0 : i32
    %c0_i32_1 = arith.constant 0 : i32
    %c0_i32_2 = arith.constant 0 : i32
    return %c0_i32, %c0_i32_0, %c0_i32_1 : i32, i32, i32
  }
  func.func @transform_1(%arg0: i32) -> (i32, i32, i32) {
    %c0_i32 = arith.constant 0 : i32
    %c0_i32_0 = arith.constant 0 : i32
    %c0_i32_1 = arith.constant 0 : i32
    %c0_i32_2 = arith.constant 0 : i32
    return %c0_i32, %c0_i32_0, %c0_i32_1 : i32, i32, i32
  }
  func.func @transform_2(%arg0: i32) -> (i32, i32) {
    %c0_i32 = arith.constant 0 : i32
    %c0_i32_0 = arith.constant 0 : i32
    %c0_i32_1 = arith.constant 0 : i32
    return %c0_i32, %c0_i32_0 : i32, i32
  }
  func.func @transform_3(%arg0: i32) -> (i32, i32) {
    %c0_i32 = arith.constant 0 : i32
    %c0_i32_0 = arith.constant 0 : i32
    %c0_i32_1 = arith.constant 0 : i32
    return %c0_i32, %c0_i32_0 : i32, i32
  }
  func.func @transform_4(%arg0: i32) -> (i32, i32) {
    %c0_i32 = arith.constant 0 : i32
    %c0_i32_0 = arith.constant 0 : i32
    %c0_i32_1 = arith.constant 0 : i32
    return %c0_i32, %c0_i32_0 : i32, i32
  }
  func.func @transform_5(%arg0: i32) -> (i32, i32) {
    %c0_i32 = arith.constant 0 : i32
    %c0_i32_0 = arith.constant 0 : i32
    %c0_i32_1 = arith.constant 0 : i32
    return %c0_i32, %c0_i32_0 : i32, i32
  }
  func.func @transform_6(%arg0: i32) -> (i32, i32) {
    %c0_i32 = arith.constant 0 : i32
    %c0_i32_0 = arith.constant 0 : i32
    %c0_i32_1 = arith.constant 0 : i32
    return %c0_i32, %c0_i32_0 : i32, i32
  }
}

</mosaic_0001>

<bundles_post_ra>
// kernel: tpu_custom_call.1
= control target key start
LH: loop header
LB: loop body
LE: loop exit
PB: predicated region body
PF: predicated region fallthrough
CT: control target
= control target key end

     0   :  { %vm35_vm0 = vcmask 129024   ;;  %v11780_v56 = vmov 0   ;;  %vm11782_vm1 = vmmov 0   ;;  %vm129_vm2 = vcmask 1041409   ;;  %s11784_s29 = smov 32   ;;  %s13244_s0 = inlined_call_operand.vmem [shape: f32[8,7,16], index: 0, kind: input, shape index: {}]   ;;  %s13245_s1 = inlined_call_operand.vmem [shape: f32[2,7,1], index: 1, kind: input, shape index: {}]   ;;  %s13246_s2 = inlined_call_operand.vmem [shape: f32[49,128], index: 2, kind: input, shape index: {}]   ;;  %s13247_s3 = inlined_call_operand.vmem [shape: f32[65,128], index: 3, kind: input, shape index: {}]   ;;  %s13248_s4 = inlined_call_operand.vmem [shape: f32[1,32], index: 4, kind: input, shape index: {}]   ;;  %s13249_s5 = inlined_call_operand.<no memory space> [shape: f32[1,1], index: 5, kind: input, shape index: {}]   ;;  %s13250_s6 = inlined_call_operand.vmem [shape: f32[8,1], index: 6, kind: output, shape index: {}]  }
   0x1   :  { %v11824_v0 = vld [vmem:[%s13244_s0] sm:$0x7f]  ;;  %v11829_v1 = vld [vmem:[%s13244_s0 + $0x8] sm:$0x7f]  ;;  %v11834_v2 = vld [vmem:[%s13244_s0 + $0x10] sm:$0x7f]  ;;  %11664 = vset.pattern.permute.xlu1 %v11780_v56  ;;  %11665 = vset.pattern.permute.xlu0 %v11780_v56 }
   0x2   :  { %v11839_v3 = vld [vmem:[%s13244_s0 + $0x18] sm:$0x7f]  ;;  %v36_v4 = vsel %vm35_vm0, %v11824_v0, 0.0  ;;  %v37_v5 = vsel %vm35_vm0, %v11829_v1, 0.0  ;;  %v11848_v6 = vld [vmem:[%s13244_s0 + $0x20] sm:$0x7f] }
   0x3   :  { %v38_v7 = vadd.f32 %v37_v5, %v36_v4  ;;  %v39_v8 = vsel %vm35_vm0, %v11834_v2, 0.0  ;;  %v41_v9 = vsel %vm35_vm0, %v11839_v3, 0.0  ;;  %v11857_v10 = vld [vmem:[%s13244_s0 + $0x28] sm:$0x7f]  ;;  %v43_v12 = vsel %vm35_vm0, %v11848_v6, 0.0 }
   0x4   :  { %v11864_v13 = vld [vmem:[%s13244_s0 + $0x30] sm:$0x7f]  ;;  %v45_v15 = vsel %vm35_vm0, %v11857_v10, 0.0  ;;  %v11871_v16 = vld [vmem:[%s13244_s0 + $0x38] sm:$0x7f]  ;;  %vm132_vm3 = vcmask 1042434  }
   0x5   :  { %v40_v11 = vadd.f32 %v39_v8, %v38_v7  ;;  %v47_v18 = vsel %vm35_vm0, %v11864_v13, 0.0  ;;  %v49_v20 = vsel %vm35_vm0, %v11871_v16, 0.0  ;;  %v33_v60 = vld [vmem:[%s13245_s1] sm:$0x7f]  ;;  %v34_v63 = vld [vmem:[%s13245_s1 + $0x8] sm:$0x7f] }
   0x6   :  { %v11781_v7 = vmov 0.0|0.0   ;;  %v233_v8 = vld [vmem:[%s13246_s2] sm:$0xff]  ;;  %vm135_vm4 = vcmask 1043459   ;;  %vm138_vm5 = vcmask 1044484   ;;  %vm141_vm6 = vcmask 1045509   ;;  %s11785_s0 = smov 64  }
   0x7   :  { %v42_v14 = vadd.f32 %v41_v9, %v40_v11  ;;  %10778 = vmatprep.subr.bf16.mxu0 %v11781_v7  ;;  %v234_v9 = vld [vmem:[%s13246_s2 + $0x8] sm:$0xff]  ;;  %v11783_v11 = vmov 0.0   ;;  %11048 = vmatprep.subr.bf16.mxu1 %v11781_v7  ;;  %vm144_vm7 = vcmask 1046534   ;;  %vm147_vm8 = vcmask 1047559  }
   0x8   :  { %9534 = vmatprep.mubr.msk.f32.mxu0 %vm11782_vm1, %v11783_v11  ;;  %10150 = vmatprep.mubr.msk.f32.mxu1 %vm11782_vm1, %v11783_v11  ;;  %vm244_vm9 = vcmask 130048   ;;  %vm976_vm10 = vcmask 261120   ;;  %vm8966_vm11 = vcmask 7168  }
   0x9   :  { %v44_v17 = vadd.f32 %v43_v12, %v42_v14  ;;  %v260_v12 = vand.u32 4294901760, %v233_v8  ;;  %v263_v14 = vand.u32 4294901760, %v234_v9 }
   0xb   :  { %v46_v19 = vadd.f32 %v45_v15, %v44_v17  ;;  %v11911_v15 = vpack.c.bf16 %v263_v14, %v260_v12  ;;  %v11913_v17 = vsub.f32 %v233_v8, %v260_v12 }
   0xd   :  { %v48_v21 = vadd.f32 %v47_v18, %v46_v19  ;;  %v11915_v18 = vsub.f32 %v234_v9, %v263_v14  ;;  %10780 = vmatpush3.bf16.msra.mxu0 %v11911_v15  ;;  %v399_v19 = vand.u32 4294901760, %v11913_v17 }
   0xe   :  { %10781 = vmatprep.subr.bf16.mxu0 %v11781_v7 }
   0xf   :  { %v50_v22 = vadd.f32 %v49_v20, %v48_v21  ;;  %v406_v20 = vand.u32 4294901760, %v11915_v18  ;;  %v400_v21 = vsub.f32 %v11913_v17, %v399_v19 }
  0x11   :  { %51 = vadd.xlane.f32.xlu0 %v50_v22  ;;  %v407_v22 = vsub.f32 %v11915_v18, %v406_v20 }
  0x9e   :  { %v52_v23 = vpop.xlane.xlu0 %51 }
  0x9f   :  { %v54_v24 = vmul.f32 0.0078125, %v52_v23  ;;  %v401_v23 = vand.u32 4294901760, %v400_v21 }
  0xa1   :  { %v55_v25 = vsub.f32 %v11824_v0, %v54_v24  ;;  %v56_v26 = vsub.f32 %v11829_v1, %v54_v24  ;;  %v57_v27 = vsub.f32 %v11834_v2, %v54_v24  ;;  %v58_v28 = vsub.f32 %v11839_v3, %v54_v24 }
  0xa2   :  { %v59_v29 = vsub.f32 %v11848_v6, %v54_v24  ;;  %v60_v33 = vsub.f32 %v11857_v10, %v54_v24  ;;  %v61_v38 = vsub.f32 %v11864_v13, %v54_v24  ;;  %v62_v42 = vsub.f32 %v11871_v16, %v54_v24 }
  0xa3   :  { %v63_v30 = vmul.f32 %v55_v25, %v55_v25  ;;  %v64_v31 = vmul.f32 %v56_v26, %v56_v26  ;;  %v65_v32 = vmul.f32 %v57_v27, %v57_v27  ;;  %v66_v34 = vmul.f32 %v58_v28, %v58_v28 }
  0xa4   :  { %v67_v39 = vmul.f32 %v59_v29, %v59_v29  ;;  %v68_v43 = vmul.f32 %v60_v33, %v60_v33  ;;  %v69_v46 = vmul.f32 %v61_v38, %v61_v38  ;;  %v70_v49 = vmul.f32 %v62_v42, %v62_v42 }
  0xa5   :  { %v71_v35 = vsel %vm35_vm0, %v63_v30, 0.0  ;;  %v72_v36 = vsel %vm35_vm0, %v64_v31, 0.0  ;;  %v74_v40 = vsel %vm35_vm0, %v65_v32, 0.0  ;;  %v76_v44 = vsel %vm35_vm0, %v66_v34, 0.0 }
  0xa6   :  { %v73_v37 = vadd.f32 %v72_v36, %v71_v35  ;;  %v78_v47 = vsel %vm35_vm0, %v67_v39, 0.0  ;;  %v80_v50 = vsel %vm35_vm0, %v68_v43, 0.0  ;;  %v82_v52 = vsel %vm35_vm0, %v69_v46, 0.0 }
  0xa7   :  { %v84_v54 = vsel %vm35_vm0, %v70_v49, 0.0  ;;  %v10785_v26 = vpack.c.bf16 %v11915_v18, %v11913_v17  ;;  %v236_v17 = vld [vmem:[%s13246_s2 + $0x18] sm:$0xff] }
  0xa8   :  { %v75_v41 = vadd.f32 %v74_v40, %v73_v37 }
  0xaa   :  { %v77_v45 = vadd.f32 %v76_v44, %v75_v41 }
  0xac   :  { %v79_v48 = vadd.f32 %v78_v47, %v77_v45 }
  0xae   :  { %v81_v51 = vadd.f32 %v80_v50, %v79_v48 }
  0xb0   :  { %v83_v53 = vadd.f32 %v82_v52, %v81_v51 }
  0xb2   :  { %v85_v55 = vadd.f32 %v84_v54, %v83_v53 }
  0xb4   :  { %86 = vadd.xlane.f32.xlu0 %v85_v55 }
 0x141   :  { %v87_v57 = vpop.xlane.xlu0 %86 }
 0x142   :  { %v88_v58 = vmul.f32 0.0078125, %v87_v57 }
 0x144   :  { %v89_v59 = vadd.f32 1e-05, %v88_v58 }
 0x146   :  { %11666 = vrsqrt.f32 %v89_v59 }
 0x150   :  { %v11667_v61 = vpop.eup %11666 }
 0x151   :  { %v91_v62 = vmul.f32 %v11667_v61, %v33_v60 }
 0x153   :  { %96 = vperm.xlu1 %11664, %v91_v62   ;;  %v92_v4 = vmul.f32 %v91_v62, %v54_v24  ;;  %v408_v24 = vand.u32 4294901760, %v407_v22 }
 0x155   :  { %v93_v5 = vsub.f32 %v34_v63, %v92_v4  ;;  %v11927_v25 = vpack.c.bf16 %v408_v24, %v401_v23 }
 0x157   :  { %109 = vperm.xlu1 %11664, %v93_v5  }
 0x1d2   :  { %v97_v27 = vpop.permute.xlu1 %96 }
 0x1d3   :  { %v99_v28 = vmul.f32 %v97_v27, %v11824_v0  ;;  %v100_v29 = vmul.f32 %v97_v27, %v11829_v1  ;;  %v101_v30 = vmul.f32 %v97_v27, %v11834_v2  ;;  %v102_v31 = vmul.f32 %v97_v27, %v11839_v3 }
 0x1d4   :  { %v103_v32 = vmul.f32 %v97_v27, %v11848_v6  ;;  %v104_v33 = vmul.f32 %v97_v27, %v11857_v10  ;;  %v105_v34 = vmul.f32 %v97_v27, %v11864_v13  ;;  %v106_v35 = vmul.f32 %v97_v27, %v11871_v16 }
 0x1d6   :  { %v110_v36 = vpop.permute.xlu1 %109 }
 0x1d7   :  { %v11939_v37 = vadd.f32 %v110_v36, %v99_v28  ;;  %v11941_v0 = vadd.f32 %v110_v36, %v100_v29  ;;  %v11943_v1 = vadd.f32 %v110_v36, %v101_v30  ;;  %v11945_v2 = vadd.f32 %v110_v36, %v102_v31 }
 0x1d8   :  { %v11947_v3 = vadd.f32 %v110_v36, %v103_v32  ;;  %v11949_v6 = vadd.f32 %v110_v36, %v104_v33  ;;  %v11951_v10 = vadd.f32 %v110_v36, %v105_v34  ;;  %v11953_v13 = vadd.f32 %v110_v36, %v106_v35 }
 0x1d9   :  { %v128_v16 = vrot.slane %v11941_v0, 7  ;;  %v131_v38 = vrot.slane %v11943_v1, 6  ;;  %v134_v39 = vrot.slane %v11945_v2, 5  ;;  %v149_v40 = vrot.slane %v11939_v37, 1 }
 0x1da   :  { %v137_v41 = vrot.slane %v11947_v3, 4  ;;  %v140_v42 = vrot.slane %v11949_v6, 3  ;;  %v143_v43 = vrot.slane %v11951_v10, 2  ;;  %v146_v44 = vrot.slane %v11953_v13, 1 }
 0x1db   :  { %v130_v45 = vsel %vm129_vm2, %v128_v16, %v11939_v37  ;;  %v150_v46 = vsel %vm129_vm2, %v11941_v0, %v149_v40  ;;  %v151_v47 = vrot.slane %v11943_v1, 7  ;;  %v153_v48 = vrot.slane %v11945_v2, 6 }
 0x1dc   :  { %v133_v49 = vsel %vm132_vm3, %v131_v38, %v130_v45  ;;  %v155_v50 = vrot.slane %v11947_v3, 5  ;;  %v157_v51 = vrot.slane %v11949_v6, 4  ;;  %v159_v52 = vrot.slane %v11951_v10, 3 }
 0x1dd   :  { %v136_v53 = vsel %vm135_vm4, %v134_v39, %v133_v49  ;;  %v152_v54 = vsel %vm132_vm3, %v151_v47, %v150_v46  ;;  %v161_v55 = vrot.slane %v11953_v13, 2  ;;  %v163_v56 = vrot.slane %v11939_v37, 2 }
 0x1de   :  { %v139_v57 = vsel %vm138_vm5, %v137_v41, %v136_v53  ;;  %v154_v58 = vsel %vm135_vm4, %v153_v48, %v152_v54  ;;  %v164_v59 = vrot.slane %v11941_v0, 1  ;;  %v167_v60 = vrot.slane %v11945_v2, 7 }
 0x1df   :  { %v142_v61 = vsel %vm141_vm6, %v140_v42, %v139_v57  ;;  %v156_v62 = vsel %vm138_vm5, %v155_v50, %v154_v58  ;;  %v169_v63 = vrot.slane %v11947_v3, 6  ;;  %v171_v4 = vrot.slane %v11949_v6, 5 }
 0x1e0   :  { %v145_v5 = vsel %vm144_vm7, %v143_v43, %v142_v61  ;;  %v158_v8 = vsel %vm141_vm6, %v157_v51, %v156_v62  ;;  %v165_v9 = vsel %vm129_vm2, %v164_v59, %v163_v56  ;;  %v173_v12 = vrot.slane %v11951_v10, 4 }
 0x1e1   :  { %v148_v14 = vsel %vm147_vm8, %v146_v44, %v145_v5  ;;  %v160_v21 = vsel %vm144_vm7, %v159_v52, %v158_v8  ;;  %v166_v22 = vsel %vm132_vm3, %v11943_v1, %v165_v9  ;;  %v175_v23 = vrot.slane %v11953_v13, 3 }
 0x1e2   :  { %v245_v24 = vsel %vm244_vm9, %v148_v14, 0  ;;  %v162_v27 = vsel %vm147_vm8, %v161_v55, %v160_v21  ;;  %v168_v28 = vsel %vm135_vm4, %v167_v60, %v166_v22  ;;  %v177_v29 = vrot.slane %v11939_v37, 3 }
 0x1e3   :  { %v11998_v30 = vand.u32 4294901760, %v245_v24  ;;  %v247_v31 = vsel %vm244_vm9, %v162_v27, 0  ;;  %v170_v32 = vsel %vm138_vm5, %v169_v63, %v168_v28  ;;  %v178_v33 = vrot.slane %v11941_v0, 2 }
 0x1e4   :  { %v12003_v34 = vand.u32 4294901760, %v247_v31  ;;  %v172_v35 = vsel %vm141_vm6, %v171_v4, %v170_v32  ;;  %v180_v36 = vrot.slane %v11943_v1, 1  ;;  %v183_v16 = vrot.slane %v11947_v3, 7 }
 0x1e5   :  { %v12009_v38 = vsub.f32 %v245_v24, %v11998_v30  ;;  %v174_v39 = vsel %vm144_vm7, %v173_v12, %v172_v35  ;;  %v179_v40 = vsel %vm129_vm2, %v178_v33, %v177_v29  ;;  %v185_v41 = vrot.slane %v11949_v6, 6 }
 0x1e6   :  { %v12015_v42 = vsub.f32 %v247_v31, %v12003_v34  ;;  %v176_v43 = vsel %vm147_vm8, %v175_v23, %v174_v39  ;;  %v181_v44 = vsel %vm132_vm3, %v180_v36, %v179_v40  ;;  %v187_v45 = vrot.slane %v11951_v10, 5 }
 0x1e7   :  { %v328_v46 = vand.u32 4294901760, %v12009_v38  ;;  %v249_v47 = vsel %vm244_vm9, %v176_v43, 0  ;;  %v182_v48 = vsel %vm135_vm4, %v11945_v2, %v181_v44  ;;  %v189_v49 = vrot.slane %v11953_v13, 4 }
 0x1e8   :  { %v338_v50 = vand.u32 4294901760, %v12015_v42  ;;  %v12026_v51 = vand.u32 4294901760, %v249_v47  ;;  %v184_v52 = vsel %vm138_vm5, %v183_v16, %v182_v48  ;;  %v191_v53 = vrot.slane %v11939_v37, 4 }
 0x1e9   :  { %v329_v54 = vsub.f32 %v12009_v38, %v328_v46  ;;  %v186_v55 = vsel %vm141_vm6, %v185_v41, %v184_v52  ;;  %v192_v56 = vrot.slane %v11941_v0, 3  ;;  %v194_v57 = vrot.slane %v11943_v1, 2 }
 0x1ea   :  { %v339_v58 = vsub.f32 %v12015_v42, %v338_v50  ;;  %v12040_v59 = vsub.f32 %v249_v47, %v12026_v51  ;;  %v188_v60 = vsel %vm144_vm7, %v187_v45, %v186_v55  ;;  %v196_v4 = vrot.slane %v11945_v2, 1 }
 0x1eb   :  { %v330_v61 = vand.u32 4294901760, %v329_v54  ;;  %v190_v62 = vsel %vm147_vm8, %v189_v49, %v188_v60  ;;  %v193_v63 = vsel %vm129_vm2, %v192_v56, %v191_v53  ;;  %v199_v12 = vrot.slane %v11949_v6, 7 }
 0x1ec   :  { %v348_v5 = vand.u32 4294901760, %v12040_v59  ;;  %v251_v8 = vsel %vm244_vm9, %v190_v62, 0  ;;  %v195_v9 = vsel %vm132_vm3, %v194_v57, %v193_v63  ;;  %v340_v14 = vand.u32 4294901760, %v339_v58 }
 0x1ed   :  { %9535 = vmatmul.mubr.f32.vlgmr.msra.gmra.mrb[0].mxu0 %v330_v61  ;;  %v12050_v21 = vand.u32 4294901760, %v251_v8  ;;  %v197_v22 = vsel %vm135_vm4, %v196_v4, %v195_v9  ;;  %v201_v23 = vrot.slane %v11951_v10, 6  ;;  %v205_v28 = vrot.slane %v11939_v37, 5 }
 0x1ee   :  { %10783 = vmatpush3.bf16.msra.mxu0 %v11927_v25  ;;  %9537 = vmatprep.mubr.msk.f32.mxu0 %vm11782_vm1, %v11783_v11  ;;  %v349_v24 = vsub.f32 %v12040_v59, %v348_v5  ;;  %v198_v27 = vsel %vm138_vm5, %v11947_v3, %v197_v22  ;;  %v206_v29 = vrot.slane %v11941_v0, 4  ;;  %v203_v25 = vrot.slane %v11953_v13, 5 }
 0x1ef   :  { %v12065_v31 = vsub.f32 %v251_v8, %v12050_v21  ;;  %v200_v32 = vsel %vm141_vm6, %v199_v12, %v198_v27  ;;  %v208_v33 = vrot.slane %v11943_v1, 3  ;;  %10784 = vmatprep.subr.bf16.mxu0 %v11781_v7  ;;  %v210_v39 = vrot.slane %v11945_v2, 2 }
 0x1f0   :  { %v350_v35 = vand.u32 4294901760, %v349_v24  ;;  %v202_v36 = vsel %vm144_vm7, %v201_v23, %v200_v32  ;;  %v207_v16 = vsel %vm129_vm2, %v206_v29, %v205_v28  ;;  %v212_v44 = vrot.slane %v11947_v3, 1 }
 0x1f1   :  { %9538 = vmatmul.mubr.f32.gmra.mrb[2].mxu0 %v340_v14  ;;  %v358_v40 = vand.u32 4294901760, %v12065_v31  ;;  %v204_v41 = vsel %vm147_vm8, %v203_v25, %v202_v36  ;;  %v209_v43 = vsel %vm132_vm3, %v208_v33, %v207_v16  ;;  %v215_v48 = vrot.slane %v11951_v10, 7 }
 0x1f2   :  { %9540 = vmatprep.mubr.msk.f32.mxu0 %vm11782_vm1, %v11783_v11  ;;  %v253_v45 = vsel %vm244_vm9, %v204_v41, 0  ;;  %v211_v47 = vsel %vm135_vm4, %v210_v39, %v209_v43  ;;  %v219_v49 = vrot.slane %v11939_v37, 6  ;;  %v220_v55 = vrot.slane %v11941_v0, 5 }
 0x1f3   :  { %v359_v52 = vsub.f32 %v12065_v31, %v358_v40  ;;  %v12087_v53 = vand.u32 4294901760, %v253_v45  ;;  %v213_v54 = vsel %vm138_vm5, %v212_v44, %v211_v47  ;;  %v217_v57 = vrot.slane %v11953_v13, 6 }
 0x1f4   :  { %v214_v56 = vsel %vm141_vm6, %v11949_v6, %v213_v54  ;;  %v222_v58 = vrot.slane %v11943_v1, 4  ;;  %v221_v61 = vsel %vm129_vm2, %v220_v55, %v219_v49  ;;  %v224_v62 = vrot.slane %v11945_v2, 3 }
 0x1f5   :  { %9541 = vmatmul.mubr.f32.gmra.mrb[4].mxu0 %v350_v35  ;;  %v12096_v37 = vsub.f32 %v253_v45, %v12087_v53  ;;  %v216_v60 = vsel %vm144_vm7, %v215_v48, %v214_v56  ;;  %v360_v0 = vand.u32 4294901760, %v359_v52  ;;  %v226_v1 = vrot.slane %v11947_v3, 2 }
 0x1f6   :  { %9543 = vmatprep.mubr.msk.f32.mxu0 %vm11782_vm1, %v11783_v11  ;;  %v218_v63 = vsel %vm147_vm8, %v217_v57, %v216_v60  ;;  %v223_v4 = vsel %vm132_vm3, %v222_v58, %v221_v61  ;;  %v228_v14 = vrot.slane %v11949_v6, 1  ;;  %v231_v3 = vrot.slane %v11953_v13, 7  ;;  %v12335_v60 = vld [vmem:[%s13246_s2 + $0x30] ss:$0 sm:$0xff] }
 0x1f7   :  { %v368_v8 = vand.u32 4294901760, %v12096_v37  ;;  %v255_v9 = vsel %vm244_vm9, %v218_v63, 0  ;;  %v225_v12 = vsel %vm135_vm4, %v224_v62, %v223_v4 }
 0x1f8   :  { %v12110_v22 = vand.u32 4294901760, %v255_v9  ;;  %v227_v2 = vsel %vm138_vm5, %v226_v1, %v225_v12 }
 0x1f9   :  { %9544 = vmatmul.mubr.f32.gmra.mrb[6].mxu0 %v360_v0  ;;  %v369_v23 = vsub.f32 %v12096_v37, %v368_v8  ;;  %v229_v24 = vsel %vm141_vm6, %v228_v14, %v227_v2 }
 0x1fa   :  { %9546 = vmatprep.mubr.msk.f32.mxu0 %vm11782_vm1, %v11783_v11  ;;  %v12121_v27 = vsub.f32 %v255_v9, %v12110_v22  ;;  %v230_v6 = vsel %vm144_vm7, %v11951_v10, %v229_v24 }
 0x1fb   :  { %v370_v28 = vand.u32 4294901760, %v369_v23  ;;  %v232_v29 = vsel %vm147_vm8, %v231_v3, %v230_v6  ;;  %v4580_v3 = vld [vmem:[%s13247_s3] sm:$0xff] }
 0x1fc   :  { %v378_v32 = vand.u32 4294901760, %v12121_v27  ;;  %v257_v25 = vsel %vm244_vm9, %v232_v29, 0  ;;  %v4599_v6 = vand.u32 4294901760, %v4580_v3  ;;  %v4582_v29 = vld [vmem:[%s13247_s3 + $0x10] sm:$0xff] }
 0x1fd   :  { %9547 = vmatmul.mubr.f32.gmra.mrb[8].mxu0 %v370_v28  ;;  %v12128_v33 = vand.u32 4294901760, %v257_v25 }
 0x1fe   :  { %9549 = vmatprep.mubr.msk.f32.mxu0 %vm11782_vm1, %v11783_v11  ;;  %v379_v13 = vsub.f32 %v12121_v27, %v378_v32 }
 0x1ff   :  { %v387_v35 = vsub.f32 %v257_v25, %v12128_v33 }
 0x200   :  { %v380_v36 = vand.u32 4294901760, %v379_v13 }
 0x201   :  { %v388_v16 = vand.u32 4294901760, %v387_v35 }
 0x202   :  { %9550 = vmatmul.mubr.f32.gmra.mrb[10].mxu0 %v380_v36 }
 0x203   :  { %9552 = vmatprep.mubr.msk.f32.mxu0 %vm11782_vm1, %v11783_v11  ;;  %v389_v10 = vsub.f32 %v387_v35, %v388_v16 }
 0x205   :  { %v390_v39 = vand.u32 4294901760, %v389_v10 }
 0x207   :  { %9553 = vmatmul.mubr.f32.gmra.mrb[12].mxu0 %v390_v39 }
 0x208   :  { %9559 = vmatprep.mubr.msk.f32.mxu0 %vm11782_vm1, %v11783_v11 }
 0x20b   :  { %9560 = vmatmul.mubr.f32.vlgmr.msra.gmra.mrb[0].mxu0 %v11998_v30 }
 0x20c   :  { %10786 = vmatpush3.bf16.msra.mxu0 %v10785_v26  ;;  %9562 = vmatprep.mubr.msk.f32.mxu0 %vm11782_vm1, %v11783_v11  ;;  %v10791_v26 = vpack.c.bf16 %v406_v20, %v399_v19  ;;  %v984_v19 = vand.u32 4294901760, %v236_v17  ;;  %v237_v20 = vld [vmem:[%s13246_s2 + $0x20] sm:$0xff] }
 0x20d   :  { %10787 = vmatprep.subr.bf16.mxu0 %v11781_v7 }
 0x20f   :  { %9563 = vmatmul.mubr.f32.gmra.mrb[2].mxu0 %v12003_v34 }
 0x210   :  { %9565 = vmatprep.mubr.msk.f32.mxu0 %vm11782_vm1, %v11783_v11 }
 0x213   :  { %9566 = vmatmul.mubr.f32.gmra.mrb[4].mxu0 %v12026_v51 }
 0x214   :  { %9568 = vmatprep.mubr.msk.f32.mxu0 %vm11782_vm1, %v11783_v11 }
 0x217   :  { %9569 = vmatmul.mubr.f32.gmra.mrb[6].mxu0 %v12050_v21 }
 0x218   :  { %9571 = vmatprep.mubr.msk.f32.mxu0 %vm11782_vm1, %v11783_v11 }
 0x21b   :  { %9572 = vmatmul.mubr.f32.gmra.mrb[8].mxu0 %v12087_v53 }
 0x21c   :  { %9574 = vmatprep.mubr.msk.f32.mxu0 %vm11782_vm1, %v11783_v11 }
 0x21f   :  { %9575 = vmatmul.mubr.f32.gmra.mrb[10].mxu0 %v12110_v22 }
 0x220   :  { %9577 = vmatprep.mubr.msk.f32.mxu0 %vm11782_vm1, %v11783_v11 }
 0x223   :  { %9578 = vmatmul.mubr.f32.gmra.mrb[12].mxu0 %v12128_v33 }
 0x224   :  { %9584 = vmatprep.mubr.msk.f32.mxu0 %vm11782_vm1, %v11783_v11 }
 0x227   :  { %9585 = vmatmul.mubr.f32.vlgmr.msra.gmra.mrb[0].mxu0 %v12009_v38  ;;  %v238_v38 = vld [vmem:[%s13246_s2 + $0x28] sm:$0xff] }
 0x228   :  { %10789 = vmatpush3.bf16.msra.mxu0 %v11911_v15  ;;  %9587 = vmatprep.mubr.msk.f32.mxu0 %vm11782_vm1, %v11783_v11 }
 0x229   :  { %10790 = vmatprep.subr.bf16.mxu0 %v11781_v7 }
 0x22b   :  { %9588 = vmatmul.mubr.f32.gmra.mrb[2].mxu0 %v12015_v42 }
 0x22c   :  { %9590 = vmatprep.mubr.msk.f32.mxu0 %vm11782_vm1, %v11783_v11 }
 0x22f   :  { %9591 = vmatmul.mubr.f32.gmra.mrb[4].mxu0 %v12040_v59 }
 0x230   :  { %9593 = vmatprep.mubr.msk.f32.mxu0 %vm11782_vm1, %v11783_v11 }
 0x233   :  { %9594 = vmatmul.mubr.f32.gmra.mrb[6].mxu0 %v12065_v31 }
 0x234   :  { %9596 = vmatprep.mubr.msk.f32.mxu0 %vm11782_vm1, %v11783_v11 }
 0x237   :  { %9597 = vmatmul.mubr.f32.gmra.mrb[8].mxu0 %v12096_v37 }
 0x238   :  { %9599 = vmatprep.mubr.msk.f32.mxu0 %vm11782_vm1, %v11783_v11 }
 0x23b   :  { %9600 = vmatmul.mubr.f32.gmra.mrb[10].mxu0 %v12121_v27  ;;  %v4581_v27 = vld [vmem:[%s13247_s3 + $0x8] sm:$0xff] }
 0x23c   :  { %9602 = vmatprep.mubr.msk.f32.mxu0 %vm11782_vm1, %v11783_v11  ;;  %v4602_v28 = vand.u32 4294901760, %v4581_v27 }
 0x23e   :  { %v12356_v25 = vpack.c.bf16 %v4602_v28, %v4599_v6  ;;  %v12360_v13 = vsub.f32 %v4581_v27, %v4602_v28 }
 0x23f   :  { %9603 = vmatmul.mubr.f32.gmra.mrb[12].mxu0 %v387_v35  ;;  %v4605_v35 = vand.u32 4294901760, %v4582_v29 }
 0x240   :  { %9609 = vmatprep.mubr.msk.f32.mxu0 %vm11782_vm1, %v11783_v11  ;;  %11050 = vmatpush3.bf16.msra.mxu1 %v12356_v25 }
 0x241   :  { %v12363_v39 = vsub.f32 %v4582_v29, %v4605_v35  ;;  %11051 = vmatprep.subr.bf16.mxu1 %v11781_v7 }
 0x243   :  { %9610 = vmatmul.mubr.f32.vlgmr.msra.gmra.mrb[0].mxu0 %v328_v46  ;;  %v987_v46 = vand.u32 4294901760, %v237_v20 }
 0x244   :  { %10792 = vmatpush3.bf16.msra.mxu0 %v10791_v26  ;;  %9612 = vmatprep.mubr.msk.f32.mxu0 %vm11782_vm1, %v11783_v11 }
 0x245   :  { %10793 = vmatprep.subr.bf16.mxu0 %v11781_v7 }
 0x247   :  { %9613 = vmatmul.mubr.f32.gmra.mrb[2].mxu0 %v338_v50  ;;  %v990_v50 = vand.u32 4294901760, %v238_v38 }
 0x248   :  { %9615 = vmatprep.mubr.msk.f32.mxu0 %vm11782_vm1, %v11783_v11 }
 0x249   :  { %v12252_v59 = vpack.c.bf16 %v990_v50, %v987_v46  ;;  %v1082_v41 = vsub.f32 %v238_v38, %v990_v50 }
 0x24b   :  { %9616 = vmatmul.mubr.f32.gmra.mrb[4].mxu0 %v348_v5  ;;  %v1068_v5 = vsub.f32 %v236_v17, %v984_v19  ;;  %v1083_v45 = vand.u32 4294901760, %v1082_v41 }
 0x24c   :  { %9618 = vmatprep.mubr.msk.f32.mxu0 %vm11782_vm1, %v11783_v11 }
 0x24d   :  { %v1069_v31 = vand.u32 4294901760, %v1068_v5  ;;  %v1084_v49 = vsub.f32 %v1082_v41, %v1083_v45 }
 0x24f   :  { %9619 = vmatmul.mubr.f32.gmra.mrb[6].mxu0 %v358_v40  ;;  %v1075_v40 = vsub.f32 %v237_v20, %v987_v46  ;;  %v1070_v43 = vsub.f32 %v1068_v5, %v1069_v31  ;;  %v1085_v54 = vand.u32 4294901760, %v1084_v49 }
 0x250   :  { %9621 = vmatprep.mubr.msk.f32.mxu0 %vm11782_vm1, %v11783_v11 }
 0x251   :  { %v1076_v44 = vand.u32 4294901760, %v1075_v40  ;;  %v1071_v47 = vand.u32 4294901760, %v1070_v43  ;;  %v12293_v57 = vpack.c.bf16 %v1082_v41, %v1075_v40 }
 0x253   :  { %9622 = vmatmul.mubr.f32.gmra.mrb[8].mxu0 %v368_v8  ;;  %v1077_v48 = vsub.f32 %v1075_v40, %v1076_v44  ;;  %v12311_v37 = vpack.c.bf16 %v1083_v45, %v1076_v44 }
 0x254   :  { %9624 = vmatprep.mubr.msk.f32.mxu0 %vm11782_vm1, %v11783_v11 }
 0x257   :  { %9625 = vmatmul.mubr.f32.gmra.mrb[10].mxu0 %v378_v32  ;;  %v4583_v32 = vld [vmem:[%s13247_s3 + $0x18] sm:$0xff] }
 0x258   :  { %9627 = vmatprep.mubr.msk.f32.mxu0 %vm11782_vm1, %v11783_v11 }
 0x25b   :  { %9628 = vmatmul.mubr.f32.gmra.mrb[12].mxu0 %v388_v16  ;;  %v4608_v16 = vand.u32 4294901760, %v4583_v32 }
 0x25c   :  { %9634 = vmatprep.mubr.msk.f32.mxu0 %vm11782_vm1, %v11783_v11 }
 0x25d   :  { %v12366_v26 = vpack.c.bf16 %v4608_v16, %v4605_v35 }
 0x25f   :  { %9635 = vmatmul.mubr.f32.vlgmr.msra.gmra.mrb[0].mxu0 %v11998_v30  ;;  %11053 = vmatpush3.bf16.msra.mxu1 %v12366_v26 }
 0x260   :  { %10795 = vmatpush3.bf16.msra.mxu0 %v11911_v15  ;;  %9637 = vmatprep.mubr.msk.f32.mxu0 %vm11782_vm1, %v11783_v11  ;;  %v235_v15 = vld [vmem:[%s13246_s2 + $0x10] sm:$0xff] }
 0x261   :  { %10796 = vmatprep.subr.bf16.mxu0 %v11781_v7  ;;  %v981_v18 = vand.u32 4294901760, %v235_v15  ;;  %11054 = vmatprep.subr.bf16.mxu1 %v11781_v7 }
 0x263   :  { %9638 = vmatmul.mubr.f32.gmra.mrb[2].mxu0 %v12003_v34  ;;  %v12247_v42 = vpack.c.bf16 %v984_v19, %v981_v18 }
 0x264   :  { %9640 = vmatprep.mubr.msk.f32.mxu0 %vm11782_vm1, %v11783_v11 }
 0x267   :  { %9641 = vmatmul.mubr.f32.gmra.mrb[4].mxu0 %v12026_v51 }
 0x268   :  { %9643 = vmatprep.mubr.msk.f32.mxu0 %vm11782_vm1, %v11783_v11 }
 0x26b   :  { %9644 = vmatmul.mubr.f32.gmra.mrb[6].mxu0 %v12050_v21 }
 0x26c   :  { %9646 = vmatprep.mubr.msk.f32.mxu0 %vm11782_vm1, %v11783_v11 }
 0x26f   :  { %9647 = vmatmul.mubr.f32.gmra.mrb[8].mxu0 %v12087_v53 }
 0x270   :  { %9649 = vmatprep.mubr.msk.f32.mxu0 %vm11782_vm1, %v11783_v11 }
 0x273   :  { %9650 = vmatmul.mubr.f32.gmra.mrb[10].mxu0 %v12110_v22 }
 0x274   :  { %9652 = vmatprep.mubr.msk.f32.mxu0 %vm11782_vm1, %v11783_v11 }
 0x277   :  { %9653 = vmatmul.mubr.f32.gmra.mrb[12].mxu0 %v12128_v33 }
 0x278   :  { %9659 = vmatprep.mubr.msk.f32.mxu0 %vm11782_vm1, %v11783_v11 }
 0x27b   :  { %9660 = vmatmul.mubr.f32.vlgmr.msra.gmra.mrb[0].mxu0 %v11998_v30  ;;  %v1061_v30 = vsub.f32 %v235_v15, %v981_v18  ;;  %v12368_v15 = vsub.f32 %v4583_v32, %v4608_v16 }
 0x27c   :  { %10798 = vmatpush3.bf16.msra.mxu0 %v12247_v42  ;;  %9662 = vmatprep.mubr.msk.f32.mxu0 %vm11782_vm1, %v11783_v11 }
 0x27d   :  { %10799 = vmatprep.subr.bf16.mxu0 %v11781_v7  ;;  %v12288_v56 = vpack.c.bf16 %v1068_v5, %v1061_v30 }
 0x27f   :  { %9663 = vmatmul.mubr.f32.gmra.mrb[2].mxu0 %v12003_v34  ;;  %v1062_v34 = vand.u32 4294901760, %v1061_v30 }
 0x280   :  { %9665 = vmatprep.mubr.msk.f32.mxu0 %vm11782_vm1, %v11783_v11  ;;  %10801 = vmatpush3.bf16.msra.mxu0 %v12252_v59 }
 0x281   :  { %10802 = vmatprep.subr.bf16.mxu0 %v11781_v7  ;;  %v12306_v58 = vpack.c.bf16 %v1069_v31, %v1062_v34 }
 0x283   :  { %9666 = vmatmul.mubr.f32.gmra.mrb[4].mxu0 %v12026_v51  ;;  %v1063_v51 = vsub.f32 %v1061_v30, %v1062_v34 }
 0x284   :  { %9668 = vmatprep.mubr.msk.f32.mxu0 %vm11782_vm1, %v11783_v11 }
 0x287   :  { %9669 = vmatmul.mubr.f32.gmra.mrb[6].mxu0 %v12050_v21  ;;  %v1064_v21 = vand.u32 4294901760, %v1063_v51 }
 0x288   :  { %9671 = vmatprep.mubr.msk.f32.mxu0 %vm11782_vm1, %v11783_v11 }
 0x289   :  { %v12278_v52 = vpack.c.bf16 %v1071_v47, %v1064_v21 }
 0x28b   :  { %9672 = vmatmul.mubr.f32.gmra.mrb[8].mxu0 %v12087_v53  ;;  %v1078_v53 = vand.u32 4294901760, %v1077_v48 }
 0x28c   :  { %9674 = vmatprep.mubr.msk.f32.mxu0 %vm11782_vm1, %v11783_v11 }
 0x28d   :  { %v12282_v55 = vpack.c.bf16 %v1085_v54, %v1078_v53 }
 0x28f   :  { %9675 = vmatmul.mubr.f32.gmra.mrb[10].mxu0 %v12110_v22 }
 0x290   :  { %9677 = vmatprep.mubr.msk.f32.mxu0 %vm11782_vm1, %v11783_v11 }
 0x293   :  { %9678 = vmatmul.mubr.f32.gmra.mrb[12].mxu0 %v12128_v33  ;;  %v12358_v33 = vsub.f32 %v4580_v3, %v4599_v6 }
 0x294   :  { %9688 = vmatprep.mubr.msk.f32.mxu0 %vm11782_vm1, %v11783_v11 }
 0x297   :  { %9689 = vmatmul.mubr.f32.vlgmr.msra.gmra.mrb[0].mxu0 %v11783_v11 }
 0x298   :  { %10804 = vmatpush3.bf16.msra.mxu0 %v12278_v52  ;;  %9699 = vmatprep.mubr.msk.f32.mxu0 %vm11782_vm1, %v11783_v11 }
 0x299   :  { %10805 = vmatprep.subr.bf16.mxu0 %v11781_v7 }
 0x29c   :  { %10807 = vmatpush3.bf16.msra.mxu0 %v12282_v55 }
 0x29d   :  { %10808 = vmatprep.subr.bf16.mxu0 %v11781_v7 }
 0x29f   :  { %9700 = vmatmul.mubr.f32.vlgmr.msra.gmra.mrb[0].mxu0 %v11783_v11 }
 0x2a0   :  { %10810 = vmatpush3.bf16.msra.mxu0 %v12288_v56  ;;  %9710 = vmatprep.mubr.msk.f32.mxu0 %vm11782_vm1, %v11783_v11 }
 0x2a1   :  { %10811 = vmatprep.subr.bf16.mxu0 %v11781_v7 }
 0x2a4   :  { %10813 = vmatpush3.bf16.msra.mxu0 %v12293_v57 }
 0x2a5   :  { %10814 = vmatprep.subr.bf16.mxu0 %v11781_v7 }
 0x2a7   :  { %9711 = vmatmul.mubr.f32.vlgmr.msra.gmra.mrb[0].mxu0 %v11783_v11 }
 0x2a8   :  { %10816 = vmatpush3.bf16.msra.mxu0 %v12247_v42  ;;  %9721 = vmatprep.mubr.msk.f32.mxu0 %vm11782_vm1, %v11783_v11 }
 0x2a9   :  { %10817 = vmatprep.subr.bf16.mxu0 %v11781_v7 }
 0x2ac   :  { %10819 = vmatpush3.bf16.msra.mxu0 %v12252_v59 }
 0x2ad   :  { %10820 = vmatprep.subr.bf16.mxu0 %v11781_v7 }
 0x2af   :  { %9722 = vmatmul.mubr.f32.vlgmr.msra.gmra.mrb[0].mxu0 %v11783_v11 }
 0x2b0   :  { %10822 = vmatpush3.bf16.msra.mxu0 %v12306_v58  ;;  %9732 = vmatprep.mubr.msk.f32.mxu0 %vm11782_vm1, %v11783_v11 }
 0x2b1   :  { %10823 = vmatprep.subr.bf16.mxu0 %v11781_v7 }
 0x2b4   :  { %10825 = vmatpush3.bf16.msra.mxu0 %v12311_v37 }
 0x2b5   :  { %10826 = vmatprep.subr.bf16.mxu0 %v11781_v7 }
 0x2b7   :  { %9733 = vmatmul.mubr.f32.vlgmr.msra.gmra.mrb[0].mxu0 %v11783_v11 }
 0x2b8   :  { %10828 = vmatpush3.bf16.msra.mxu0 %v12247_v42  ;;  %9743 = vmatprep.mubr.msk.f32.mxu0 %vm11782_vm1, %v11783_v11 }
 0x2b9   :  { %10829 = vmatprep.subr.bf16.mxu0 %v11781_v7 }
 0x2bc   :  { %10831 = vmatpush3.bf16.msra.mxu0 %v12252_v59 }
 0x2bd   :  { %10832 = vmatprep.subr.bf16.mxu0 %v11781_v7 }
 0x2bf   :  { %9744 = vmatmul.mubr.f32.vlgmr.msra.gmra.mrb[0].mxu0 %v11783_v11 }
 0x2c0   :  { %10834 = vmatpush3.bf16.msra.mxu0 %v12247_v42  ;;  %9754 = vmatprep.mubr.msk.f32.mxu0 %vm11782_vm1, %v11783_v11 }
 0x2c1   :  { %10835 = vmatprep.subr.bf16.mxu0 %v11781_v7 }
 0x2c4   :  { %10837 = vmatpush3.bf16.msra.mxu0 %v12252_v59 }
 0x2c5   :  { %10838 = vmatprep.subr.bf16.mxu0 %v11781_v7 }
 0x392   :  { %v1461_v61 = vpop.f32.mrb[0].mxu0 }
 0x393   :  { %v11336_v62 = vadd.f32 %v12335_v60, %v1461_v61  ;;  %v9745_v0 = vpop.f32.mrb[1].mxu0 }
 0x395   :  { %11668 = vtanh.f32 %v11336_v62  ;;  %v8973_v4 = vmul.f32 -1.442695, %v11336_v62 }
 0x397   :  { %11670 = vpow2.f32 %v8973_v4 }
 0x39f   :  { %v11669_v63 = vpop.eup %11668 }
 0x3a0   :  { %1475 = vrot.lane.b32.xlu0 %v11669_v63, %s11784_s29 }
 0x3a1   :  { %v11671_v1 = vpop.eup %11670 }
 0x3a2   :  { %v1469_v8 = vadd.f32 1.0, %v11671_v1 }
 0x3a4   :  { %11672 = vrcp.f32 %v1469_v8 }
 0x3ae   :  { %v11673_v9 = vpop.eup %11672 }
 0x3af   :  { %v1473_v22 = vmul.f32 0.0, %v11673_v9 }
 0x412   :  { %v1476_v12 = vpop.permute.xlu0 %1475 }
 0x413   :  { %v1478_v14 = vmul.f32 %v11673_v9, %v1476_v12 }
 0x415   :  { %1480 = vrot.lane.b32.xlu1 %v1478_v14, %s11784_s29 }
 0x487   :  { %v1481_v2 = vpop.permute.xlu1 %1480 }
 0x488   :  { %v12340_v23 = vadd.f32 %v1481_v2, %v1473_v22 }
 0x48a   :  { %11674 = vtanh.f32 %v12340_v23 }
 0x494   :  { %v11675_v24 = vpop.eup %11674 }
 0x495   :  { %1486 = vrot.lane.b32.xlu1 %v11675_v24, %s11784_s29 }
 0x507   :  { %v1487_v36 = vpop.permute.xlu1 %1486 }
 0x508   :  { %v1489_v10 = vmul.f32 %v11673_v9, %v1487_v36 }
 0x50a   :  { %1491 = vrot.lane.b32.xlu1 %v1489_v10, %s11785_s0 }
 0x57c   :  { %v1492_v17 = vpop.permute.xlu1 %1491 }
 0x57d   :  { %v1493_v18 = vsel %vm976_vm10, %v1492_v17, 0 }
 0x57e   :  { %v12374_v19 = vand.u32 4294901760, %v1493_v18 }
 0x580   :  { %v12377_v20 = vsub.f32 %v1493_v18, %v12374_v19 }
 0x582   :  { %v12380_v38 = vand.u32 4294901760, %v12377_v20 }
 0x584   :  { %v1567_v46 = vsub.f32 %v12377_v20, %v12380_v38 }
 0x586   :  { %v1568_v50 = vand.u32 4294901760, %v1567_v46 }
 0x588   :  { %9755 = vmatmul.mubr.f32.vlgmr.msra.gmra.mrb[2].mxu0 %v1568_v50  ;;  %10151 = vmatmul.mubr.f32.vlgmr.msra.gmra.mrb[0].mxu1 %v1568_v50 }
 0x589   :  { %10840 = vmatpush3.bf16.msra.mxu0 %v12278_v52  ;;  %9765 = vmatprep.mubr.msk.f32.mxu0 %vm11782_vm1, %v11783_v11 }
 0x58a   :  { %10841 = vmatprep.subr.bf16.mxu0 %v11781_v7  ;;  %10153 = vmatprep.mubr.msk.f32.mxu1 %vm11782_vm1, %v11783_v11 }
 0x58d   :  { %10843 = vmatpush3.bf16.msra.mxu0 %v12282_v55 }
 0x58e   :  { %10844 = vmatprep.subr.bf16.mxu0 %v11781_v7 }
 0x590   :  { %9766 = vmatmul.mubr.f32.vlgmr.msra.gmra.mrb[2].mxu0 %v12374_v19 }
 0x591   :  { %10846 = vmatpush3.bf16.msra.mxu0 %v12288_v56  ;;  %9776 = vmatprep.mubr.msk.f32.mxu0 %vm11782_vm1, %v11783_v11 }
 0x592   :  { %10847 = vmatprep.subr.bf16.mxu0 %v11781_v7 }
 0x595   :  { %10849 = vmatpush3.bf16.msra.mxu0 %v12293_v57 }
 0x596   :  { %10850 = vmatprep.subr.bf16.mxu0 %v11781_v7 }
 0x598   :  { %9777 = vmatmul.mubr.f32.vlgmr.msra.gmra.mrb[2].mxu0 %v12377_v20 }
 0x599   :  { %10852 = vmatpush3.bf16.msra.mxu0 %v12247_v42  ;;  %9787 = vmatprep.mubr.msk.f32.mxu0 %vm11782_vm1, %v11783_v11 }
 0x59a   :  { %10853 = vmatprep.subr.bf16.mxu0 %v11781_v7 }
 0x59d   :  { %10855 = vmatpush3.bf16.msra.mxu0 %v12252_v59 }
 0x59e   :  { %10856 = vmatprep.subr.bf16.mxu0 %v11781_v7 }
 0x5a0   :  { %9788 = vmatmul.mubr.f32.vlgmr.msra.gmra.mrb[2].mxu0 %v12380_v38 }
 0x5a1   :  { %10858 = vmatpush3.bf16.msra.mxu0 %v12306_v58  ;;  %9798 = vmatprep.mubr.msk.f32.mxu0 %vm11782_vm1, %v11783_v11 }
 0x5a2   :  { %10859 = vmatprep.subr.bf16.mxu0 %v11781_v7 }
 0x5a5   :  { %10861 = vmatpush3.bf16.msra.mxu0 %v12311_v37 }
 0x5a6   :  { %10862 = vmatprep.subr.bf16.mxu0 %v11781_v7 }
 0x5a8   :  { %9799 = vmatmul.mubr.f32.vlgmr.msra.gmra.mrb[2].mxu0 %v12374_v19 }
 0x5a9   :  { %10864 = vmatpush3.bf16.msra.mxu0 %v12247_v42  ;;  %9809 = vmatprep.mubr.msk.f32.mxu0 %vm11782_vm1, %v11783_v11 }
 0x5aa   :  { %10865 = vmatprep.subr.bf16.mxu0 %v11781_v7 }
 0x5ad   :  { %10867 = vmatpush3.bf16.msra.mxu0 %v12252_v59 }
 0x5ae   :  { %10868 = vmatprep.subr.bf16.mxu0 %v11781_v7 }
 0x5b0   :  { %9810 = vmatmul.mubr.f32.vlgmr.msra.gmra.mrb[2].mxu0 %v12374_v19 }
 0x5b1   :  { %10870 = vmatpush3.bf16.msra.mxu0 %v12247_v42  ;;  %9820 = vmatprep.mubr.msk.f32.mxu0 %vm11782_vm1, %v11783_v11 }
 0x5b2   :  { %10871 = vmatprep.subr.bf16.mxu0 %v11781_v7 }
 0x5b5   :  { %10873 = vmatpush3.bf16.msra.mxu0 %v12252_v59 }
 0x5b6   :  { %10874 = vmatprep.subr.bf16.mxu0 %v11781_v7 }
 0x683   :  { %v1976_v30 = vpop.f32.mrb[2].mxu0 }
 0x684   :  { %v11337_v5 = vadd.f32 %v12335_v60, %v1976_v30  ;;  %v9811_v34 = vpop.f32.mrb[3].mxu0 }
 0x686   :  { %11676 = vtanh.f32 %v11337_v5  ;;  %v8974_v40 = vmul.f32 -1.442695, %v11337_v5 }
 0x688   :  { %11678 = vpow2.f32 %v8974_v40 }
 0x690   :  { %v11677_v31 = vpop.eup %11676 }
 0x691   :  { %1990 = vrot.lane.b32.xlu1 %v11677_v31, %s11784_s29 }
 0x692   :  { %v11679_v41 = vpop.eup %11678 }
 0x693   :  { %v1984_v51 = vadd.f32 1.0, %v11679_v41 }
 0x695   :  { %11680 = vrcp.f32 %v1984_v51 }
 0x69f   :  { %v11681_v43 = vpop.eup %11680 }
 0x6a0   :  { %v1988_v21 = vmul.f32 %v11681_v43, %v12340_v23 }
 0x703   :  { %v1991_v44 = vpop.permute.xlu1 %1990 }
 0x704   :  { %v1993_v45 = vmul.f32 %v11681_v43, %v1991_v44 }
 0x706   :  { %1995 = vrot.lane.b32.xlu1 %v1993_v45, %s11784_s29 }
 0x778   :  { %v1996_v47 = vpop.permute.xlu1 %1995 }
 0x779   :  { %v12431_v48 = vadd.f32 %v1996_v47, %v1988_v21 }
 0x77b   :  { %11682 = vtanh.f32 %v12431_v48 }
 0x785   :  { %v11683_v49 = vpop.eup %11682 }
 0x786   :  { %2001 = vrot.lane.b32.xlu1 %v11683_v49, %s11784_s29 }
 0x7f8   :  { %v2002_v53 = vpop.permute.xlu1 %2001 }
 0x7f9   :  { %v2004_v54 = vmul.f32 %v11681_v43, %v2002_v53 }
 0x7fb   :  { %2006 = vrot.lane.b32.xlu0 %v2004_v54, %s11785_s0 }
 0x86d   :  { %v2007_v61 = vpop.permute.xlu0 %2006 }
 0x86e   :  { %v2008_v62 = vsel %vm976_vm10, %v2007_v61, 0 }
 0x86f   :  { %v12437_v0 = vand.u32 4294901760, %v2008_v62 }
 0x871   :  { %v12440_v63 = vsub.f32 %v2008_v62, %v12437_v0 }
 0x873   :  { %v12443_v4 = vand.u32 4294901760, %v12440_v63 }
 0x875   :  { %v2082_v1 = vsub.f32 %v12440_v63, %v12443_v4 }
 0x877   :  { %v2083_v8 = vand.u32 4294901760, %v2082_v1 }
 0x879   :  { %9821 = vmatmul.mubr.f32.vlgmr.msra.gmra.mrb[4].mxu0 %v2083_v8  ;;  %10154 = vmatmul.mubr.f32.gmra.mrb[2].mxu1 %v2083_v8 }
 0x87a   :  { %10876 = vmatpush3.bf16.msra.mxu0 %v12278_v52  ;;  %9831 = vmatprep.mubr.msk.f32.mxu0 %vm11782_vm1, %v11783_v11 }
 0x87b   :  { %10877 = vmatprep.subr.bf16.mxu0 %v11781_v7  ;;  %10156 = vmatprep.mubr.msk.f32.mxu1 %vm11782_vm1, %v11783_v11 }
 0x87e   :  { %10879 = vmatpush3.bf16.msra.mxu0 %v12282_v55 }
 0x87f   :  { %10880 = vmatprep.subr.bf16.mxu0 %v11781_v7 }
 0x881   :  { %9832 = vmatmul.mubr.f32.vlgmr.msra.gmra.mrb[4].mxu0 %v12437_v0 }
 0x882   :  { %10882 = vmatpush3.bf16.msra.mxu0 %v12288_v56  ;;  %9842 = vmatprep.mubr.msk.f32.mxu0 %vm11782_vm1, %v11783_v11 }
 0x883   :  { %10883 = vmatprep.subr.bf16.mxu0 %v11781_v7 }
 0x886   :  { %10885 = vmatpush3.bf16.msra.mxu0 %v12293_v57 }
 0x887   :  { %10886 = vmatprep.subr.bf16.mxu0 %v11781_v7 }
 0x889   :  { %9843 = vmatmul.mubr.f32.vlgmr.msra.gmra.mrb[4].mxu0 %v12440_v63 }
 0x88a   :  { %10888 = vmatpush3.bf16.msra.mxu0 %v12247_v42  ;;  %9853 = vmatprep.mubr.msk.f32.mxu0 %vm11782_vm1, %v11783_v11 }
 0x88b   :  { %10889 = vmatprep.subr.bf16.mxu0 %v11781_v7 }
 0x88e   :  { %10891 = vmatpush3.bf16.msra.mxu0 %v12252_v59 }
 0x88f   :  { %10892 = vmatprep.subr.bf16.mxu0 %v11781_v7 }
 0x891   :  { %9854 = vmatmul.mubr.f32.vlgmr.msra.gmra.mrb[4].mxu0 %v12443_v4 }
 0x892   :  { %10894 = vmatpush3.bf16.msra.mxu0 %v12306_v58  ;;  %9864 = vmatprep.mubr.msk.f32.mxu0 %vm11782_vm1, %v11783_v11 }
 0x893   :  { %10895 = vmatprep.subr.bf16.mxu0 %v11781_v7 }
 0x896   :  { %10897 = vmatpush3.bf16.msra.mxu0 %v12311_v37 }
 0x897   :  { %10898 = vmatprep.subr.bf16.mxu0 %v11781_v7 }
 0x899   :  { %9865 = vmatmul.mubr.f32.vlgmr.msra.gmra.mrb[4].mxu0 %v12437_v0 }
 0x89a   :  { %10900 = vmatpush3.bf16.msra.mxu0 %v12247_v42  ;;  %9875 = vmatprep.mubr.msk.f32.mxu0 %vm11782_vm1, %v11783_v11 }
 0x89b   :  { %10901 = vmatprep.subr.bf16.mxu0 %v11781_v7 }
 0x89e   :  { %10903 = vmatpush3.bf16.msra.mxu0 %v12252_v59 }
 0x89f   :  { %10904 = vmatprep.subr.bf16.mxu0 %v11781_v7 }
 0x8a1   :  { %9876 = vmatmul.mubr.f32.vlgmr.msra.gmra.mrb[4].mxu0 %v12437_v0 }
 0x8a2   :  { %10906 = vmatpush3.bf16.msra.mxu0 %v12247_v42  ;;  %9886 = vmatprep.mubr.msk.f32.mxu0 %vm11782_vm1, %v11783_v11 }
 0x8a3   :  { %10907 = vmatprep.subr.bf16.mxu0 %v11781_v7 }
 0x8a6   :  { %10909 = vmatpush3.bf16.msra.mxu0 %v12252_v59 }
 0x8a7   :  { %10910 = vmatprep.subr.bf16.mxu0 %v11781_v7 }
 0x974   :  { %v2491_v9 = vpop.f32.mrb[4].mxu0 }
 0x975   :  { %v11338_v12 = vadd.f32 %v12335_v60, %v2491_v9  ;;  %v9877_v14 = vpop.f32.mrb[5].mxu0 }
 0x977   :  { %11684 = vtanh.f32 %v11338_v12  ;;  %v8975_v2 = vmul.f32 -1.442695, %v11338_v12 }
 0x979   :  { %11686 = vpow2.f32 %v8975_v2 }
 0x981   :  { %v11685_v22 = vpop.eup %11684 }
 0x982   :  { %2505 = vrot.lane.b32.xlu1 %v11685_v22, %s11784_s29 }
 0x983   :  { %v11687_v23 = vpop.eup %11686 }
 0x984   :  { %v2499_v24 = vadd.f32 1.0, %v11687_v23 }
 0x986   :  { %11688 = vrcp.f32 %v2499_v24 }
 0x990   :  { %v11689_v3 = vpop.eup %11688 }
 0x991   :  { %v2503_v28 = vmul.f32 %v11689_v3, %v12431_v48 }
 0x9f4   :  { %v2506_v27 = vpop.permute.xlu1 %2505 }
 0x9f5   :  { %v2508_v6 = vmul.f32 %v11689_v3, %v2506_v27 }
 0x9f7   :  { %2510 = vrot.lane.b32.xlu0 %v2508_v6, %s11784_s29 }
 0xa69   :  { %v2511_v29 = vpop.permute.xlu0 %2510 }
 0xa6a   :  { %v12494_v32 = vadd.f32 %v2511_v29, %v2503_v28 }
 0xa6c   :  { %11690 = vtanh.f32 %v12494_v32 }
 0xa76   :  { %v11691_v35 = vpop.eup %11690 }
 0xa77   :  { %2516 = vrot.lane.b32.xlu1 %v11691_v35, %s11784_s29 }
 0xae9   :  { %v2517_v36 = vpop.permute.xlu1 %2516 }
 0xaea   :  { %v2519_v16 = vmul.f32 %v11689_v3, %v2517_v36 }
 0xaec   :  { %2521 = vrot.lane.b32.xlu0 %v2519_v16, %s11785_s0 }
 0xb5e   :  { %v2522_v10 = vpop.permute.xlu0 %2521 }
 0xb5f   :  { %v2523_v17 = vsel %vm976_vm10, %v2522_v10, 0 }
 0xb60   :  { %v12500_v18 = vand.u32 4294901760, %v2523_v17 }
 0xb62   :  { %v12503_v46 = vsub.f32 %v2523_v17, %v12500_v18 }
 0xb64   :  { %v12506_v50 = vand.u32 4294901760, %v12503_v46 }
 0xb66   :  { %v2597_v30 = vsub.f32 %v12503_v46, %v12506_v50 }
 0xb68   :  { %v2598_v5 = vand.u32 4294901760, %v2597_v30 }
 0xb6a   :  { %9887 = vmatmul.mubr.f32.vlgmr.msra.gmra.mrb[6].mxu0 %v2598_v5  ;;  %10157 = vmatmul.mubr.f32.gmra.mrb[4].mxu1 %v2598_v5 }
 0xb6b   :  { %10912 = vmatpush3.bf16.msra.mxu0 %v12278_v52  ;;  %9897 = vmatprep.mubr.msk.f32.mxu0 %vm11782_vm1, %v11783_v11 }
 0xb6c   :  { %10913 = vmatprep.subr.bf16.mxu0 %v11781_v7  ;;  %10159 = vmatprep.mubr.msk.f32.mxu1 %vm11782_vm1, %v11783_v11 }
 0xb6f   :  { %10915 = vmatpush3.bf16.msra.mxu0 %v12282_v55 }
 0xb70   :  { %10916 = vmatprep.subr.bf16.mxu0 %v11781_v7 }
 0xb72   :  { %9898 = vmatmul.mubr.f32.vlgmr.msra.gmra.mrb[6].mxu0 %v12500_v18 }
 0xb73   :  { %10918 = vmatpush3.bf16.msra.mxu0 %v12288_v56  ;;  %9908 = vmatprep.mubr.msk.f32.mxu0 %vm11782_vm1, %v11783_v11 }
 0xb74   :  { %10919 = vmatprep.subr.bf16.mxu0 %v11781_v7 }
 0xb77   :  { %10921 = vmatpush3.bf16.msra.mxu0 %v12293_v57 }
 0xb78   :  { %10922 = vmatprep.subr.bf16.mxu0 %v11781_v7 }
 0xb7a   :  { %9909 = vmatmul.mubr.f32.vlgmr.msra.gmra.mrb[6].mxu0 %v12503_v46 }
 0xb7b   :  { %10924 = vmatpush3.bf16.msra.mxu0 %v12247_v42  ;;  %9919 = vmatprep.mubr.msk.f32.mxu0 %vm11782_vm1, %v11783_v11 }
 0xb7c   :  { %10925 = vmatprep.subr.bf16.mxu0 %v11781_v7 }
 0xb7f   :  { %10927 = vmatpush3.bf16.msra.mxu0 %v12252_v59 }
 0xb80   :  { %10928 = vmatprep.subr.bf16.mxu0 %v11781_v7 }
 0xb82   :  { %9920 = vmatmul.mubr.f32.vlgmr.msra.gmra.mrb[6].mxu0 %v12506_v50 }
 0xb83   :  { %10930 = vmatpush3.bf16.msra.mxu0 %v12306_v58  ;;  %9930 = vmatprep.mubr.msk.f32.mxu0 %vm11782_vm1, %v11783_v11 }
 0xb84   :  { %10931 = vmatprep.subr.bf16.mxu0 %v11781_v7 }
 0xb87   :  { %10933 = vmatpush3.bf16.msra.mxu0 %v12311_v37 }
 0xb88   :  { %10934 = vmatprep.subr.bf16.mxu0 %v11781_v7 }
 0xb8a   :  { %9931 = vmatmul.mubr.f32.vlgmr.msra.gmra.mrb[6].mxu0 %v12500_v18 }
 0xb8b   :  { %10936 = vmatpush3.bf16.msra.mxu0 %v12247_v42  ;;  %9941 = vmatprep.mubr.msk.f32.mxu0 %vm11782_vm1, %v11783_v11 }
 0xb8c   :  { %10937 = vmatprep.subr.bf16.mxu0 %v11781_v7 }
 0xb8f   :  { %10939 = vmatpush3.bf16.msra.mxu0 %v12252_v59 }
 0xb90   :  { %10940 = vmatprep.subr.bf16.mxu0 %v11781_v7 }
 0xb92   :  { %9942 = vmatmul.mubr.f32.vlgmr.msra.gmra.mrb[6].mxu0 %v12500_v18 }
 0xb93   :  { %10942 = vmatpush3.bf16.msra.mxu0 %v12247_v42  ;;  %9952 = vmatprep.mubr.msk.f32.mxu0 %vm11782_vm1, %v11783_v11 }
 0xb94   :  { %10943 = vmatprep.subr.bf16.mxu0 %v11781_v7 }
 0xb97   :  { %10945 = vmatpush3.bf16.msra.mxu0 %v12252_v59 }
 0xb98   :  { %10946 = vmatprep.subr.bf16.mxu0 %v11781_v7 }
 0xc65   :  { %v3006_v34 = vpop.f32.mrb[6].mxu0 }
 0xc66   :  { %v11339_v31 = vadd.f32 %v12335_v60, %v3006_v34  ;;  %v9943_v40 = vpop.f32.mrb[7].mxu0 }
 0xc68   :  { %11692 = vtanh.f32 %v11339_v31  ;;  %v8976_v51 = vmul.f32 -1.442695, %v11339_v31 }
 0xc6a   :  { %11694 = vpow2.f32 %v8976_v51 }
 0xc72   :  { %v11693_v41 = vpop.eup %11692 }
 0xc73   :  { %3020 = vrot.lane.b32.xlu1 %v11693_v41, %s11784_s29 }
 0xc74   :  { %v11695_v43 = vpop.eup %11694 }
 0xc75   :  { %v3014_v44 = vadd.f32 1.0, %v11695_v43 }
 0xc77   :  { %11696 = vrcp.f32 %v3014_v44 }
 0xc81   :  { %v11697_v45 = vpop.eup %11696 }
 0xc82   :  { %v3018_v48 = vmul.f32 %v11697_v45, %v12494_v32 }
 0xce5   :  { %v3021_v21 = vpop.permute.xlu1 %3020 }
 0xce6   :  { %v3023_v47 = vmul.f32 %v11697_v45, %v3021_v21 }
 0xce8   :  { %3025 = vrot.lane.b32.xlu0 %v3023_v47, %s11784_s29 }
 0xd5a   :  { %v3026_v49 = vpop.permute.xlu0 %3025 }
 0xd5b   :  { %v12557_v53 = vadd.f32 %v3026_v49, %v3018_v48 }
 0xd5d   :  { %11698 = vtanh.f32 %v12557_v53 }
 0xd67   :  { %v11699_v54 = vpop.eup %11698 }
 0xd68   :  { %3031 = vrot.lane.b32.xlu1 %v11699_v54, %s11784_s29 }
 0xdda   :  { %v3032_v61 = vpop.permute.xlu1 %3031 }
 0xddb   :  { %v3034_v62 = vmul.f32 %v11697_v45, %v3032_v61 }
 0xddd   :  { %3036 = vrot.lane.b32.xlu0 %v3034_v62, %s11785_s0 }
 0xe4f   :  { %v3037_v1 = vpop.permute.xlu0 %3036 }
 0xe50   :  { %v3038_v8 = vsel %vm976_vm10, %v3037_v1, 0 }
 0xe51   :  { %v12563_v9 = vand.u32 4294901760, %v3038_v8 }
 0xe53   :  { %v12566_v12 = vsub.f32 %v3038_v8, %v12563_v9 }
 0xe55   :  { %v12569_v14 = vand.u32 4294901760, %v12566_v12 }
 0xe57   :  { %v3112_v22 = vsub.f32 %v12566_v12, %v12569_v14 }
 0xe59   :  { %v3113_v2 = vand.u32 4294901760, %v3112_v22 }
 0xe5b   :  { %9953 = vmatmul.mubr.f32.vlgmr.msra.gmra.mrb[8].mxu0 %v3113_v2  ;;  %10160 = vmatmul.mubr.f32.gmra.mrb[6].mxu1 %v3113_v2 }
 0xe5c   :  { %10948 = vmatpush3.bf16.msra.mxu0 %v12278_v52  ;;  %9963 = vmatprep.mubr.msk.f32.mxu0 %vm11782_vm1, %v11783_v11 }
 0xe5d   :  { %10949 = vmatprep.subr.bf16.mxu0 %v11781_v7  ;;  %10162 = vmatprep.mubr.msk.f32.mxu1 %vm11782_vm1, %v11783_v11 }
 0xe60   :  { %10951 = vmatpush3.bf16.msra.mxu0 %v12282_v55 }
 0xe61   :  { %10952 = vmatprep.subr.bf16.mxu0 %v11781_v7 }
 0xe63   :  { %9964 = vmatmul.mubr.f32.vlgmr.msra.gmra.mrb[8].mxu0 %v12563_v9 }
 0xe64   :  { %10954 = vmatpush3.bf16.msra.mxu0 %v12288_v56  ;;  %9974 = vmatprep.mubr.msk.f32.mxu0 %vm11782_vm1, %v11783_v11 }
 0xe65   :  { %10955 = vmatprep.subr.bf16.mxu0 %v11781_v7 }
 0xe68   :  { %10957 = vmatpush3.bf16.msra.mxu0 %v12293_v57 }
 0xe69   :  { %10958 = vmatprep.subr.bf16.mxu0 %v11781_v7 }
 0xe6b   :  { %9975 = vmatmul.mubr.f32.vlgmr.msra.gmra.mrb[8].mxu0 %v12566_v12 }
 0xe6c   :  { %10960 = vmatpush3.bf16.msra.mxu0 %v12247_v42  ;;  %9985 = vmatprep.mubr.msk.f32.mxu0 %vm11782_vm1, %v11783_v11 }
 0xe6d   :  { %10961 = vmatprep.subr.bf16.mxu0 %v11781_v7 }
 0xe70   :  { %10963 = vmatpush3.bf16.msra.mxu0 %v12252_v59 }
 0xe71   :  { %10964 = vmatprep.subr.bf16.mxu0 %v11781_v7 }
 0xe73   :  { %9986 = vmatmul.mubr.f32.vlgmr.msra.gmra.mrb[8].mxu0 %v12569_v14 }
 0xe74   :  { %10966 = vmatpush3.bf16.msra.mxu0 %v12306_v58  ;;  %9996 = vmatprep.mubr.msk.f32.mxu0 %vm11782_vm1, %v11783_v11 }
 0xe75   :  { %10967 = vmatprep.subr.bf16.mxu0 %v11781_v7 }
 0xe78   :  { %10969 = vmatpush3.bf16.msra.mxu0 %v12311_v37 }
 0xe79   :  { %10970 = vmatprep.subr.bf16.mxu0 %v11781_v7 }
 0xe7b   :  { %9997 = vmatmul.mubr.f32.vlgmr.msra.gmra.mrb[8].mxu0 %v12563_v9 }
 0xe7c   :  { %10972 = vmatpush3.bf16.msra.mxu0 %v12247_v42  ;;  %10007 = vmatprep.mubr.msk.f32.mxu0 %vm11782_vm1, %v11783_v11 }
 0xe7d   :  { %10973 = vmatprep.subr.bf16.mxu0 %v11781_v7 }
 0xe80   :  { %10975 = vmatpush3.bf16.msra.mxu0 %v12252_v59 }
 0xe81   :  { %10976 = vmatprep.subr.bf16.mxu0 %v11781_v7 }
 0xe83   :  { %10008 = vmatmul.mubr.f32.vlgmr.msra.gmra.mrb[8].mxu0 %v12563_v9 }
 0xe84   :  { %10978 = vmatpush3.bf16.msra.mxu0 %v12247_v42  ;;  %10018 = vmatprep.mubr.msk.f32.mxu0 %vm11782_vm1, %v11783_v11 }
 0xe85   :  { %10979 = vmatprep.subr.bf16.mxu0 %v11781_v7 }
 0xe88   :  { %10981 = vmatpush3.bf16.msra.mxu0 %v12252_v59 }
 0xe89   :  { %10982 = vmatprep.subr.bf16.mxu0 %v11781_v7 }
 0xf56   :  { %v3521_v23 = vpop.f32.mrb[8].mxu0 }
 0xf57   :  { %v11340_v24 = vadd.f32 %v12335_v60, %v3521_v23  ;;  %v10009_v3 = vpop.f32.mrb[9].mxu0 }
 0xf59   :  { %11700 = vtanh.f32 %v11340_v24  ;;  %v8977_v6 = vmul.f32 -1.442695, %v11340_v24 }
 0xf5b   :  { %11702 = vpow2.f32 %v8977_v6 }
 0xf63   :  { %v11701_v27 = vpop.eup %11700 }
 0xf64   :  { %3535 = vrot.lane.b32.xlu1 %v11701_v27, %s11784_s29 }
 0xf65   :  { %v11703_v28 = vpop.eup %11702 }
 0xf66   :  { %v3529_v29 = vadd.f32 1.0, %v11703_v28 }
 0xf68   :  { %11704 = vrcp.f32 %v3529_v29 }
 0xf72   :  { %v11705_v32 = vpop.eup %11704 }
 0xf73   :  { %v3533_v16 = vmul.f32 %v11705_v32, %v12557_v53 }
 0xfd6   :  { %v3536_v35 = vpop.permute.xlu1 %3535 }
 0xfd7   :  { %v3538_v36 = vmul.f32 %v11705_v32, %v3536_v35 }
 0xfd9   :  { %3540 = vrot.lane.b32.xlu0 %v3538_v36, %s11784_s29 }
0x104b   :  { %v3541_v10 = vpop.permute.xlu0 %3540 }
0x104c   :  { %v12620_v17 = vadd.f32 %v3541_v10, %v3533_v16 }
0x104e   :  { %11706 = vtanh.f32 %v12620_v17 }
0x1058   :  { %v11707_v30 = vpop.eup %11706 }
0x1059   :  { %3546 = vrot.lane.b32.xlu1 %v11707_v30, %s11784_s29 }
0x10cb   :  { %v3547_v5 = vpop.permute.xlu1 %3546 }
0x10cc   :  { %v3549_v34 = vmul.f32 %v11705_v32, %v3547_v5 }
0x10ce   :  { %3551 = vrot.lane.b32.xlu0 %v3549_v34, %s11785_s0 }
0x1140   :  { %v3552_v31 = vpop.permute.xlu0 %3551 }
0x1141   :  { %v3553_v40 = vsel %vm976_vm10, %v3552_v31, 0  ;;  %v4747_v31 = vand.u32 4294901760, %v12360_v13 }
0x1142   :  { %v12626_v41 = vand.u32 4294901760, %v3553_v40 }
0x1144   :  { %v12629_v51 = vsub.f32 %v3553_v40, %v12626_v41 }
0x1146   :  { %v12632_v43 = vand.u32 4294901760, %v12629_v51 }
0x1148   :  { %v3627_v44 = vsub.f32 %v12629_v51, %v12632_v43 }
0x114a   :  { %v3628_v45 = vand.u32 4294901760, %v3627_v44  ;;  %v4748_v44 = vsub.f32 %v12360_v13, %v4747_v31 }
0x114c   :  { %10019 = vmatmul.mubr.f32.vlgmr.msra.gmra.mrb[10].mxu0 %v3628_v45  ;;  %10163 = vmatmul.mubr.f32.gmra.mrb[8].mxu1 %v3628_v45 }
0x114d   :  { %10984 = vmatpush3.bf16.msra.mxu0 %v12278_v52  ;;  %10029 = vmatprep.mubr.msk.f32.mxu0 %vm11782_vm1, %v11783_v11 }
0x114e   :  { %10985 = vmatprep.subr.bf16.mxu0 %v11781_v7  ;;  %10165 = vmatprep.mubr.msk.f32.mxu1 %vm11782_vm1, %v11783_v11 }
0x1151   :  { %10987 = vmatpush3.bf16.msra.mxu0 %v12282_v55 }
0x1152   :  { %10988 = vmatprep.subr.bf16.mxu0 %v11781_v7 }
0x1154   :  { %10030 = vmatmul.mubr.f32.vlgmr.msra.gmra.mrb[10].mxu0 %v12626_v41 }
0x1155   :  { %10990 = vmatpush3.bf16.msra.mxu0 %v12288_v56  ;;  %10040 = vmatprep.mubr.msk.f32.mxu0 %vm11782_vm1, %v11783_v11 }
0x1156   :  { %10991 = vmatprep.subr.bf16.mxu0 %v11781_v7 }
0x1159   :  { %10993 = vmatpush3.bf16.msra.mxu0 %v12293_v57 }
0x115a   :  { %10994 = vmatprep.subr.bf16.mxu0 %v11781_v7 }
0x115c   :  { %10041 = vmatmul.mubr.f32.vlgmr.msra.gmra.mrb[10].mxu0 %v12629_v51 }
0x115d   :  { %10996 = vmatpush3.bf16.msra.mxu0 %v12247_v42  ;;  %10051 = vmatprep.mubr.msk.f32.mxu0 %vm11782_vm1, %v11783_v11 }
0x115e   :  { %10997 = vmatprep.subr.bf16.mxu0 %v11781_v7 }
0x1161   :  { %10999 = vmatpush3.bf16.msra.mxu0 %v12252_v59 }
0x1162   :  { %11000 = vmatprep.subr.bf16.mxu0 %v11781_v7 }
0x1164   :  { %10052 = vmatmul.mubr.f32.vlgmr.msra.gmra.mrb[10].mxu0 %v12632_v43 }
0x1165   :  { %11002 = vmatpush3.bf16.msra.mxu0 %v12306_v58  ;;  %10062 = vmatprep.mubr.msk.f32.mxu0 %vm11782_vm1, %v11783_v11 }
0x1166   :  { %11003 = vmatprep.subr.bf16.mxu0 %v11781_v7 }
0x1169   :  { %11005 = vmatpush3.bf16.msra.mxu0 %v12311_v37 }
0x116a   :  { %11006 = vmatprep.subr.bf16.mxu0 %v11781_v7 }
0x116c   :  { %10063 = vmatmul.mubr.f32.vlgmr.msra.gmra.mrb[10].mxu0 %v12626_v41 }
0x116d   :  { %11008 = vmatpush3.bf16.msra.mxu0 %v12247_v42  ;;  %10073 = vmatprep.mubr.msk.f32.mxu0 %vm11782_vm1, %v11783_v11 }
0x116e   :  { %11009 = vmatprep.subr.bf16.mxu0 %v11781_v7 }
0x1171   :  { %11011 = vmatpush3.bf16.msra.mxu0 %v12252_v59 }
0x1172   :  { %11012 = vmatprep.subr.bf16.mxu0 %v11781_v7 }
0x1174   :  { %10074 = vmatmul.mubr.f32.vlgmr.msra.gmra.mrb[10].mxu0 %v12626_v41 }
0x1175   :  { %11014 = vmatpush3.bf16.msra.mxu0 %v12247_v42  ;;  %10084 = vmatprep.mubr.msk.f32.mxu0 %vm11782_vm1, %v11783_v11 }
0x1176   :  { %11015 = vmatprep.subr.bf16.mxu0 %v11781_v7 }
0x1179   :  { %11017 = vmatpush3.bf16.msra.mxu0 %v12252_v59 }
0x117a   :  { %11018 = vmatprep.subr.bf16.mxu0 %v11781_v7 }
0x1247   :  { %v4036_v21 = vpop.f32.mrb[10].mxu0 }
0x1248   :  { %v11341_v47 = vadd.f32 %v12335_v60, %v4036_v21  ;;  %v10075_v48 = vpop.f32.mrb[11].mxu0  ;;  %v4749_v21 = vand.u32 4294901760, %v4748_v44 }
0x124a   :  { %11708 = vtanh.f32 %v11341_v47  ;;  %v8978_v53 = vmul.f32 -1.442695, %v11341_v47 }
0x124c   :  { %11710 = vpow2.f32 %v8978_v53  ;;  %v4761_v53 = vand.u32 4294901760, %v12368_v15 }
0x1254   :  { %v11709_v49 = vpop.eup %11708 }
0x1255   :  { %4050 = vrot.lane.b32.xlu1 %v11709_v49, %s11784_s29  ;;  %v4754_v49 = vand.u32 4294901760, %v12363_v39 }
0x1256   :  { %v11711_v54 = vpop.eup %11710 }
0x1257   :  { %v4044_v61 = vadd.f32 1.0, %v11711_v54  ;;  %v4755_v54 = vsub.f32 %v12363_v39, %v4754_v49 }
0x1259   :  { %11712 = vrcp.f32 %v4044_v61  ;;  %v4762_v61 = vsub.f32 %v12368_v15, %v4761_v53 }
0x1263   :  { %v11713_v62 = vpop.eup %11712 }
0x1264   :  { %v4048_v22 = vmul.f32 %v11713_v62, %v12620_v17 }
0x12c7   :  { %v4051_v1 = vpop.permute.xlu1 %4050 }
0x12c8   :  { %v4053_v8 = vmul.f32 %v11713_v62, %v4051_v1  ;;  %v4763_v1 = vand.u32 4294901760, %v4762_v61 }
0x12ca   :  { %4055 = vrot.lane.b32.xlu0 %v4053_v8, %s11784_s29 }
0x133c   :  { %v4056_v2 = vpop.permute.xlu0 %4055 }
0x133d   :  { %v4058_v23 = vadd.f32 %v4056_v2, %v4048_v22 }
0x133f   :  { %11714 = vtanh.f32 %v4058_v23 }
0x1349   :  { %v11715_v24 = vpop.eup %11714 }
0x134a   :  { %4061 = vrot.lane.b32.xlu1 %v11715_v24, %s11784_s29 }
0x13bc   :  { %v4062_v3 = vpop.permute.xlu1 %4061 }
0x13bd   :  { %v4064_v27 = vmul.f32 %v11713_v62, %v4062_v3  ;;  %v4756_v62 = vand.u32 4294901760, %v4755_v54 }
0x13bf   :  { %4066 = vrot.lane.b32.xlu0 %v4064_v27, %s11785_s0  ;;  %v11058_v2 = vpack.c.bf16 %v4763_v1, %v4756_v62 }
0x1431   :  { %v4067_v6 = vpop.permute.xlu0 %4066 }
0x1432   :  { %v4068_v28 = vsel %vm976_vm10, %v4067_v6, 0 }
0x1433   :  { %v12686_v29 = vand.u32 4294901760, %v4068_v28 }
0x1435   :  { %v12689_v32 = vsub.f32 %v4068_v28, %v12686_v29 }
0x1437   :  { %v12692_v35 = vand.u32 4294901760, %v12689_v32 }
0x1439   :  { %v4142_v36 = vsub.f32 %v12689_v32, %v12692_v35 }
0x143b   :  { %v4143_v16 = vand.u32 4294901760, %v4142_v36 }
0x143d   :  { %10085 = vmatmul.mubr.f32.vlgmr.msra.gmra.mrb[12].mxu0 %v4143_v16  ;;  %10166 = vmatmul.mubr.f32.gmra.mrb[10].mxu1 %v4143_v16 }
0x143e   :  { %11020 = vmatpush3.bf16.msra.mxu0 %v12278_v52  ;;  %10095 = vmatprep.mubr.msk.f32.mxu0 %vm11782_vm1, %v11783_v11 }
0x143f   :  { %11021 = vmatprep.subr.bf16.mxu0 %v11781_v7  ;;  %10168 = vmatprep.mubr.msk.f32.mxu1 %vm11782_vm1, %v11783_v11 }
0x1442   :  { %11023 = vmatpush3.bf16.msra.mxu0 %v12282_v55 }
0x1443   :  { %11024 = vmatprep.subr.bf16.mxu0 %v11781_v7 }
0x1445   :  { %10096 = vmatmul.mubr.f32.vlgmr.msra.gmra.mrb[12].mxu0 %v12686_v29 }
0x1446   :  { %11026 = vmatpush3.bf16.msra.mxu0 %v12288_v56  ;;  %10106 = vmatprep.mubr.msk.f32.mxu0 %vm11782_vm1, %v11783_v11 }
0x1447   :  { %11027 = vmatprep.subr.bf16.mxu0 %v11781_v7 }
0x144a   :  { %11029 = vmatpush3.bf16.msra.mxu0 %v12293_v57 }
0x144b   :  { %11030 = vmatprep.subr.bf16.mxu0 %v11781_v7 }
0x144d   :  { %10107 = vmatmul.mubr.f32.vlgmr.msra.gmra.mrb[12].mxu0 %v12689_v32 }
0x144e   :  { %11032 = vmatpush3.bf16.msra.mxu0 %v12247_v42  ;;  %10117 = vmatprep.mubr.msk.f32.mxu0 %vm11782_vm1, %v11783_v11 }
0x144f   :  { %11033 = vmatprep.subr.bf16.mxu0 %v11781_v7 }
0x1452   :  { %11035 = vmatpush3.bf16.msra.mxu0 %v12252_v59 }
0x1453   :  { %11036 = vmatprep.subr.bf16.mxu0 %v11781_v7 }
0x1455   :  { %10118 = vmatmul.mubr.f32.vlgmr.msra.gmra.mrb[12].mxu0 %v12692_v35 }
0x1456   :  { %11038 = vmatpush3.bf16.msra.mxu0 %v12306_v58  ;;  %10128 = vmatprep.mubr.msk.f32.mxu0 %vm11782_vm1, %v11783_v11 }
0x1457   :  { %11039 = vmatprep.subr.bf16.mxu0 %v11781_v7 }
0x145a   :  { %11041 = vmatpush3.bf16.msra.mxu0 %v12311_v37 }
0x145b   :  { %11042 = vmatprep.subr.bf16.mxu0 %v11781_v7 }
0x145d   :  { %10129 = vmatmul.mubr.f32.vlgmr.msra.gmra.mrb[12].mxu0 %v12686_v29 }
0x145e   :  { %11044 = vmatpush3.bf16.msra.mxu0 %v12247_v42  ;;  %10139 = vmatprep.mubr.msk.f32.mxu0 %vm11782_vm1, %v11783_v11 }
0x145f   :  { %11045 = vmatprep.subr.bf16.mxu0 %v11781_v7 }
0x1462   :  { %11047 = vmatpush3.bf16.msra.mxu0 %v12252_v59 }
0x1465   :  { %10140 = vmatmul.mubr.f32.vlgmr.msra.gmra.mrb[12].mxu0 %v12686_v29 }
0x1538   :  { %v4551_v52 = vpop.f32.mrb[12].mxu0 }
0x1539   :  { %v11342_v55 = vadd.f32 %v12335_v60, %v4551_v52  ;;  %v10141_v56 = vpop.f32.mrb[13].mxu0  ;;  %v4740_v60 = vand.u32 4294901760, %v12358_v33  ;;  %v11061_v52 = vpack.c.bf16 %v12360_v13, %v12358_v33 }
0x153b   :  { %11716 = vtanh.f32 %v11342_v55  ;;  %v8979_v58 = vmul.f32 -1.442695, %v11342_v55  ;;  %v4741_v40 = vsub.f32 %v12358_v33, %v4740_v60  ;;  %v4585_v33 = vld [vmem:[%s13247_s3 + $0x28] sm:$0xff] }
0x153d   :  { %11718 = vpow2.f32 %v8979_v58  ;;  %v4742_v45 = vand.u32 4294901760, %v4741_v40 }
0x153f   :  { %v11055_v47 = vpack.c.bf16 %v4749_v21, %v4742_v45 }
0x1541   :  { %11056 = vmatpush3.bf16.msra.mxu1 %v11055_v47 }
0x1542   :  { %11057 = vmatprep.subr.bf16.mxu1 %v11781_v7 }
0x1545   :  { %v11717_v57 = vpop.eup %11716  ;;  %11059 = vmatpush3.bf16.msra.mxu1 %v11058_v2 }
0x1546   :  { %4565 = vrot.lane.b32.xlu1 %v11717_v57, %s11784_s29  ;;  %11060 = vmatprep.subr.bf16.mxu1 %v11781_v7 }
0x1547   :  { %v11719_v42 = vpop.eup %11718 }
0x1548   :  { %v4559_v37 = vadd.f32 1.0, %v11719_v42 }
0x154a   :  { %11720 = vrcp.f32 %v4559_v37 }
0x1554   :  { %v11721_v10 = vpop.eup %11720 }
0x1555   :  { %v4563_v59 = vmul.f32 %v11721_v10, %v4058_v23  ;;  %v11064_v23 = vpack.c.bf16 %v12368_v15, %v12363_v39  ;;  %v11073_v15 = vpack.c.bf16 %v4747_v31, %v4740_v60  ;;  %v5345_v39 = vand.u32 4294901760, %v4585_v33 }
0x15b8   :  { %v4566_v17 = vpop.permute.xlu1 %4565 }
0x15b9   :  { %v4568_v30 = vmul.f32 %v11721_v10, %v4566_v17 }
0x15bb   :  { %4570 = vrot.lane.b32.xlu0 %v4568_v30, %s11784_s29 }
0x162d   :  { %v4571_v5 = vpop.permute.xlu0 %4570 }
0x162e   :  { %v4573_v34 = vadd.f32 %v4571_v5, %v4563_v59  ;;  %v12961_v5 = vld [vmem:[%s13247_s3 + $0x40] ss:$0 sm:$0xff] }
0x1630   :  { %11722 = vtanh.f32 %v4573_v34 }
0x163a   :  { %v11723_v48 = vpop.eup %11722 }
0x163b   :  { %4576 = vrot.lane.b32.xlu1 %v11723_v48, %s11784_s29 }
0x16ad   :  { %v4577_v8 = vpop.permute.xlu1 %4576 }
0x16ae   :  { %v4579_v22 = vmul.f32 %v11721_v10, %v4577_v8 }
0x16b0   :  { %4594 = vrot.lane.b32.xlu0 %v4579_v22, %s11785_s0 }
0x1722   :  { %v4595_v24 = vpop.permute.xlu0 %4594 }
0x1723   :  { %v4596_v3 = vsel %vm976_vm10, %v4595_v24, 0 }
0x1724   :  { %v12756_v27 = vand.u32 4294901760, %v4596_v3 }
0x1726   :  { %v4728_v6 = vsub.f32 %v4596_v3, %v12756_v27 }
0x1728   :  { %v4729_v28 = vand.u32 4294901760, %v4728_v6 }
0x172a   :  { %v4730_v36 = vsub.f32 %v4728_v6, %v4729_v28 }
0x172c   :  { %v4731_v16 = vand.u32 4294901760, %v4730_v36 }
0x172e   :  { %10169 = vmatmul.mubr.f32.gmra.mrb[12].mxu1 %v4731_v16 }
0x172f   :  { %10179 = vmatprep.mubr.msk.f32.mxu1 %vm11782_vm1, %v11783_v11 }
0x1732   :  { %10180 = vmatmul.mubr.f32.vlgmr.msra.gmra.mrb[0].mxu1 %v12374_v19 }
0x1733   :  { %11062 = vmatpush3.bf16.msra.mxu1 %v11061_v52  ;;  %10182 = vmatprep.mubr.msk.f32.mxu1 %vm11782_vm1, %v11783_v11 }
0x1734   :  { %11063 = vmatprep.subr.bf16.mxu1 %v11781_v7 }
0x1736   :  { %10183 = vmatmul.mubr.f32.gmra.mrb[2].mxu1 %v12437_v0 }
0x1737   :  { %10185 = vmatprep.mubr.msk.f32.mxu1 %vm11782_vm1, %v11783_v11  ;;  %11065 = vmatpush3.bf16.msra.mxu1 %v11064_v23 }
0x1738   :  { %11066 = vmatprep.subr.bf16.mxu1 %v11781_v7 }
0x173a   :  { %10186 = vmatmul.mubr.f32.gmra.mrb[4].mxu1 %v12500_v18 }
0x173b   :  { %10188 = vmatprep.mubr.msk.f32.mxu1 %vm11782_vm1, %v11783_v11 }
0x173e   :  { %10189 = vmatmul.mubr.f32.gmra.mrb[6].mxu1 %v12563_v9 }
0x173f   :  { %10191 = vmatprep.mubr.msk.f32.mxu1 %vm11782_vm1, %v11783_v11 }
0x1742   :  { %10192 = vmatmul.mubr.f32.gmra.mrb[8].mxu1 %v12626_v41 }
0x1743   :  { %10194 = vmatprep.mubr.msk.f32.mxu1 %vm11782_vm1, %v11783_v11 }
0x1746   :  { %10195 = vmatmul.mubr.f32.gmra.mrb[10].mxu1 %v12686_v29 }
0x1747   :  { %10197 = vmatprep.mubr.msk.f32.mxu1 %vm11782_vm1, %v11783_v11 }
0x174a   :  { %10198 = vmatmul.mubr.f32.gmra.mrb[12].mxu1 %v12756_v27 }
0x174b   :  { %10208 = vmatprep.mubr.msk.f32.mxu1 %vm11782_vm1, %v11783_v11 }
0x174e   :  { %10209 = vmatmul.mubr.f32.vlgmr.msra.gmra.mrb[0].mxu1 %v12377_v20  ;;  %v11076_v20 = vpack.c.bf16 %v4761_v53, %v4754_v49 }
0x174f   :  { %11068 = vmatpush3.bf16.msra.mxu1 %v12356_v25  ;;  %10211 = vmatprep.mubr.msk.f32.mxu1 %vm11782_vm1, %v11783_v11 }
0x1750   :  { %11069 = vmatprep.subr.bf16.mxu1 %v11781_v7 }
0x1752   :  { %10212 = vmatmul.mubr.f32.gmra.mrb[2].mxu1 %v12440_v63 }
0x1753   :  { %10214 = vmatprep.mubr.msk.f32.mxu1 %vm11782_vm1, %v11783_v11  ;;  %11071 = vmatpush3.bf16.msra.mxu1 %v12366_v26 }
0x1754   :  { %11072 = vmatprep.subr.bf16.mxu1 %v11781_v7 }
0x1756   :  { %10215 = vmatmul.mubr.f32.gmra.mrb[4].mxu1 %v12503_v46 }
0x1757   :  { %10217 = vmatprep.mubr.msk.f32.mxu1 %vm11782_vm1, %v11783_v11 }
0x175a   :  { %10218 = vmatmul.mubr.f32.gmra.mrb[6].mxu1 %v12566_v12  ;;  %v5429_v12 = vsub.f32 %v4585_v33, %v5345_v39 }
0x175b   :  { %10220 = vmatprep.mubr.msk.f32.mxu1 %vm11782_vm1, %v11783_v11 }
0x175e   :  { %10221 = vmatmul.mubr.f32.gmra.mrb[8].mxu1 %v12629_v51 }
0x175f   :  { %10223 = vmatprep.mubr.msk.f32.mxu1 %vm11782_vm1, %v11783_v11 }
0x1762   :  { %10224 = vmatmul.mubr.f32.gmra.mrb[10].mxu1 %v12689_v32 }
0x1763   :  { %10226 = vmatprep.mubr.msk.f32.mxu1 %vm11782_vm1, %v11783_v11 }
0x1766   :  { %10227 = vmatmul.mubr.f32.gmra.mrb[12].mxu1 %v4728_v6 }
0x1767   :  { %10237 = vmatprep.mubr.msk.f32.mxu1 %vm11782_vm1, %v11783_v11 }
0x176a   :  { %10238 = vmatmul.mubr.f32.vlgmr.msra.gmra.mrb[0].mxu1 %v12380_v38  ;;  %v4587_v38 = vld [vmem:[%s13247_s3 + $0x38] sm:$0xff] }
0x176b   :  { %11074 = vmatpush3.bf16.msra.mxu1 %v11073_v15  ;;  %10240 = vmatprep.mubr.msk.f32.mxu1 %vm11782_vm1, %v11783_v11  ;;  %v5351_v46 = vand.u32 4294901760, %v4587_v38 }
0x176c   :  { %11075 = vmatprep.subr.bf16.mxu1 %v11781_v7 }
0x176e   :  { %10241 = vmatmul.mubr.f32.gmra.mrb[2].mxu1 %v12443_v4 }
0x176f   :  { %10243 = vmatprep.mubr.msk.f32.mxu1 %vm11782_vm1, %v11783_v11  ;;  %11077 = vmatpush3.bf16.msra.mxu1 %v11076_v20 }
0x1770   :  { %11078 = vmatprep.subr.bf16.mxu1 %v11781_v7 }
0x1772   :  { %10244 = vmatmul.mubr.f32.gmra.mrb[4].mxu1 %v12506_v50 }
0x1773   :  { %10246 = vmatprep.mubr.msk.f32.mxu1 %vm11782_vm1, %v11783_v11 }
0x1776   :  { %10247 = vmatmul.mubr.f32.gmra.mrb[6].mxu1 %v12569_v14  ;;  %v5430_v14 = vand.u32 4294901760, %v5429_v12 }
0x1777   :  { %10249 = vmatprep.mubr.msk.f32.mxu1 %vm11782_vm1, %v11783_v11 }
0x1778   :  { %v5431_v32 = vsub.f32 %v5429_v12, %v5430_v14 }
0x177a   :  { %10250 = vmatmul.mubr.f32.gmra.mrb[8].mxu1 %v12632_v43  ;;  %v5443_v43 = vsub.f32 %v4587_v38, %v5351_v46  ;;  %v5432_v56 = vand.u32 4294901760, %v5431_v32 }
0x177b   :  { %10252 = vmatprep.mubr.msk.f32.mxu1 %vm11782_vm1, %v11783_v11 }
0x177c   :  { %v5444_v55 = vand.u32 4294901760, %v5443_v43 }
0x177e   :  { %10253 = vmatmul.mubr.f32.gmra.mrb[10].mxu1 %v12692_v35  ;;  %v5445_v58 = vsub.f32 %v5443_v43, %v5444_v55 }
0x177f   :  { %10255 = vmatprep.mubr.msk.f32.mxu1 %vm11782_vm1, %v11783_v11 }
0x1780   :  { %v5446_v37 = vand.u32 4294901760, %v5445_v58 }
0x1782   :  { %10256 = vmatmul.mubr.f32.gmra.mrb[12].mxu1 %v4729_v28 }
0x1783   :  { %10266 = vmatprep.mubr.msk.f32.mxu1 %vm11782_vm1, %v11783_v11 }
0x1786   :  { %10267 = vmatmul.mubr.f32.vlgmr.msra.gmra.mrb[0].mxu1 %v12374_v19 }
0x1787   :  { %11080 = vmatpush3.bf16.msra.mxu1 %v12356_v25  ;;  %10269 = vmatprep.mubr.msk.f32.mxu1 %vm11782_vm1, %v11783_v11  ;;  %v4584_v25 = vld [vmem:[%s13247_s3 + $0x20] sm:$0xff] }
0x1788   :  { %11081 = vmatprep.subr.bf16.mxu1 %v11781_v7  ;;  %v5342_v13 = vand.u32 4294901760, %v4584_v25 }
0x178a   :  { %10270 = vmatmul.mubr.f32.gmra.mrb[2].mxu1 %v12437_v0  ;;  %v12873_v63 = vpack.c.bf16 %v5345_v39, %v5342_v13 }
0x178b   :  { %10272 = vmatprep.mubr.msk.f32.mxu1 %vm11782_vm1, %v11783_v11  ;;  %11083 = vmatpush3.bf16.msra.mxu1 %v12366_v26  ;;  %v4586_v26 = vld [vmem:[%s13247_s3 + $0x30] sm:$0xff] }
0x178c   :  { %11084 = vmatprep.subr.bf16.mxu1 %v11781_v7  ;;  %v5348_v4 = vand.u32 4294901760, %v4586_v26 }
0x178e   :  { %10273 = vmatmul.mubr.f32.gmra.mrb[4].mxu1 %v12500_v18  ;;  %v12878_v50 = vpack.c.bf16 %v5351_v46, %v5348_v4  ;;  %v5436_v51 = vsub.f32 %v4586_v26, %v5348_v4 }
0x178f   :  { %10275 = vmatprep.mubr.msk.f32.mxu1 %vm11782_vm1, %v11783_v11 }
0x1790   :  { %v5437_v35 = vand.u32 4294901760, %v5436_v51  ;;  %v12919_v17 = vpack.c.bf16 %v5443_v43, %v5436_v51 }
0x1792   :  { %10276 = vmatmul.mubr.f32.gmra.mrb[6].mxu1 %v12563_v9  ;;  %v5438_v57 = vsub.f32 %v5436_v51, %v5437_v35  ;;  %v12937_v59 = vpack.c.bf16 %v5444_v55, %v5437_v35 }
0x1793   :  { %10278 = vmatprep.mubr.msk.f32.mxu1 %vm11782_vm1, %v11783_v11 }
0x1794   :  { %v5439_v42 = vand.u32 4294901760, %v5438_v57 }
0x1796   :  { %10279 = vmatmul.mubr.f32.gmra.mrb[8].mxu1 %v12626_v41 }
0x1797   :  { %10281 = vmatprep.mubr.msk.f32.mxu1 %vm11782_vm1, %v11783_v11 }
0x179a   :  { %10282 = vmatmul.mubr.f32.gmra.mrb[10].mxu1 %v12686_v29 }
0x179b   :  { %10284 = vmatprep.mubr.msk.f32.mxu1 %vm11782_vm1, %v11783_v11 }
0x179e   :  { %10285 = vmatmul.mubr.f32.gmra.mrb[12].mxu1 %v12756_v27 }
0x179f   :  { %10295 = vmatprep.mubr.msk.f32.mxu1 %vm11782_vm1, %v11783_v11 }
0x17a2   :  { %10296 = vmatmul.mubr.f32.vlgmr.msra.gmra.mrb[0].mxu1 %v12374_v19  ;;  %v5422_v19 = vsub.f32 %v4584_v25, %v5342_v13 }
0x17a3   :  { %11086 = vmatpush3.bf16.msra.mxu1 %v12873_v63  ;;  %10298 = vmatprep.mubr.msk.f32.mxu1 %vm11782_vm1, %v11783_v11 }
0x17a4   :  { %11087 = vmatprep.subr.bf16.mxu1 %v11781_v7  ;;  %v12914_v10 = vpack.c.bf16 %v5429_v12, %v5422_v19 }
0x17a6   :  { %10299 = vmatmul.mubr.f32.gmra.mrb[2].mxu1 %v12437_v0  ;;  %v5423_v0 = vand.u32 4294901760, %v5422_v19 }
0x17a7   :  { %10301 = vmatprep.mubr.msk.f32.mxu1 %vm11782_vm1, %v11783_v11  ;;  %11089 = vmatpush3.bf16.msra.mxu1 %v12878_v50 }
0x17a8   :  { %11090 = vmatprep.subr.bf16.mxu1 %v11781_v7  ;;  %v12932_v30 = vpack.c.bf16 %v5430_v14, %v5423_v0 }
0x17aa   :  { %10302 = vmatmul.mubr.f32.gmra.mrb[4].mxu1 %v12500_v18  ;;  %v5424_v18 = vsub.f32 %v5422_v19, %v5423_v0 }
0x17ab   :  { %10304 = vmatprep.mubr.msk.f32.mxu1 %vm11782_vm1, %v11783_v11 }
0x17ae   :  { %10305 = vmatmul.mubr.f32.gmra.mrb[6].mxu1 %v12563_v9  ;;  %v5425_v9 = vand.u32 4294901760, %v5424_v18 }
0x17af   :  { %10307 = vmatprep.mubr.msk.f32.mxu1 %vm11782_vm1, %v11783_v11 }
0x17b2   :  { %10308 = vmatmul.mubr.f32.gmra.mrb[8].mxu1 %v12626_v41  ;;  %v12904_v41 = vpack.c.bf16 %v5432_v56, %v5425_v9 }
0x17b3   :  { %10310 = vmatprep.mubr.msk.f32.mxu1 %vm11782_vm1, %v11783_v11 }
0x17b6   :  { %10311 = vmatmul.mubr.f32.gmra.mrb[10].mxu1 %v12686_v29  ;;  %v12908_v29 = vpack.c.bf16 %v5446_v37, %v5439_v42 }
0x17b7   :  { %10313 = vmatprep.mubr.msk.f32.mxu1 %vm11782_vm1, %v11783_v11 }
0x17ba   :  { %10314 = vmatmul.mubr.f32.gmra.mrb[12].mxu1 %v12756_v27 }
0x17bb   :  { %10324 = vmatprep.mubr.msk.f32.mxu1 %vm11782_vm1, %v11783_v11 }
0x17be   :  { %10325 = vmatmul.mubr.f32.vlgmr.msra.gmra.mrb[0].mxu1 %v11783_v11 }
0x17bf   :  { %11092 = vmatpush3.bf16.msra.mxu1 %v12904_v41  ;;  %10335 = vmatprep.mubr.msk.f32.mxu1 %vm11782_vm1, %v11783_v11 }
0x17c0   :  { %11093 = vmatprep.subr.bf16.mxu1 %v11781_v7 }
0x17c3   :  { %11095 = vmatpush3.bf16.msra.mxu1 %v12908_v29 }
0x17c4   :  { %11096 = vmatprep.subr.bf16.mxu1 %v11781_v7 }
0x17c6   :  { %10336 = vmatmul.mubr.f32.vlgmr.msra.gmra.mrb[0].mxu1 %v11783_v11 }
0x17c7   :  { %11098 = vmatpush3.bf16.msra.mxu1 %v12914_v10  ;;  %10346 = vmatprep.mubr.msk.f32.mxu1 %vm11782_vm1, %v11783_v11 }
0x17c8   :  { %11099 = vmatprep.subr.bf16.mxu1 %v11781_v7 }
0x17cb   :  { %11101 = vmatpush3.bf16.msra.mxu1 %v12919_v17 }
0x17cc   :  { %11102 = vmatprep.subr.bf16.mxu1 %v11781_v7 }
0x17ce   :  { %10347 = vmatmul.mubr.f32.vlgmr.msra.gmra.mrb[0].mxu1 %v11783_v11 }
0x17cf   :  { %11104 = vmatpush3.bf16.msra.mxu1 %v12873_v63  ;;  %10357 = vmatprep.mubr.msk.f32.mxu1 %vm11782_vm1, %v11783_v11 }
0x17d0   :  { %11105 = vmatprep.subr.bf16.mxu1 %v11781_v7 }
0x17d3   :  { %11107 = vmatpush3.bf16.msra.mxu1 %v12878_v50 }
0x17d4   :  { %11108 = vmatprep.subr.bf16.mxu1 %v11781_v7 }
0x17d6   :  { %10358 = vmatmul.mubr.f32.vlgmr.msra.gmra.mrb[0].mxu1 %v11783_v11 }
0x17d7   :  { %11110 = vmatpush3.bf16.msra.mxu1 %v12932_v30  ;;  %10368 = vmatprep.mubr.msk.f32.mxu1 %vm11782_vm1, %v11783_v11 }
0x17d8   :  { %11111 = vmatprep.subr.bf16.mxu1 %v11781_v7 }
0x17db   :  { %11113 = vmatpush3.bf16.msra.mxu1 %v12937_v59 }
0x17dc   :  { %11114 = vmatprep.subr.bf16.mxu1 %v11781_v7 }
0x17de   :  { %10369 = vmatmul.mubr.f32.vlgmr.msra.gmra.mrb[0].mxu1 %v11783_v11 }
0x17df   :  { %11116 = vmatpush3.bf16.msra.mxu1 %v12873_v63  ;;  %10379 = vmatprep.mubr.msk.f32.mxu1 %vm11782_vm1, %v11783_v11 }
0x17e0   :  { %11117 = vmatprep.subr.bf16.mxu1 %v11781_v7 }
0x17e3   :  { %11119 = vmatpush3.bf16.msra.mxu1 %v12878_v50 }
0x17e4   :  { %11120 = vmatprep.subr.bf16.mxu1 %v11781_v7 }
0x17e6   :  { %10380 = vmatmul.mubr.f32.vlgmr.msra.gmra.mrb[0].mxu1 %v11783_v11 }
0x17e7   :  { %11122 = vmatpush3.bf16.msra.mxu1 %v12873_v63  ;;  %10390 = vmatprep.mubr.msk.f32.mxu1 %vm11782_vm1, %v11783_v11 }
0x17e8   :  { %11123 = vmatprep.subr.bf16.mxu1 %v11781_v7 }
0x17eb   :  { %11125 = vmatpush3.bf16.msra.mxu1 %v12878_v50 }
0x17ec   :  { %11126 = vmatprep.subr.bf16.mxu1 %v11781_v7 }
0x18b9   :  { %v5822_v34 = vpop.f32.mrb[0].mxu1 }
0x18ba   :  { %v11343_v60 = vadd.f32 %v12961_v5, %v5822_v34  ;;  %v10381_v31 = vpop.f32.mrb[1].mxu1 }
0x18bc   :  { %11724 = vtanh.f32 %v11343_v60  ;;  %v8981_v44 = vmul.f32 -1.442695, %v11343_v60 }
0x18be   :  { %11726 = vpow2.f32 %v8981_v44 }
0x18c6   :  { %v11725_v40 = vpop.eup %11724 }
0x18c7   :  { %5836 = vrot.lane.b32.xlu1 %v11725_v40, %s11784_s29 }
0x18c8   :  { %v11727_v45 = vpop.eup %11726 }
0x18c9   :  { %v5830_v21 = vadd.f32 1.0, %v11727_v45 }
0x18cb   :  { %11728 = vrcp.f32 %v5830_v21 }
0x18d5   :  { %v11729_v47 = vpop.eup %11728 }
0x18d6   :  { %v5834_v53 = vmul.f32 0.0, %v11729_v47 }
0x1939   :  { %v5837_v48 = vpop.permute.xlu1 %5836 }
0x193a   :  { %v5839_v49 = vmul.f32 %v11729_v47, %v5837_v48 }
0x193c   :  { %5841 = vrot.lane.b32.xlu0 %v5839_v49, %s11784_s29 }
0x19ae   :  { %v5842_v54 = vpop.permute.xlu0 %5841 }
0x19af   :  { %v12966_v61 = vadd.f32 %v5842_v54, %v5834_v53 }
0x19b1   :  { %11730 = vtanh.f32 %v12966_v61 }
0x19bb   :  { %v11731_v62 = vpop.eup %11730 }
0x19bc   :  { %5847 = vrot.lane.b32.xlu1 %v11731_v62, %s11784_s29 }
0x1a2e   :  { %v5848_v1 = vpop.permute.xlu1 %5847 }
0x1a2f   :  { %v5850_v8 = vmul.f32 %v11729_v47, %v5848_v1 }
0x1a31   :  { %5852 = vrot.lane.b32.xlu0 %v5850_v8, %s11785_s0 }
0x1aa3   :  { %v5853_v22 = vpop.permute.xlu0 %5852 }
0x1aa4   :  { %v5854_v2 = vsel %vm976_vm10, %v5853_v22, 0 }
0x1aa5   :  { %v5925_v23 = vand.u32 4294901760, %v5854_v2 }
0x1aa7   :  { %v5926_v24 = vsub.f32 %v5854_v2, %v5925_v23 }
0x1aa9   :  { %v5927_v3 = vand.u32 4294901760, %v5926_v24 }
0x1aab   :  { %v5928_v27 = vsub.f32 %v5926_v24, %v5927_v3 }
0x1aad   :  { %v5929_v6 = vand.u32 4294901760, %v5928_v27 }
0x1aaf   :  { %10391 = vmatmul.mubr.f32.vlgmr.msra.gmra.mrb[2].mxu1 %v5929_v6 }
0x1ab0   :  { %11128 = vmatpush3.bf16.msra.mxu1 %v12904_v41  ;;  %10401 = vmatprep.mubr.msk.f32.mxu1 %vm11782_vm1, %v11783_v11 }
0x1ab1   :  { %11129 = vmatprep.subr.bf16.mxu1 %v11781_v7 }
0x1ab4   :  { %11131 = vmatpush3.bf16.msra.mxu1 %v12908_v29 }
0x1ab5   :  { %11132 = vmatprep.subr.bf16.mxu1 %v11781_v7 }
0x1ab7   :  { %10402 = vmatmul.mubr.f32.vlgmr.msra.gmra.mrb[2].mxu1 %v5925_v23 }
0x1ab8   :  { %11134 = vmatpush3.bf16.msra.mxu1 %v12914_v10  ;;  %10412 = vmatprep.mubr.msk.f32.mxu1 %vm11782_vm1, %v11783_v11 }
0x1ab9   :  { %11135 = vmatprep.subr.bf16.mxu1 %v11781_v7 }
0x1abc   :  { %11137 = vmatpush3.bf16.msra.mxu1 %v12919_v17 }
0x1abd   :  { %11138 = vmatprep.subr.bf16.mxu1 %v11781_v7 }
0x1abf   :  { %10413 = vmatmul.mubr.f32.vlgmr.msra.gmra.mrb[2].mxu1 %v5926_v24 }
0x1ac0   :  { %11140 = vmatpush3.bf16.msra.mxu1 %v12873_v63  ;;  %10423 = vmatprep.mubr.msk.f32.mxu1 %vm11782_vm1, %v11783_v11 }
0x1ac1   :  { %11141 = vmatprep.subr.bf16.mxu1 %v11781_v7 }
0x1ac4   :  { %11143 = vmatpush3.bf16.msra.mxu1 %v12878_v50 }
0x1ac5   :  { %11144 = vmatprep.subr.bf16.mxu1 %v11781_v7 }
0x1ac7   :  { %10424 = vmatmul.mubr.f32.vlgmr.msra.gmra.mrb[2].mxu1 %v5927_v3 }
0x1ac8   :  { %11146 = vmatpush3.bf16.msra.mxu1 %v12932_v30  ;;  %10434 = vmatprep.mubr.msk.f32.mxu1 %vm11782_vm1, %v11783_v11 }
0x1ac9   :  { %11147 = vmatprep.subr.bf16.mxu1 %v11781_v7 }
0x1acc   :  { %11149 = vmatpush3.bf16.msra.mxu1 %v12937_v59 }
0x1acd   :  { %11150 = vmatprep.subr.bf16.mxu1 %v11781_v7 }
0x1acf   :  { %10435 = vmatmul.mubr.f32.vlgmr.msra.gmra.mrb[2].mxu1 %v5925_v23 }
0x1ad0   :  { %11152 = vmatpush3.bf16.msra.mxu1 %v12873_v63  ;;  %10445 = vmatprep.mubr.msk.f32.mxu1 %vm11782_vm1, %v11783_v11 }
0x1ad1   :  { %11153 = vmatprep.subr.bf16.mxu1 %v11781_v7 }
0x1ad4   :  { %11155 = vmatpush3.bf16.msra.mxu1 %v12878_v50 }
0x1ad5   :  { %11156 = vmatprep.subr.bf16.mxu1 %v11781_v7 }
0x1ad7   :  { %10446 = vmatmul.mubr.f32.vlgmr.msra.gmra.mrb[2].mxu1 %v5925_v23 }
0x1ad8   :  { %11158 = vmatpush3.bf16.msra.mxu1 %v12873_v63  ;;  %10456 = vmatprep.mubr.msk.f32.mxu1 %vm11782_vm1, %v11783_v11 }
0x1ad9   :  { %11159 = vmatprep.subr.bf16.mxu1 %v11781_v7 }
0x1adc   :  { %11161 = vmatpush3.bf16.msra.mxu1 %v12878_v50 }
0x1add   :  { %11162 = vmatprep.subr.bf16.mxu1 %v11781_v7 }
0x1baa   :  { %v6337_v28 = vpop.f32.mrb[2].mxu1 }
0x1bab   :  { %v11344_v36 = vadd.f32 %v12961_v5, %v6337_v28  ;;  %v10447_v16 = vpop.f32.mrb[3].mxu1 }
0x1bad   :  { %11732 = vtanh.f32 %v11344_v36  ;;  %v8982_v15 = vmul.f32 -1.442695, %v11344_v36 }
0x1baf   :  { %11734 = vpow2.f32 %v8982_v15 }
0x1bb7   :  { %v11733_v52 = vpop.eup %11732 }
0x1bb8   :  { %6351 = vrot.lane.b32.xlu1 %v11733_v52, %s11784_s29 }
0x1bb9   :  { %v11735_v20 = vpop.eup %11734 }
0x1bba   :  { %v6345_v25 = vadd.f32 1.0, %v11735_v20 }
0x1bbc   :  { %11736 = vrcp.f32 %v6345_v25 }
0x1bc6   :  { %v11737_v33 = vpop.eup %11736 }
0x1bc7   :  { %v6349_v26 = vmul.f32 %v11737_v33, %v12966_v61 }
0x1c2a   :  { %v6352_v13 = vpop.permute.xlu1 %6351 }
0x1c2b   :  { %v6354_v39 = vmul.f32 %v11737_v33, %v6352_v13 }
0x1c2d   :  { %6356 = vrot.lane.b32.xlu0 %v6354_v39, %s11784_s29 }
0x1c9f   :  { %v6357_v38 = vpop.permute.xlu0 %6356 }
0x1ca0   :  { %v13012_v4 = vadd.f32 %v6357_v38, %v6349_v26 }
0x1ca2   :  { %11738 = vtanh.f32 %v13012_v4 }
0x1cac   :  { %v11739_v46 = vpop.eup %11738 }
0x1cad   :  { %6362 = vrot.lane.b32.xlu1 %v11739_v46, %s11784_s29 }
0x1d1f   :  { %v6363_v19 = vpop.permute.xlu1 %6362 }
0x1d20   :  { %v6365_v12 = vmul.f32 %v11737_v33, %v6363_v19 }
0x1d22   :  { %6367 = vrot.lane.b32.xlu0 %v6365_v12, %s11785_s0 }
0x1d94   :  { %v6368_v0 = vpop.permute.xlu0 %6367 }
0x1d95   :  { %v6369_v14 = vsel %vm976_vm10, %v6368_v0, 0 }
0x1d96   :  { %v6440_v51 = vand.u32 4294901760, %v6369_v14 }
0x1d98   :  { %v6441_v43 = vsub.f32 %v6369_v14, %v6440_v51 }
0x1d9a   :  { %v6442_v18 = vand.u32 4294901760, %v6441_v43 }
0x1d9c   :  { %v6443_v32 = vsub.f32 %v6441_v43, %v6442_v18 }
0x1d9e   :  { %v6444_v35 = vand.u32 4294901760, %v6443_v32 }
0x1da0   :  { %10457 = vmatmul.mubr.f32.vlgmr.msra.gmra.mrb[4].mxu1 %v6444_v35 }
0x1da1   :  { %11164 = vmatpush3.bf16.msra.mxu1 %v12904_v41  ;;  %10467 = vmatprep.mubr.msk.f32.mxu1 %vm11782_vm1, %v11783_v11 }
0x1da2   :  { %11165 = vmatprep.subr.bf16.mxu1 %v11781_v7 }
0x1da5   :  { %11167 = vmatpush3.bf16.msra.mxu1 %v12908_v29 }
0x1da6   :  { %11168 = vmatprep.subr.bf16.mxu1 %v11781_v7 }
0x1da8   :  { %10468 = vmatmul.mubr.f32.vlgmr.msra.gmra.mrb[4].mxu1 %v6440_v51 }
0x1da9   :  { %11170 = vmatpush3.bf16.msra.mxu1 %v12914_v10  ;;  %10478 = vmatprep.mubr.msk.f32.mxu1 %vm11782_vm1, %v11783_v11 }
0x1daa   :  { %11171 = vmatprep.subr.bf16.mxu1 %v11781_v7 }
0x1dad   :  { %11173 = vmatpush3.bf16.msra.mxu1 %v12919_v17 }
0x1dae   :  { %11174 = vmatprep.subr.bf16.mxu1 %v11781_v7 }
0x1db0   :  { %10479 = vmatmul.mubr.f32.vlgmr.msra.gmra.mrb[4].mxu1 %v6441_v43 }
0x1db1   :  { %11176 = vmatpush3.bf16.msra.mxu1 %v12873_v63  ;;  %10489 = vmatprep.mubr.msk.f32.mxu1 %vm11782_vm1, %v11783_v11 }
0x1db2   :  { %11177 = vmatprep.subr.bf16.mxu1 %v11781_v7 }
0x1db5   :  { %11179 = vmatpush3.bf16.msra.mxu1 %v12878_v50 }
0x1db6   :  { %11180 = vmatprep.subr.bf16.mxu1 %v11781_v7 }
0x1db8   :  { %10490 = vmatmul.mubr.f32.vlgmr.msra.gmra.mrb[4].mxu1 %v6442_v18 }
0x1db9   :  { %11182 = vmatpush3.bf16.msra.mxu1 %v12932_v30  ;;  %10500 = vmatprep.mubr.msk.f32.mxu1 %vm11782_vm1, %v11783_v11 }
0x1dba   :  { %11183 = vmatprep.subr.bf16.mxu1 %v11781_v7 }
0x1dbd   :  { %11185 = vmatpush3.bf16.msra.mxu1 %v12937_v59 }
0x1dbe   :  { %11186 = vmatprep.subr.bf16.mxu1 %v11781_v7 }
0x1dc0   :  { %10501 = vmatmul.mubr.f32.vlgmr.msra.gmra.mrb[4].mxu1 %v6440_v51 }
0x1dc1   :  { %11188 = vmatpush3.bf16.msra.mxu1 %v12873_v63  ;;  %10511 = vmatprep.mubr.msk.f32.mxu1 %vm11782_vm1, %v11783_v11 }
0x1dc2   :  { %11189 = vmatprep.subr.bf16.mxu1 %v11781_v7 }
0x1dc5   :  { %11191 = vmatpush3.bf16.msra.mxu1 %v12878_v50 }
0x1dc6   :  { %11192 = vmatprep.subr.bf16.mxu1 %v11781_v7 }
0x1dc8   :  { %10512 = vmatmul.mubr.f32.vlgmr.msra.gmra.mrb[4].mxu1 %v6440_v51 }
0x1dc9   :  { %11194 = vmatpush3.bf16.msra.mxu1 %v12873_v63  ;;  %10522 = vmatprep.mubr.msk.f32.mxu1 %vm11782_vm1, %v11783_v11 }
0x1dca   :  { %11195 = vmatprep.subr.bf16.mxu1 %v11781_v7 }
0x1dcd   :  { %11197 = vmatpush3.bf16.msra.mxu1 %v12878_v50 }
0x1dce   :  { %11198 = vmatprep.subr.bf16.mxu1 %v11781_v7 }
0x1e9b   :  { %v6852_v55 = vpop.f32.mrb[4].mxu1 }
0x1e9c   :  { %v11345_v9 = vadd.f32 %v12961_v5, %v6852_v55  ;;  %v10513_v56 = vpop.f32.mrb[5].mxu1 }
0x1e9e   :  { %11740 = vtanh.f32 %v11345_v9  ;;  %v8983_v58 = vmul.f32 -1.442695, %v11345_v9 }
0x1ea0   :  { %11742 = vpow2.f32 %v8983_v58 }
0x1ea8   :  { %v11741_v57 = vpop.eup %11740 }
0x1ea9   :  { %6866 = vrot.lane.b32.xlu1 %v11741_v57, %s11784_s29 }
0x1eaa   :  { %v11743_v42 = vpop.eup %11742 }
0x1eab   :  { %v6860_v37 = vadd.f32 1.0, %v11743_v42 }
0x1ead   :  { %11744 = vrcp.f32 %v6860_v37 }
0x1eb7   :  { %v11745_v34 = vpop.eup %11744 }
0x1eb8   :  { %v6864_v40 = vmul.f32 %v11745_v34, %v13012_v4 }
0x1f1b   :  { %v6867_v60 = vpop.permute.xlu1 %6866 }
0x1f1c   :  { %v6869_v31 = vmul.f32 %v11745_v34, %v6867_v60 }
0x1f1e   :  { %6871 = vrot.lane.b32.xlu0 %v6869_v31, %s11784_s29 }
0x1f90   :  { %v6872_v44 = vpop.permute.xlu0 %6871 }
0x1f91   :  { %v13058_v45 = vadd.f32 %v6872_v44, %v6864_v40 }
0x1f93   :  { %11746 = vtanh.f32 %v13058_v45 }
0x1f9d   :  { %v11747_v21 = vpop.eup %11746 }
0x1f9e   :  { %6877 = vrot.lane.b32.xlu1 %v11747_v21, %s11784_s29 }
0x2010   :  { %v6878_v47 = vpop.permute.xlu1 %6877 }
0x2011   :  { %v6880_v48 = vmul.f32 %v11745_v34, %v6878_v47 }
0x2013   :  { %6882 = vrot.lane.b32.xlu0 %v6880_v48, %s11785_s0 }
0x2085   :  { %v6883_v49 = vpop.permute.xlu0 %6882 }
0x2086   :  { %v6884_v53 = vsel %vm976_vm10, %v6883_v49, 0 }
0x2087   :  { %v6955_v54 = vand.u32 4294901760, %v6884_v53 }
0x2089   :  { %v6956_v61 = vsub.f32 %v6884_v53, %v6955_v54 }
0x208b   :  { %v6957_v62 = vand.u32 4294901760, %v6956_v61 }
0x208d   :  { %v6958_v1 = vsub.f32 %v6956_v61, %v6957_v62 }
0x208f   :  { %v6959_v8 = vand.u32 4294901760, %v6958_v1 }
0x2091   :  { %10523 = vmatmul.mubr.f32.vlgmr.msra.gmra.mrb[6].mxu1 %v6959_v8 }
0x2092   :  { %11200 = vmatpush3.bf16.msra.mxu1 %v12904_v41  ;;  %10533 = vmatprep.mubr.msk.f32.mxu1 %vm11782_vm1, %v11783_v11 }
0x2093   :  { %11201 = vmatprep.subr.bf16.mxu1 %v11781_v7 }
0x2096   :  { %11203 = vmatpush3.bf16.msra.mxu1 %v12908_v29 }
0x2097   :  { %11204 = vmatprep.subr.bf16.mxu1 %v11781_v7 }
0x2099   :  { %10534 = vmatmul.mubr.f32.vlgmr.msra.gmra.mrb[6].mxu1 %v6955_v54 }
0x209a   :  { %11206 = vmatpush3.bf16.msra.mxu1 %v12914_v10  ;;  %10544 = vmatprep.mubr.msk.f32.mxu1 %vm11782_vm1, %v11783_v11 }
0x209b   :  { %11207 = vmatprep.subr.bf16.mxu1 %v11781_v7 }
0x209e   :  { %11209 = vmatpush3.bf16.msra.mxu1 %v12919_v17 }
0x209f   :  { %11210 = vmatprep.subr.bf16.mxu1 %v11781_v7 }
0x20a1   :  { %10545 = vmatmul.mubr.f32.vlgmr.msra.gmra.mrb[6].mxu1 %v6956_v61 }
0x20a2   :  { %11212 = vmatpush3.bf16.msra.mxu1 %v12873_v63  ;;  %10555 = vmatprep.mubr.msk.f32.mxu1 %vm11782_vm1, %v11783_v11 }
0x20a3   :  { %11213 = vmatprep.subr.bf16.mxu1 %v11781_v7 }
0x20a6   :  { %11215 = vmatpush3.bf16.msra.mxu1 %v12878_v50 }
0x20a7   :  { %11216 = vmatprep.subr.bf16.mxu1 %v11781_v7 }
0x20a9   :  { %10556 = vmatmul.mubr.f32.vlgmr.msra.gmra.mrb[6].mxu1 %v6957_v62 }
0x20aa   :  { %11218 = vmatpush3.bf16.msra.mxu1 %v12932_v30  ;;  %10566 = vmatprep.mubr.msk.f32.mxu1 %vm11782_vm1, %v11783_v11 }
0x20ab   :  { %11219 = vmatprep.subr.bf16.mxu1 %v11781_v7 }
0x20ae   :  { %11221 = vmatpush3.bf16.msra.mxu1 %v12937_v59 }
0x20af   :  { %11222 = vmatprep.subr.bf16.mxu1 %v11781_v7 }
0x20b1   :  { %10567 = vmatmul.mubr.f32.vlgmr.msra.gmra.mrb[6].mxu1 %v6955_v54 }
0x20b2   :  { %11224 = vmatpush3.bf16.msra.mxu1 %v12873_v63  ;;  %10577 = vmatprep.mubr.msk.f32.mxu1 %vm11782_vm1, %v11783_v11 }
0x20b3   :  { %11225 = vmatprep.subr.bf16.mxu1 %v11781_v7 }
0x20b6   :  { %11227 = vmatpush3.bf16.msra.mxu1 %v12878_v50 }
0x20b7   :  { %11228 = vmatprep.subr.bf16.mxu1 %v11781_v7 }
0x20b9   :  { %10578 = vmatmul.mubr.f32.vlgmr.msra.gmra.mrb[6].mxu1 %v6955_v54 }
0x20ba   :  { %11230 = vmatpush3.bf16.msra.mxu1 %v12873_v63  ;;  %10588 = vmatprep.mubr.msk.f32.mxu1 %vm11782_vm1, %v11783_v11 }
0x20bb   :  { %11231 = vmatprep.subr.bf16.mxu1 %v11781_v7 }
0x20be   :  { %11233 = vmatpush3.bf16.msra.mxu1 %v12878_v50 }
0x20bf   :  { %11234 = vmatprep.subr.bf16.mxu1 %v11781_v7 }
0x218c   :  { %v7367_v22 = vpop.f32.mrb[6].mxu1 }
0x218d   :  { %v11346_v2 = vadd.f32 %v12961_v5, %v7367_v22  ;;  %v10579_v23 = vpop.f32.mrb[7].mxu1 }
0x218f   :  { %11748 = vtanh.f32 %v11346_v2  ;;  %v8984_v3 = vmul.f32 -1.442695, %v11346_v2 }
0x2191   :  { %11750 = vpow2.f32 %v8984_v3 }
0x2199   :  { %v11749_v24 = vpop.eup %11748 }
0x219a   :  { %7381 = vrot.lane.b32.xlu1 %v11749_v24, %s11784_s29 }
0x219b   :  { %v11751_v27 = vpop.eup %11750 }
0x219c   :  { %v7375_v6 = vadd.f32 1.0, %v11751_v27 }
0x219e   :  { %11752 = vrcp.f32 %v7375_v6 }
0x21a8   :  { %v11753_v28 = vpop.eup %11752 }
0x21a9   :  { %v7379_v52 = vmul.f32 %v11753_v28, %v13058_v45 }
0x220c   :  { %v7382_v36 = vpop.permute.xlu1 %7381 }
0x220d   :  { %v7384_v16 = vmul.f32 %v11753_v28, %v7382_v36 }
0x220f   :  { %7386 = vrot.lane.b32.xlu0 %v7384_v16, %s11784_s29 }
0x2281   :  { %v7387_v15 = vpop.permute.xlu0 %7386 }
0x2282   :  { %v13104_v20 = vadd.f32 %v7387_v15, %v7379_v52 }
0x2284   :  { %11754 = vtanh.f32 %v13104_v20 }
0x228e   :  { %v11755_v25 = vpop.eup %11754 }
0x228f   :  { %7392 = vrot.lane.b32.xlu1 %v11755_v25, %s11784_s29 }
0x2301   :  { %v7393_v33 = vpop.permute.xlu1 %7392 }
0x2302   :  { %v7395_v13 = vmul.f32 %v11753_v28, %v7393_v33 }
0x2304   :  { %7397 = vrot.lane.b32.xlu0 %v7395_v13, %s11785_s0 }
0x2376   :  { %v7398_v39 = vpop.permute.xlu0 %7397 }
0x2377   :  { %v7399_v26 = vsel %vm976_vm10, %v7398_v39, 0 }
0x2378   :  { %v7470_v38 = vand.u32 4294901760, %v7399_v26 }
0x237a   :  { %v7471_v4 = vsub.f32 %v7399_v26, %v7470_v38 }
0x237c   :  { %v7472_v46 = vand.u32 4294901760, %v7471_v4 }
0x237e   :  { %v7473_v19 = vsub.f32 %v7471_v4, %v7472_v46 }
0x2380   :  { %v7474_v12 = vand.u32 4294901760, %v7473_v19 }
0x2382   :  { %10589 = vmatmul.mubr.f32.vlgmr.msra.gmra.mrb[8].mxu1 %v7474_v12 }
0x2383   :  { %11236 = vmatpush3.bf16.msra.mxu1 %v12904_v41  ;;  %10599 = vmatprep.mubr.msk.f32.mxu1 %vm11782_vm1, %v11783_v11 }
0x2384   :  { %11237 = vmatprep.subr.bf16.mxu1 %v11781_v7 }
0x2387   :  { %11239 = vmatpush3.bf16.msra.mxu1 %v12908_v29 }
0x2388   :  { %11240 = vmatprep.subr.bf16.mxu1 %v11781_v7 }
0x238a   :  { %10600 = vmatmul.mubr.f32.vlgmr.msra.gmra.mrb[8].mxu1 %v7470_v38 }
0x238b   :  { %11242 = vmatpush3.bf16.msra.mxu1 %v12914_v10  ;;  %10610 = vmatprep.mubr.msk.f32.mxu1 %vm11782_vm1, %v11783_v11 }
0x238c   :  { %11243 = vmatprep.subr.bf16.mxu1 %v11781_v7 }
0x238f   :  { %11245 = vmatpush3.bf16.msra.mxu1 %v12919_v17 }
0x2390   :  { %11246 = vmatprep.subr.bf16.mxu1 %v11781_v7 }
0x2392   :  { %10611 = vmatmul.mubr.f32.vlgmr.msra.gmra.mrb[8].mxu1 %v7471_v4 }
0x2393   :  { %11248 = vmatpush3.bf16.msra.mxu1 %v12873_v63  ;;  %10621 = vmatprep.mubr.msk.f32.mxu1 %vm11782_vm1, %v11783_v11 }
0x2394   :  { %11249 = vmatprep.subr.bf16.mxu1 %v11781_v7 }
0x2397   :  { %11251 = vmatpush3.bf16.msra.mxu1 %v12878_v50 }
0x2398   :  { %11252 = vmatprep.subr.bf16.mxu1 %v11781_v7 }
0x239a   :  { %10622 = vmatmul.mubr.f32.vlgmr.msra.gmra.mrb[8].mxu1 %v7472_v46  ;;  %v11_v46 = vstv %s13249_s5 }
0x239b   :  { %11254 = vmatpush3.bf16.msra.mxu1 %v12932_v30  ;;  %10632 = vmatprep.mubr.msk.f32.mxu1 %vm11782_vm1, %v11783_v11  ;;  %12 = vst [vmem:[#allocation2] sm:$0x1] %v11_v46 }
0x239c   :  { %11255 = vmatprep.subr.bf16.mxu1 %v11781_v7 }
0x239f   :  { %11257 = vmatpush3.bf16.msra.mxu1 %v12937_v59 }
0x23a0   :  { %11258 = vmatprep.subr.bf16.mxu1 %v11781_v7 }
0x23a2   :  { %10633 = vmatmul.mubr.f32.vlgmr.msra.gmra.mrb[8].mxu1 %v7470_v38 }
0x23a3   :  { %11260 = vmatpush3.bf16.msra.mxu1 %v12873_v63  ;;  %10643 = vmatprep.mubr.msk.f32.mxu1 %vm11782_vm1, %v11783_v11 }
0x23a4   :  { %11261 = vmatprep.subr.bf16.mxu1 %v11781_v7 }
0x23a7   :  { %11263 = vmatpush3.bf16.msra.mxu1 %v12878_v50 }
0x23a8   :  { %11264 = vmatprep.subr.bf16.mxu1 %v11781_v7 }
0x23aa   :  { %10644 = vmatmul.mubr.f32.vlgmr.msra.gmra.mrb[8].mxu1 %v7470_v38 }
0x23ab   :  { %11266 = vmatpush3.bf16.msra.mxu1 %v12873_v63  ;;  %10654 = vmatprep.mubr.msk.f32.mxu1 %vm11782_vm1, %v11783_v11 }
0x23ac   :  { %11267 = vmatprep.subr.bf16.mxu1 %v11781_v7 }
0x23af   :  { %11269 = vmatpush3.bf16.msra.mxu1 %v12878_v50 }
0x23b0   :  { %11270 = vmatprep.subr.bf16.mxu1 %v11781_v7 }
0x247d   :  { %v7882_v0 = vpop.f32.mrb[8].mxu1 }
0x247e   :  { %v11347_v14 = vadd.f32 %v12961_v5, %v7882_v0  ;;  %v10645_v51 = vpop.f32.mrb[9].mxu1 }
0x2480   :  { %11756 = vtanh.f32 %v11347_v14  ;;  %v8985_v18 = vmul.f32 -1.442695, %v11347_v14 }
0x2482   :  { %11758 = vpow2.f32 %v8985_v18  ;;  %v8989_v18 = vld [vmem:[#allocation2] ss:$0 sm:$0xff] }
0x248a   :  { %v11757_v43 = vpop.eup %11756 }
0x248b   :  { %7896 = vrot.lane.b32.xlu1 %v11757_v43, %s11784_s29 }
0x248c   :  { %v11759_v32 = vpop.eup %11758 }
0x248d   :  { %v7890_v35 = vadd.f32 1.0, %v11759_v32 }
0x248f   :  { %11760 = vrcp.f32 %v7890_v35 }
0x2499   :  { %v11761_v55 = vpop.eup %11760 }
0x249a   :  { %v7894_v57 = vmul.f32 %v11761_v55, %v13104_v20 }
0x24fd   :  { %v7897_v9 = vpop.permute.xlu1 %7896 }
0x24fe   :  { %v7899_v56 = vmul.f32 %v11761_v55, %v7897_v9 }
0x2500   :  { %7901 = vrot.lane.b32.xlu0 %v7899_v56, %s11784_s29 }
0x2572   :  { %v7902_v58 = vpop.permute.xlu0 %7901 }
0x2573   :  { %v13150_v42 = vadd.f32 %v7902_v58, %v7894_v57 }
0x2575   :  { %11762 = vtanh.f32 %v13150_v42 }
0x257f   :  { %v11763_v37 = vpop.eup %11762 }
0x2580   :  { %7907 = vrot.lane.b32.xlu1 %v11763_v37, %s11784_s29 }
0x25f2   :  { %v7908_v34 = vpop.permute.xlu1 %7907 }
0x25f3   :  { %v7910_v60 = vmul.f32 %v11761_v55, %v7908_v34 }
0x25f5   :  { %7912 = vrot.lane.b32.xlu0 %v7910_v60, %s11785_s0 }
0x2667   :  { %v7913_v31 = vpop.permute.xlu0 %7912 }
0x2668   :  { %v7914_v40 = vsel %vm976_vm10, %v7913_v31, 0 }
0x2669   :  { %v7985_v44 = vand.u32 4294901760, %v7914_v40 }
0x266b   :  { %v7986_v45 = vsub.f32 %v7914_v40, %v7985_v44 }
0x266d   :  { %v7987_v21 = vand.u32 4294901760, %v7986_v45 }
0x266f   :  { %v7988_v47 = vsub.f32 %v7986_v45, %v7987_v21 }
0x2671   :  { %v7989_v48 = vand.u32 4294901760, %v7988_v47 }
0x2673   :  { %10655 = vmatmul.mubr.f32.vlgmr.msra.gmra.mrb[10].mxu1 %v7989_v48 }
0x2674   :  { %11272 = vmatpush3.bf16.msra.mxu1 %v12904_v41  ;;  %10665 = vmatprep.mubr.msk.f32.mxu1 %vm11782_vm1, %v11783_v11 }
0x2675   :  { %11273 = vmatprep.subr.bf16.mxu1 %v11781_v7 }
0x2678   :  { %11275 = vmatpush3.bf16.msra.mxu1 %v12908_v29 }
0x2679   :  { %11276 = vmatprep.subr.bf16.mxu1 %v11781_v7 }
0x267b   :  { %10666 = vmatmul.mubr.f32.vlgmr.msra.gmra.mrb[10].mxu1 %v7985_v44 }
0x267c   :  { %11278 = vmatpush3.bf16.msra.mxu1 %v12914_v10  ;;  %10676 = vmatprep.mubr.msk.f32.mxu1 %vm11782_vm1, %v11783_v11 }
0x267d   :  { %11279 = vmatprep.subr.bf16.mxu1 %v11781_v7 }
0x2680   :  { %11281 = vmatpush3.bf16.msra.mxu1 %v12919_v17 }
0x2681   :  { %11282 = vmatprep.subr.bf16.mxu1 %v11781_v7 }
0x2683   :  { %10677 = vmatmul.mubr.f32.vlgmr.msra.gmra.mrb[10].mxu1 %v7986_v45 }
0x2684   :  { %11284 = vmatpush3.bf16.msra.mxu1 %v12873_v63  ;;  %10687 = vmatprep.mubr.msk.f32.mxu1 %vm11782_vm1, %v11783_v11 }
0x2685   :  { %11285 = vmatprep.subr.bf16.mxu1 %v11781_v7 }
0x2688   :  { %11287 = vmatpush3.bf16.msra.mxu1 %v12878_v50 }
0x2689   :  { %11288 = vmatprep.subr.bf16.mxu1 %v11781_v7 }
0x268b   :  { %10688 = vmatmul.mubr.f32.vlgmr.msra.gmra.mrb[10].mxu1 %v7987_v21 }
0x268c   :  { %11290 = vmatpush3.bf16.msra.mxu1 %v12932_v30  ;;  %10698 = vmatprep.mubr.msk.f32.mxu1 %vm11782_vm1, %v11783_v11 }
0x268d   :  { %11291 = vmatprep.subr.bf16.mxu1 %v11781_v7 }
0x2690   :  { %11293 = vmatpush3.bf16.msra.mxu1 %v12937_v59 }
0x2691   :  { %11294 = vmatprep.subr.bf16.mxu1 %v11781_v7 }
0x2693   :  { %10699 = vmatmul.mubr.f32.vlgmr.msra.gmra.mrb[10].mxu1 %v7985_v44 }
0x2694   :  { %11296 = vmatpush3.bf16.msra.mxu1 %v12873_v63  ;;  %10709 = vmatprep.mubr.msk.f32.mxu1 %vm11782_vm1, %v11783_v11 }
0x2695   :  { %11297 = vmatprep.subr.bf16.mxu1 %v11781_v7 }
0x2698   :  { %11299 = vmatpush3.bf16.msra.mxu1 %v12878_v50 }
0x2699   :  { %11300 = vmatprep.subr.bf16.mxu1 %v11781_v7 }
0x269b   :  { %10710 = vmatmul.mubr.f32.vlgmr.msra.gmra.mrb[10].mxu1 %v7985_v44 }
0x269c   :  { %11302 = vmatpush3.bf16.msra.mxu1 %v12873_v63  ;;  %10720 = vmatprep.mubr.msk.f32.mxu1 %vm11782_vm1, %v11783_v11 }
0x269d   :  { %11303 = vmatprep.subr.bf16.mxu1 %v11781_v7 }
0x26a0   :  { %11305 = vmatpush3.bf16.msra.mxu1 %v12878_v50 }
0x26a1   :  { %11306 = vmatprep.subr.bf16.mxu1 %v11781_v7 }
0x276e   :  { %v8397_v49 = vpop.f32.mrb[10].mxu1 }
0x276f   :  { %v11348_v53 = vadd.f32 %v12961_v5, %v8397_v49  ;;  %v10711_v54 = vpop.f32.mrb[11].mxu1 }
0x2771   :  { %11764 = vtanh.f32 %v11348_v53  ;;  %v8986_v62 = vmul.f32 -1.442695, %v11348_v53 }
0x2773   :  { %11766 = vpow2.f32 %v8986_v62 }
0x277b   :  { %v11765_v61 = vpop.eup %11764 }
0x277c   :  { %8411 = vrot.lane.b32.xlu1 %v11765_v61, %s11784_s29 }
0x277d   :  { %v11767_v1 = vpop.eup %11766 }
0x277e   :  { %v8405_v8 = vadd.f32 1.0, %v11767_v1 }
0x2780   :  { %11768 = vrcp.f32 %v8405_v8 }
0x278a   :  { %v11769_v22 = vpop.eup %11768 }
0x278b   :  { %v8409_v24 = vmul.f32 %v11769_v22, %v13150_v42 }
0x27ee   :  { %v8412_v2 = vpop.permute.xlu1 %8411 }
0x27ef   :  { %v8414_v23 = vmul.f32 %v11769_v22, %v8412_v2 }
0x27f1   :  { %8416 = vrot.lane.b32.xlu0 %v8414_v23, %s11784_s29 }
0x2863   :  { %v8417_v3 = vpop.permute.xlu0 %8416 }
0x2864   :  { %v8419_v27 = vadd.f32 %v8417_v3, %v8409_v24 }
0x2866   :  { %11770 = vtanh.f32 %v8419_v27 }
0x2870   :  { %v11771_v6 = vpop.eup %11770 }
0x2871   :  { %8422 = vrot.lane.b32.xlu1 %v11771_v6, %s11784_s29 }
0x28e3   :  { %v8423_v28 = vpop.permute.xlu1 %8422 }
0x28e4   :  { %v8425_v36 = vmul.f32 %v11769_v22, %v8423_v28 }
0x28e6   :  { %8427 = vrot.lane.b32.xlu0 %v8425_v36, %s11785_s0 }
0x2958   :  { %v8428_v16 = vpop.permute.xlu0 %8427 }
0x2959   :  { %v8429_v52 = vsel %vm976_vm10, %v8428_v16, 0 }
0x295a   :  { %v8500_v15 = vand.u32 4294901760, %v8429_v52 }
0x295c   :  { %v8501_v20 = vsub.f32 %v8429_v52, %v8500_v15 }
0x295e   :  { %v8502_v25 = vand.u32 4294901760, %v8501_v20 }
0x2960   :  { %v8503_v33 = vsub.f32 %v8501_v20, %v8502_v25 }
0x2962   :  { %v8504_v13 = vand.u32 4294901760, %v8503_v33 }
0x2964   :  { %10721 = vmatmul.mubr.f32.vlgmr.msra.gmra.mrb[12].mxu1 %v8504_v13 }
0x2965   :  { %11308 = vmatpush3.bf16.msra.mxu1 %v12904_v41  ;;  %10731 = vmatprep.mubr.msk.f32.mxu1 %vm11782_vm1, %v11783_v11 }
0x2966   :  { %11309 = vmatprep.subr.bf16.mxu1 %v11781_v7 }
0x2969   :  { %11311 = vmatpush3.bf16.msra.mxu1 %v12908_v29 }
0x296a   :  { %11312 = vmatprep.subr.bf16.mxu1 %v11781_v7 }
0x296c   :  { %10732 = vmatmul.mubr.f32.vlgmr.msra.gmra.mrb[12].mxu1 %v8500_v15 }
0x296d   :  { %11314 = vmatpush3.bf16.msra.mxu1 %v12914_v10  ;;  %10742 = vmatprep.mubr.msk.f32.mxu1 %vm11782_vm1, %v11783_v11 }
0x296e   :  { %11315 = vmatprep.subr.bf16.mxu1 %v11781_v7 }
0x2971   :  { %11317 = vmatpush3.bf16.msra.mxu1 %v12919_v17 }
0x2972   :  { %11318 = vmatprep.subr.bf16.mxu1 %v11781_v7 }
0x2974   :  { %10743 = vmatmul.mubr.f32.vlgmr.msra.gmra.mrb[12].mxu1 %v8501_v20 }
0x2975   :  { %11320 = vmatpush3.bf16.msra.mxu1 %v12873_v63  ;;  %10753 = vmatprep.mubr.msk.f32.mxu1 %vm11782_vm1, %v11783_v11 }
0x2976   :  { %11321 = vmatprep.subr.bf16.mxu1 %v11781_v7 }
0x2979   :  { %11323 = vmatpush3.bf16.msra.mxu1 %v12878_v50 }
0x297a   :  { %11324 = vmatprep.subr.bf16.mxu1 %v11781_v7 }
0x297c   :  { %10754 = vmatmul.mubr.f32.vlgmr.msra.gmra.mrb[12].mxu1 %v8502_v25 }
0x297d   :  { %11326 = vmatpush3.bf16.msra.mxu1 %v12932_v30  ;;  %10764 = vmatprep.mubr.msk.f32.mxu1 %vm11782_vm1, %v11783_v11 }
0x297e   :  { %11327 = vmatprep.subr.bf16.mxu1 %v11781_v7 }
0x2981   :  { %11329 = vmatpush3.bf16.msra.mxu1 %v12937_v59 }
0x2982   :  { %11330 = vmatprep.subr.bf16.mxu1 %v11781_v7 }
0x2984   :  { %10765 = vmatmul.mubr.f32.vlgmr.msra.gmra.mrb[12].mxu1 %v8500_v15 }
0x2985   :  { %11332 = vmatpush3.bf16.msra.mxu1 %v12873_v63  ;;  %10775 = vmatprep.mubr.msk.f32.mxu1 %vm11782_vm1, %v11783_v11 }
0x2986   :  { %11333 = vmatprep.subr.bf16.mxu1 %v11781_v7  ;;  %v8988_v7 = vld [vmem:[%s13248_s4] ss:$0 sm:$0xff] }
0x2989   :  { %11335 = vmatpush3.bf16.msra.mxu1 %v12878_v50 }
0x298c   :  { %10776 = vmatmul.mubr.f32.vlgmr.msra.gmra.mrb[12].mxu1 %v8500_v15 }
0x2a5f   :  { %v8912_v41 = vpop.f32.mrb[12].mxu1 }
0x2a60   :  { %v11349_v29 = vadd.f32 %v12961_v5, %v8912_v41  ;;  %v10777_v10 = vpop.f32.mrb[13].mxu1 }
0x2a62   :  { %11772 = vtanh.f32 %v11349_v29  ;;  %v8987_v30 = vmul.f32 -1.442695, %v11349_v29 }
0x2a64   :  { %11774 = vpow2.f32 %v8987_v30 }
0x2a6c   :  { %v11773_v17 = vpop.eup %11772 }
0x2a6d   :  { %8926 = vrot.lane.b32.xlu1 %v11773_v17, %s11784_s29 }
0x2a6e   :  { %v11775_v59 = vpop.eup %11774 }
0x2a6f   :  { %v8920_v63 = vadd.f32 1.0, %v11775_v59 }
0x2a71   :  { %11776 = vrcp.f32 %v8920_v63 }
0x2a7b   :  { %v11777_v39 = vpop.eup %11776 }
0x2a7c   :  { %v8924_v50 = vmul.f32 %v11777_v39, %v8419_v27 }
0x2adf   :  { %v8927_v11 = vpop.permute.xlu1 %8926 }
0x2ae0   :  { %v8929_v26 = vmul.f32 %v11777_v39, %v8927_v11 }
0x2ae2   :  { %8931 = vrot.lane.b32.xlu0 %v8929_v26, %s11784_s29 }
0x2ae6   :  { %8948 = vrot.lane.b32.xlu0 %v8988_v7, %s11785_s0 }
0x2b54   :  { %v8932_v5 = vpop.permute.xlu0 %8931 }
0x2b55   :  { %v8934_v38 = vadd.f32 %v8932_v5, %v8924_v50 }
0x2b57   :  { %11778 = vtanh.f32 %v8934_v38 }
0x2b58   :  { %v8949_v12 = vpop.permute.xlu0 %8948 }
0x2b61   :  { %v11779_v4 = vpop.eup %11778 }
0x2b62   :  { %8937 = vrot.lane.b32.xlu1 %v11779_v4, %s11784_s29 }
0x2bd4   :  { %v8938_v19 = vpop.permute.xlu1 %8937 }
0x2bd5   :  { %v8940_v0 = vmul.f32 %v11777_v39, %v8938_v19 }
0x2bd7   :  { %v8951_v14 = vmul.f32 %v8949_v12, %v8940_v0 }
0x2bd9   :  { %8953 = vrot.lane.b32.xlu1 %v8951_v14, %s11785_s0 }
0x2c4b   :  { %v8954_v51 = vpop.permute.xlu1 %8953 }
0x2c4c   :  { %v8956_v43 = vsel %vm976_vm10, %v8954_v51, 0.0 }
0x2c4d   :  { %8957 = vadd.xlane.f32.xlu0 %v8956_v43 }
0x2cda   :  { %v8958_v32 = vpop.xlane.xlu0 %8957 }
0x2cdb   :  { %v8965_v35 = vadd.f32 %v8989_v18, %v8958_v32 }
0x2cdd   :  { %8967 = vst.msk [vmem:[%s13250_s6] sm:$0xff] %vm8966_vm11, %v8965_v35 }

</bundles_post_ra>
